<compile_context>
chip_gen: v5e
topology: v5e:2x2
jax: 0.10.0
libtpu: 0.0.40
codegen_flags: <defaults>
</compile_context>

<pallas_src>
import functools

import jax
import jax.numpy as jnp
import numpy as np
from jax.experimental import pallas as pl
from jax.experimental.pallas import tpu as pltpu

DT = 0.4      # self.dt
_EPS = 1e-20  # numerical-stability clamp inside the Gaussian likelihood


def _silu(x):
    return x * jax.nn.sigmoid(x)


def _lstm_cell(gates, c, GP):
    """LSTM cell; gate blocks pre-permuted to [i, f, o, g], each padded to GP lanes.

    GP is a multiple of 128, so every gate block starts at lane offset 0 of its own
    vreg: the elementwise products below are rotate-free full-vreg VPU work.
    Padded lanes stay exactly 0 (gates=0 there -> i=f=o=0.5, g=0 -> c,h stay 0).
    """
    sig = jax.nn.sigmoid(gates[:, :3 * GP])     # one contiguous sigmoid slab (i,f,o)
    g = jnp.tanh(gates[:, 3 * GP:])
    i = sig[:, :GP]
    f = sig[:, GP:2 * GP]
    o = sig[:, 2 * GP:3 * GP]
    c_new = f * c + i * g
    h_new = o * jnp.tanh(c_new)
    return h_new, c_new


def _forward_kernel(obs_vels_ref, obs_abs_last_ref, tgt_ref, csum_ref,
                    w_emb_ref, b_emb_ref,
                    wih_p_ref, whh_p_ref, b_p_ref,
                    wih_f_ref, whh_f_ref, b_f_ref,
                    w_dec_ref, b_dec_ref,
                    loss_ref, xg_ref,
                    *, Bs, T_obs, T_pred, GP, D_out, mxu_dtype):
    f32 = jnp.float32

    whh_p = whh_p_ref[...]                  # (GP, 4GP)   mxu dtype
    w_emb = w_emb_ref[...]                  # (D_in, D_emb)
    wih_f = wih_f_ref[...]                  # (D_emb, 4GP)
    whh_f = whh_f_ref[...]                  # (GP, 4GP)
    w_dec = w_dec_ref[...]                  # (GP, D_out+3)

    # Hoist bias broadcasts out of the unrolled loops (JAX does not CSE them).
    b_emb = jnp.broadcast_to(b_emb_ref[...], (Bs, b_emb_ref.shape[1]))
    b_f = jnp.broadcast_to(b_f_ref[...], (Bs, 4 * GP))
    b_dec = jnp.broadcast_to(b_dec_ref[...], (Bs, b_dec_ref.shape[1]))

    # ---- encoder (lstm_past) ----
    # Input-gate contributions for all T_obs steps hoisted into one matmul (pre-summed
    # bias folded in), staged in VMEM scratch so only one (Bs, 4GP) tile is live per
    # step; the per-step serial work is just h @ W_hh.
    xg_ref[...] = jnp.dot(obs_vels_ref[...].astype(mxu_dtype), wih_p_ref[...],
                          preferred_element_type=f32) + b_p_ref[...]

    h = jnp.zeros((Bs, GP), f32)
    c = jnp.zeros((Bs, GP), f32)
    for t in range(T_obs):   # unrolled; use lax.fori_loop(unroll=2-4) if T_obs grows
        gates = xg_ref[pl.ds(t * Bs, Bs), :] + jnp.dot(
            h.astype(mxu_dtype), whh_p, preferred_element_type=f32)
        h, c = _lstm_cell(gates, c, GP)

    last_vel = obs_vels_ref[pl.ds((T_obs - 1) * Bs, Bs), :]     # obs_vels[:, -1, :]

    # ---- autoregressive decode (teacher_forcing=False) ----
    # Only recurrence-critical math stays in the loop; the Gaussian-NLL transcendentals
    # are deferred to the lane-packed epilogue below.
    decs, vels = [], []
    for _ in range(T_pred):
        emb = _silu(jnp.dot(last_vel.astype(mxu_dtype), w_emb,
                            preferred_element_type=f32) + b_emb)
        # Un-fused gate matmuls: no per-step lane concat; h @ W_hh issues as soon as
        # the previous step's h is ready.
        gates = (jnp.dot(emb.astype(mxu_dtype), wih_f, preferred_element_type=f32)
                 + b_f
                 + jnp.dot(h.astype(mxu_dtype), whh_f, preferred_element_type=f32))
        h, c = _lstm_cell(gates, c, GP)
        # TODO(synk): nn.Dropout (drop_past / drop_future) modeled as identity (eval mode).
        dec = jnp.dot(_silu(h).astype(mxu_dtype), w_dec,
                      preferred_element_type=f32) + b_dec
        pred_vel = dec[:, :D_out] + last_vel          # dec[:, :, :2] + v_last
        last_vel = pred_vel
        decs.append(dec)
        vels.append(pred_vel)

    # ---- Gaussian 2D NLL epilogue: lane-packed, vectorized over all T_pred steps ----
    csum = csum_ref[...]                               # (T_pred, T_pred) upper-tri ones
    lsx = jnp.concatenate([d[:, D_out:D_out + 1] for d in decs], axis=1)       # (Bs,T)
    lsy = jnp.concatenate([d[:, D_out + 1:D_out + 2] for d in decs], axis=1)
    rho = jnp.concatenate([d[:, D_out + 2:D_out + 3] for d in decs], axis=1)
    vx = jnp.concatenate([v[:, 0:1] for v in vels], axis=1)
    vy = jnp.concatenate([v[:, 1:2] for v in vels], axis=1)

    dt = jnp.float32(DT)
    dt2 = jnp.float32(DT * DT)

    # One exp over the packed [log sx | log sy] slab; cumulative sums over the step
    # axis via a tiny upper-triangular matmul (the MXU has huge slack here).
    exp_slab = jnp.exp(jnp.concatenate([lsx, lsy], axis=1))                    # (Bs,2T)
    sx = dt2 * jnp.dot(exp_slab[:, :T_pred], csum, preferred_element_type=f32)
    sy = dt2 * jnp.dot(exp_slab[:, T_pred:], csum, preferred_element_type=f32)
    corr = jnp.tanh(rho)                               # "latest" rho at each step

    obs_last = obs_abs_last_ref[...]                   # (Bs, 2)
    cum_x = jnp.dot(vx, csum, preferred_element_type=f32)
    cum_y = jnp.dot(vy, csum, preferred_element_type=f32)
    tgt = tgt_ref[...]                                 # (Bs, 2T): [x_0..x_T | y_0..y_T]
    nx = tgt[:, :T_pred] - (obs_last[:, 0:1] + dt * cum_x)
    ny = tgt[:, T_pred:] - (obs_last[:, 1:2] + dt * cum_y)

    # Reciprocal-multiplies instead of per-term divides.
    neg_rho = 1.0 - corr * corr
    inv_sx = 1.0 / sx
    inv_sy = 1.0 / sy
    inv_sxsy = jnp.sqrt(inv_sx * inv_sy)               # 1 / sqrt(sx*sy)
    inv_nr = 1.0 / neg_rho
    z = nx * nx * inv_sx + ny * ny * inv_sy - 2.0 * corr * nx * ny * inv_sxsy
    pdf = jnp.exp(-0.5 * z * inv_nr) * (
        inv_sxsy * jnp.sqrt(inv_nr) * jnp.float32(1.0 / (2.0 * np.pi)))
    nll = -jnp.log(jnp.maximum(pdf, _EPS))             # (Bs, T_pred)

    # Per-shard partial sum; the wrapper divides by the full batch size
    # (loss = sum_i mean_b nll_ib = total_sum / B).
    loss_ref[...] = jnp.sum(jnp.sum(nll, axis=1, keepdims=True), axis=0, keepdims=True)


# ----------------------------- wrapper / weight prep -----------------------------

def _pad_gate_cols(w_t, H, GP):
    """(in, 4H) columns in PyTorch gate order [i,f,g,o] -> (in, 4*GP) in order
    [i,f,o,g], each gate zero-padded to its own GP-lane (128-aligned) block."""
    n_in = w_t.shape[0]
    out = jnp.zeros((n_in, 4 * GP), w_t.dtype)
    for dst, src in enumerate((0, 1, 3, 2)):            # -> i, f, o, g
        out = out.at[:, dst * GP:dst * GP + H].set(w_t[:, src * H:(src + 1) * H])
    return out


def _pad_gate_bias(b, H, GP):
    return _pad_gate_cols(b.reshape(1, 4 * H), H, GP)


def _pad_rows(w, GP):
    """Zero-pad the leading (contraction) dim from H to GP rows."""
    H = w.shape[0]
    return jnp.zeros((GP, w.shape[1]), w.dtype).at[:H, :].set(w)


def lstm_encdec_gaussian_forward(obs_vels, target_vels, obs_abs, target_abs, params,
                                 *, num_shards=1, mxu_dtype=jnp.bfloat16):
    """Scalar training loss of lstm_encdec_gaussian.forward (teacher_forcing=False).

    num_shards: independent batch shards run as a "parallel" grid axis (both
    TensorCores on v7x).  B must divide evenly; shard size should be a multiple of 8
    for sublane alignment.  For throughput, stack trajectories to B >= 128/256.
    """
    f32 = jnp.float32
    B, T_obs, D_in = obs_vels.shape
    T_pred = target_vels.shape[1]
    H = params["whh_p"].shape[1]
    D_out = D_in                                    # v_pred = dec[..., :2] + v_last
    GP = ((H + 127) // 128) * 128                   # per-gate lane-aligned block width
    assert B % num_shards == 0, "batch must divide evenly across shards"
    Bs = B // num_shards

    # --- activations: shard the batch; time-major layout within each shard ---
    ov = obs_vels.astype(f32).reshape(num_shards, Bs, T_obs, D_in)
    ov = jnp.transpose(ov, (0, 2, 1, 3)).reshape(num_shards, T_obs * Bs, D_in)
    obs_last = obs_abs.astype(f32)[:, -1, :].reshape(num_shards, Bs, D_in)
    ta = target_abs.astype(f32).reshape(num_shards, Bs, T_pred, D_in)
    tgt_pack = jnp.concatenate([ta[..., 0], ta[..., 1]], axis=-1)  # (S, Bs, 2*T_pred)
    csum_mat = jnp.asarray(np.triu(np.ones((T_pred, T_pred), np.float32)))

    # --- weights: transpose to (in, out), permute+pad gate columns, pre-sum biases,
    #     pad hidden contraction rows to GP, pre-cast MXU operands ---
    mx = mxu_dtype
    w_emb = params["w_emb"].T.astype(mx)                            # (D_in, D_emb)
    b_emb = params["b_emb"].reshape(1, -1).astype(f32)
    wih_p = _pad_gate_cols(params["wih_p"].T, H, GP).astype(mx)     # (D_in, 4GP)
    whh_p = _pad_rows(_pad_gate_cols(params["whh_p"].T, H, GP), GP).astype(mx)
    b_p = _pad_gate_bias(params["bih_p"] + params["bhh_p"], H, GP).astype(f32)
    wih_f = _pad_gate_cols(params["wih_f"].T, H, GP).astype(mx)     # (D_emb, 4GP)
    whh_f = _pad_rows(_pad_gate_cols(params["whh_f"].T, H, GP), GP).astype(mx)
    b_f = _pad_gate_bias(params["bih_f"] + params["bhh_f"], H, GP).astype(f32)
    w_dec = _pad_rows(params["w_dec"].T.astype(f32), GP).astype(mx)  # (GP, D_out+3)
    b_dec = params["b_dec"].reshape(1, -1).astype(f32)

    kernel = functools.partial(_forward_kernel, Bs=Bs, T_obs=T_obs, T_pred=T_pred,
                               GP=GP, D_out=D_out, mxu_dtype=mx)
    full_vmem = pl.BlockSpec(memory_space=pltpu.MemorySpace.VMEM)

    # TODO(synk): at production batch sizes, re-derive the per-shard tile against the
    # generation's VMEM (64 MiB on v7x) and set vmem_limit_bytes; <1 MiB here.
    partial_loss = pl.pallas_call(
        kernel,
        out_shape=jax.ShapeDtypeStruct((num_shards, 1, 1), f32),
        grid=(num_shards,),
        in_specs=[
            pl.BlockSpec((None, T_obs * Bs, D_in), lambda s: (s, 0, 0)),
            pl.BlockSpec((None, Bs, D_in), lambda s: (s, 0, 0)),
            pl.BlockSpec((None, Bs, 2 * T_pred), lambda s: (s, 0, 0)),
            full_vmem,                                  # csum matrix
            full_vmem, full_vmem,                       # w_emb, b_emb
            full_vmem, full_vmem, full_vmem,            # wih_p, whh_p, b_p
            full_vmem, full_vmem, full_vmem,            # wih_f, whh_f, b_f
            full_vmem, full_vmem,                       # w_dec, b_dec
        ],
        out_specs=pl.BlockSpec((None, 1, 1), lambda s: (s, 0, 0)),
        scratch_shapes=[pltpu.VMEM((T_obs * Bs, 4 * GP), f32)],
        compiler_params=pltpu.CompilerParams(
            # Independent batch shards: split across TensorCores on v7x; a plain
            # sequential loop on v5e/v6e (1 TC/chip).
            dimension_semantics=("parallel",)),
    )(ov, obs_last, tgt_pack, csum_mat,
      w_emb, b_emb, wih_p, whh_p, b_p, wih_f, whh_f, b_f, w_dec, b_dec)

    return jnp.sum(partial_loss) / jnp.float32(B)


# ----------------------------- pure-JAX reference -----------------------------

def _gaussian2d_likelihood_ref(targets, means, sigmas, dt):
    # TODO(synk): Gaussian2DLikelihood / convertToCov are defined outside the provided
    # module; implemented as the standard bivariate-Gaussian NLL with exp/tanh-converted
    # parameters, variances accumulated over time and scaled by dt^2 (matching predict()).
    sx = dt * dt * jnp.sum(jnp.exp(sigmas[:, :, 0]), axis=1)
    sy = dt * dt * jnp.sum(jnp.exp(sigmas[:, :, 1]), axis=1)
    corr = jnp.tanh(sigmas[:, -1, 2])
    nx = targets[:, 0] - means[:, 0]
    ny = targets[:, 1] - means[:, 1]
    sxsy = jnp.sqrt(sx * sy)
    neg_rho = 1.0 - corr * corr
    z = nx * nx / sx + ny * ny / sy - 2.0 * corr * nx * ny / sxsy
    pdf = jnp.exp(-z / (2.0 * neg_rho)) / (2.0 * jnp.pi * sxsy * jnp.sqrt(neg_rho))
    return jnp.mean(-jnp.log(jnp.maximum(pdf, _EPS)))


def lstm_encdec_gaussian_forward_ref(obs_vels, target_vels, obs_abs, target_abs, p):
    """Straightforward JAX mirror of the PyTorch forward (HIGHEST-precision matmuls)."""
    B, T_obs, _ = obs_vels.shape
    T_pred = target_vels.shape[1]
    H = p["whh_p"].shape[1]
    dot = functools.partial(jnp.dot, precision=jax.lax.Precision.HIGHEST)

    def cell(x, h, c, wih, whh, bih, bhh):
        g = dot(x, wih.T) + bih + dot(h, whh.T) + bhh
        i = jax.nn.sigmoid(g[:, :H])
        f = jax.nn.sigmoid(g[:, H:2 * H])
        gg = jnp.tanh(g[:, 2 * H:3 * H])
        o = jax.nn.sigmoid(g[:, 3 * H:])
        c = f * c + i * gg
        return o * jnp.tanh(c), c

    h = jnp.zeros((B, H), jnp.float32)
    c = jnp.zeros((B, H), jnp.float32)
    for t in range(T_obs):
        h, c = cell(obs_vels[:, t, :], h, c,
                    p["wih_p"], p["whh_p"], p["bih_p"], p["bhh_p"])
    last_vel = obs_vels[:, -1, :]
    cum = jnp.zeros_like(last_vel)
    sigmas = []
    loss = jnp.float32(0.0)
    for i in range(T_pred):
        emb = _silu(dot(last_vel, p["w_emb"].T) + p["b_emb"])
        h, c = cell(emb, h, c, p["wih_f"], p["whh_f"], p["bih_f"], p["bhh_f"])
        dec = dot(_silu(h), p["w_dec"].T) + p["b_dec"]
        pred_vel = dec[:, :2] + last_vel
        sigmas.append(dec[:, 2:])
        last_vel = pred_vel
        cum = cum + pred_vel
        pred_abs = obs_abs[:, -1, :] + cum * DT
        loss = loss + _gaussian2d_likelihood_ref(
            target_abs[:, i, :], pred_abs, jnp.stack(sigmas, axis=1), DT)
    return loss


def init_params(key, d_in, d_emb, d_hid, d_out):
    ks = jax.random.split(key, 12)

    def u(k, shape, fan):
        b = 1.0 / np.sqrt(fan)
        return jax.random.uniform(k, shape, jnp.float32, -b, b)

    return dict(
        # nn.Linear(input_dim, embedding_dim)
        w_emb=u(ks[0], (d_emb, d_in), d_in), b_emb=u(ks[1], (d_emb,), d_in),
        # nn.LSTM(input_dim, hidden_dim, num_layers=1)
        wih_p=u(ks[2], (4 * d_hid, d_in), d_hid), whh_p=u(ks[3], (4 * d_hid, d_hid), d_hid),
        bih_p=u(ks[4], (4 * d_hid,), d_hid), bhh_p=u(ks[5], (4 * d_hid,), d_hid),
        # nn.LSTM(embedding_dim, hidden_dim, num_layers=1)
        wih_f=u(ks[6], (4 * d_hid, d_emb), d_hid), whh_f=u(ks[7], (4 * d_hid, d_hid), d_hid),
        bih_f=u(ks[8], (4 * d_hid,), d_hid), bhh_f=u(ks[9], (4 * d_hid,), d_hid),
        # nn.Linear(hidden_dim, output_dim + 3): [vx, vy, log sx, log sy, atanh corr]
        w_dec=u(ks[10], (d_out + 3, d_hid), d_hid), b_dec=u(ks[11], (d_out + 3,), d_hid),
    )


if __name__ == "__main__":
    # config = {input_dim: 2, embedding_dim: 16, hidden_dim: 32, num_layers: 1,
    #           output_dim: 2, dropout_rate: 0.1 (identity in eval)}
    B, T_OBS, T_PRED = 16, 8, 4
    D_IN, D_EMB, D_HID, D_OUT = 2, 16, 32, 2
    NUM_SHARDS = 2        # exercises the "parallel" batch-shard grid (2 TCs on v7x)

    key = jax.random.PRNGKey(0)
    k_par, k_ov, k_tv, k_oa, k_ta = jax.random.split(key, 5)
    params = init_params(k_par, D_IN, D_EMB, D_HID, D_OUT)

    obs_vels = 0.5 * jax.random.normal(k_ov, (B, T_OBS, D_IN), jnp.float32)
    target_vels = 0.5 * jax.random.normal(k_tv, (B, T_PRED, D_IN), jnp.float32)
    obs_abs = jax.random.normal(k_oa, (B, T_OBS, D_IN), jnp.float32)
    target_abs = jax.random.normal(k_ta, (B, T_PRED, D_IN), jnp.float32)

    loss_ref = jax.block_until_ready(
        lstm_encdec_gaussian_forward_ref(obs_vels, target_vels, obs_abs, target_abs, params))

    # f32 MXU path: tight check against the HIGHEST-precision reference so the gate
    # padding / permutation / deferred-NLL restructuring cannot silently drift.
    loss_f32 = jax.block_until_ready(lstm_encdec_gaussian_forward(
        obs_vels, target_vels, obs_abs, target_abs, params,
        num_shards=NUM_SHARDS, mxu_dtype=jnp.float32))
    np.testing.assert_allclose(np.asarray(loss_f32), np.asarray(loss_ref),
                               rtol=1e-4, atol=1e-4)

    # bf16 MXU path (perf default): single MXU pass per dot; looser tolerance by design.
    loss_bf16 = jax.block_until_ready(lstm_encdec_gaussian_forward(
        obs_vels, target_vels, obs_abs, target_abs, params,
        num_shards=NUM_SHARDS, mxu_dtype=jnp.bfloat16))
    np.testing.assert_allclose(np.asarray(loss_bf16), np.asarray(loss_ref),
                               rtol=2e-2, atol=2e-2)

    print("KERNEL_OK")
</pallas_src>

<mosaic_0001>
module attributes {stable_mosaic.version = 11 : i64} {
  func.func @_forward_kernel(%arg0: i32, %arg1: memref<1x64x2xf32, #tpu.memory_space<vmem>>, %arg2: memref<1x8x2xf32, #tpu.memory_space<vmem>>, %arg3: memref<1x8x8xf32, #tpu.memory_space<vmem>>, %arg4: memref<4x4xf32, #tpu.memory_space<vmem>>, %arg5: memref<2x16xf32, #tpu.memory_space<vmem>>, %arg6: memref<1x16xf32, #tpu.memory_space<vmem>>, %arg7: memref<2x512xf32, #tpu.memory_space<vmem>>, %arg8: memref<128x512xf32, #tpu.memory_space<vmem>>, %arg9: memref<1x512xf32, #tpu.memory_space<vmem>>, %arg10: memref<16x512xf32, #tpu.memory_space<vmem>>, %arg11: memref<128x512xf32, #tpu.memory_space<vmem>>, %arg12: memref<1x512xf32, #tpu.memory_space<vmem>>, %arg13: memref<128x5xf32, #tpu.memory_space<vmem>>, %arg14: memref<1x5xf32, #tpu.memory_space<vmem>>, %arg15: memref<1x1x1xf32, #tpu.memory_space<vmem>>, %arg16: memref<64x512xf32, #tpu.memory_space<vmem>>) attributes {dimension_semantics = [#tpu.dimension_semantics<parallel>], iteration_bounds = array<i64: 2>, scalar_prefetch = 0 : i64, scratch_operands = 1 : i64, tpu.core_type = #tpu.core_type<tc>, window_params = [{transform_indices = @transform_0, window_bounds = array<i64: 1, 64, 2>}, {transform_indices = @transform_1, window_bounds = array<i64: 1, 8, 2>}, {transform_indices = @transform_2, window_bounds = array<i64: 1, 8, 8>}, {pipeline_mode = #tpu.pipeline_mode<synchronous>, transform_indices = @transform_3, window_bounds = array<i64: 4, 4>}, {pipeline_mode = #tpu.pipeline_mode<synchronous>, transform_indices = @transform_4, window_bounds = array<i64: 2, 16>}, {pipeline_mode = #tpu.pipeline_mode<synchronous>, transform_indices = @transform_5, window_bounds = array<i64: 1, 16>}, {pipeline_mode = #tpu.pipeline_mode<synchronous>, transform_indices = @transform_6, window_bounds = array<i64: 2, 512>}, {pipeline_mode = #tpu.pipeline_mode<synchronous>, transform_indices = @transform_7, window_bounds = array<i64: 128, 512>}, {pipeline_mode = #tpu.pipeline_mode<synchronous>, transform_indices = @transform_8, window_bounds = array<i64: 1, 512>}, {pipeline_mode = #tpu.pipeline_mode<synchronous>, transform_indices = @transform_9, window_bounds = array<i64: 16, 512>}, {pipeline_mode = #tpu.pipeline_mode<synchronous>, transform_indices = @transform_10, window_bounds = array<i64: 128, 512>}, {pipeline_mode = #tpu.pipeline_mode<synchronous>, transform_indices = @transform_11, window_bounds = array<i64: 1, 512>}, {pipeline_mode = #tpu.pipeline_mode<synchronous>, transform_indices = @transform_12, window_bounds = array<i64: 128, 5>}, {pipeline_mode = #tpu.pipeline_mode<synchronous>, transform_indices = @transform_13, window_bounds = array<i64: 1, 5>}, {transform_indices = @transform_14, window_bounds = array<i64: 1, 1, 1>}]} {
    %c0 = arith.constant 0 : index
    %c0_0 = arith.constant 0 : index
    %0 = vector.load %arg8[%c0, %c0_0] : memref<128x512xf32, #tpu.memory_space<vmem>>, vector<128x512xf32>
    %c0_1 = arith.constant 0 : index
    %c0_2 = arith.constant 0 : index
    %1 = vector.load %arg5[%c0_1, %c0_2] : memref<2x16xf32, #tpu.memory_space<vmem>>, vector<2x16xf32>
    %c0_3 = arith.constant 0 : index
    %c0_4 = arith.constant 0 : index
    %2 = vector.load %arg10[%c0_3, %c0_4] : memref<16x512xf32, #tpu.memory_space<vmem>>, vector<16x512xf32>
    %c0_5 = arith.constant 0 : index
    %c0_6 = arith.constant 0 : index
    %3 = vector.load %arg11[%c0_5, %c0_6] : memref<128x512xf32, #tpu.memory_space<vmem>>, vector<128x512xf32>
    %c0_7 = arith.constant 0 : index
    %c0_8 = arith.constant 0 : index
    %4 = vector.load %arg13[%c0_7, %c0_8] : memref<128x5xf32, #tpu.memory_space<vmem>>, vector<128x5xf32>
    %c0_9 = arith.constant 0 : index
    %c0_10 = arith.constant 0 : index
    %5 = vector.load %arg6[%c0_9, %c0_10] : memref<1x16xf32, #tpu.memory_space<vmem>>, vector<1x16xf32>
    %6 = vector.shape_cast %5 : vector<1x16xf32> to vector<1x16xf32>
    %7 = vector.broadcast %6 : vector<1x16xf32> to vector<8x16xf32>
    %c0_11 = arith.constant 0 : index
    %c0_12 = arith.constant 0 : index
    %8 = vector.load %arg12[%c0_11, %c0_12] : memref<1x512xf32, #tpu.memory_space<vmem>>, vector<1x512xf32>
    %9 = vector.shape_cast %8 : vector<1x512xf32> to vector<1x512xf32>
    %10 = vector.broadcast %9 : vector<1x512xf32> to vector<8x512xf32>
    %c0_13 = arith.constant 0 : index
    %c0_14 = arith.constant 0 : index
    %11 = vector.load %arg14[%c0_13, %c0_14] : memref<1x5xf32, #tpu.memory_space<vmem>>, vector<1x5xf32>
    %12 = vector.shape_cast %11 : vector<1x5xf32> to vector<1x5xf32>
    %13 = vector.broadcast %12 : vector<1x5xf32> to vector<8x5xf32>
    %c0_15 = arith.constant 0 : index
    %c0_16 = arith.constant 0 : index
    %c0_17 = arith.constant 0 : index
    %14 = vector.load %arg1[%c0_15, %c0_16, %c0_17] : memref<1x64x2xf32, #tpu.memory_space<vmem>>, vector<1x64x2xf32>
    %15 = vector.shape_cast %14 : vector<1x64x2xf32> to vector<64x2xf32>
    %c0_18 = arith.constant 0 : index
    %c0_19 = arith.constant 0 : index
    %16 = vector.load %arg7[%c0_18, %c0_19] : memref<2x512xf32, #tpu.memory_space<vmem>>, vector<2x512xf32>
    %cst = arith.constant dense<0.000000e+00> : vector<64x512xf32>
    %17 = tpu.matmul %15, %16, %cst {dimension_numbers = #tpu.dot_dimension_numbers<[1], [0], [0], [1], [0, 0, 1, 1], [], []>} : vector<64x2xf32>, vector<2x512xf32>, vector<64x512xf32> -> vector<64x512xf32>
    %c0_20 = arith.constant 0 : index
    %c0_21 = arith.constant 0 : index
    %18 = vector.load %arg9[%c0_20, %c0_21] : memref<1x512xf32, #tpu.memory_space<vmem>>, vector<1x512xf32>
    %19 = vector.broadcast %18 : vector<1x512xf32> to vector<64x512xf32>
    %20 = arith.addf %17, %19 : vector<64x512xf32>
    %c0_22 = arith.constant 0 : index
    %c0_23 = arith.constant 0 : index
    %21 = vector.load %arg16[%c0_22, %c0_23] : memref<64x512xf32, #tpu.memory_space<vmem>>, vector<64x512xf32>
    tpu.vector_store %arg16[%c0_22, %c0_23], %20 {strides = array<i32>} : memref<64x512xf32, #tpu.memory_space<vmem>>, vector<64x512xf32>,
    %cst_24 = arith.constant 0.000000e+00 : f32
    %22 = vector.broadcast %cst_24 : f32 to vector<8x128xf32>
    %cst_25 = arith.constant 0.000000e+00 : f32
    %23 = vector.broadcast %cst_25 : f32 to vector<8x128xf32>
    %c0_26 = arith.constant 0 : index
    %c0_27 = arith.constant 0 : index
    %24 = vector.load %arg16[%c0_26, %c0_27] : memref<64x512xf32, #tpu.memory_space<vmem>>, vector<8x512xf32>
    %cst_28 = arith.constant dense<0.000000e+00> : vector<8x512xf32>
    %25 = tpu.matmul %22, %0, %cst_28 {dimension_numbers = #tpu.dot_dimension_numbers<[1], [0], [0], [1], [0, 0, 1, 1], [], []>} : vector<8x128xf32>, vector<128x512xf32>, vector<8x512xf32> -> vector<8x512xf32>
    %26 = arith.addf %24, %25 : vector<8x512xf32>
    %27 = vector.extract_strided_slice %26 {offsets = [0, 0], sizes = [8, 384], strides = [1, 1]} : vector<8x512xf32> to vector<8x384xf32>
    %28 = arith.negf %27 : vector<8x384xf32>
    %29 = math.exp %28 : vector<8x384xf32>
    %cst_29 = arith.constant 1.000000e+00 : f32
    %30 = vector.broadcast %cst_29 : f32 to vector<8x384xf32>
    %31 = arith.addf %30, %29 : vector<8x384xf32>
    %32 = arith.divf %30, %31 : vector<8x384xf32>
    %33 = vector.extract_strided_slice %26 {offsets = [0, 384], sizes = [8, 128], strides = [1, 1]} : vector<8x512xf32> to vector<8x128xf32>
    %34 = math.tanh %33 : vector<8x128xf32>
    %35 = vector.extract_strided_slice %32 {offsets = [0, 0], sizes = [8, 128], strides = [1, 1]} : vector<8x384xf32> to vector<8x128xf32>
    %36 = vector.extract_strided_slice %32 {offsets = [0, 128], sizes = [8, 128], strides = [1, 1]} : vector<8x384xf32> to vector<8x128xf32>
    %37 = vector.extract_strided_slice %32 {offsets = [0, 256], sizes = [8, 128], strides = [1, 1]} : vector<8x384xf32> to vector<8x128xf32>
    %38 = arith.mulf %36, %23 : vector<8x128xf32>
    %39 = arith.mulf %35, %34 : vector<8x128xf32>
    %40 = arith.addf %38, %39 : vector<8x128xf32>
    %41 = math.tanh %40 : vector<8x128xf32>
    %42 = arith.mulf %37, %41 : vector<8x128xf32>
    %c8 = arith.constant 8 : index
    %c0_30 = arith.constant 0 : index
    %43 = vector.load %arg16[%c8, %c0_30] : memref<64x512xf32, #tpu.memory_space<vmem>>, vector<8x512xf32>
    %cst_31 = arith.constant dense<0.000000e+00> : vector<8x512xf32>
    %44 = tpu.matmul %42, %0, %cst_31 {dimension_numbers = #tpu.dot_dimension_numbers<[1], [0], [0], [1], [0, 0, 1, 1], [], []>} : vector<8x128xf32>, vector<128x512xf32>, vector<8x512xf32> -> vector<8x512xf32>
    %45 = arith.addf %43, %44 : vector<8x512xf32>
    %46 = vector.extract_strided_slice %45 {offsets = [0, 0], sizes = [8, 384], strides = [1, 1]} : vector<8x512xf32> to vector<8x384xf32>
    %47 = arith.negf %46 : vector<8x384xf32>
    %48 = math.exp %47 : vector<8x384xf32>
    %cst_32 = arith.constant 1.000000e+00 : f32
    %49 = vector.broadcast %cst_32 : f32 to vector<8x384xf32>
    %50 = arith.addf %49, %48 : vector<8x384xf32>
    %51 = arith.divf %49, %50 : vector<8x384xf32>
    %52 = vector.extract_strided_slice %45 {offsets = [0, 384], sizes = [8, 128], strides = [1, 1]} : vector<8x512xf32> to vector<8x128xf32>
    %53 = math.tanh %52 : vector<8x128xf32>
    %54 = vector.extract_strided_slice %51 {offsets = [0, 0], sizes = [8, 128], strides = [1, 1]} : vector<8x384xf32> to vector<8x128xf32>
    %55 = vector.extract_strided_slice %51 {offsets = [0, 128], sizes = [8, 128], strides = [1, 1]} : vector<8x384xf32> to vector<8x128xf32>
    %56 = vector.extract_strided_slice %51 {offsets = [0, 256], sizes = [8, 128], strides = [1, 1]} : vector<8x384xf32> to vector<8x128xf32>
    %57 = arith.mulf %55, %40 : vector<8x128xf32>
    %58 = arith.mulf %54, %53 : vector<8x128xf32>
    %59 = arith.addf %57, %58 : vector<8x128xf32>
    %60 = math.tanh %59 : vector<8x128xf32>
    %61 = arith.mulf %56, %60 : vector<8x128xf32>
    %c16 = arith.constant 16 : index
    %c0_33 = arith.constant 0 : index
    %62 = vector.load %arg16[%c16, %c0_33] : memref<64x512xf32, #tpu.memory_space<vmem>>, vector<8x512xf32>
    %cst_34 = arith.constant dense<0.000000e+00> : vector<8x512xf32>
    %63 = tpu.matmul %61, %0, %cst_34 {dimension_numbers = #tpu.dot_dimension_numbers<[1], [0], [0], [1], [0, 0, 1, 1], [], []>} : vector<8x128xf32>, vector<128x512xf32>, vector<8x512xf32> -> vector<8x512xf32>
    %64 = arith.addf %62, %63 : vector<8x512xf32>
    %65 = vector.extract_strided_slice %64 {offsets = [0, 0], sizes = [8, 384], strides = [1, 1]} : vector<8x512xf32> to vector<8x384xf32>
    %66 = arith.negf %65 : vector<8x384xf32>
    %67 = math.exp %66 : vector<8x384xf32>
    %cst_35 = arith.constant 1.000000e+00 : f32
    %68 = vector.broadcast %cst_35 : f32 to vector<8x384xf32>
    %69 = arith.addf %68, %67 : vector<8x384xf32>
    %70 = arith.divf %68, %69 : vector<8x384xf32>
    %71 = vector.extract_strided_slice %64 {offsets = [0, 384], sizes = [8, 128], strides = [1, 1]} : vector<8x512xf32> to vector<8x128xf32>
    %72 = math.tanh %71 : vector<8x128xf32>
    %73 = vector.extract_strided_slice %70 {offsets = [0, 0], sizes = [8, 128], strides = [1, 1]} : vector<8x384xf32> to vector<8x128xf32>
    %74 = vector.extract_strided_slice %70 {offsets = [0, 128], sizes = [8, 128], strides = [1, 1]} : vector<8x384xf32> to vector<8x128xf32>
    %75 = vector.extract_strided_slice %70 {offsets = [0, 256], sizes = [8, 128], strides = [1, 1]} : vector<8x384xf32> to vector<8x128xf32>
    %76 = arith.mulf %74, %59 : vector<8x128xf32>
    %77 = arith.mulf %73, %72 : vector<8x128xf32>
    %78 = arith.addf %76, %77 : vector<8x128xf32>
    %79 = math.tanh %78 : vector<8x128xf32>
    %80 = arith.mulf %75, %79 : vector<8x128xf32>
    %c24 = arith.constant 24 : index
    %c0_36 = arith.constant 0 : index
    %81 = vector.load %arg16[%c24, %c0_36] : memref<64x512xf32, #tpu.memory_space<vmem>>, vector<8x512xf32>
    %cst_37 = arith.constant dense<0.000000e+00> : vector<8x512xf32>
    %82 = tpu.matmul %80, %0, %cst_37 {dimension_numbers = #tpu.dot_dimension_numbers<[1], [0], [0], [1], [0, 0, 1, 1], [], []>} : vector<8x128xf32>, vector<128x512xf32>, vector<8x512xf32> -> vector<8x512xf32>
    %83 = arith.addf %81, %82 : vector<8x512xf32>
    %84 = vector.extract_strided_slice %83 {offsets = [0, 0], sizes = [8, 384], strides = [1, 1]} : vector<8x512xf32> to vector<8x384xf32>
    %85 = arith.negf %84 : vector<8x384xf32>
    %86 = math.exp %85 : vector<8x384xf32>
    %cst_38 = arith.constant 1.000000e+00 : f32
    %87 = vector.broadcast %cst_38 : f32 to vector<8x384xf32>
    %88 = arith.addf %87, %86 : vector<8x384xf32>
    %89 = arith.divf %87, %88 : vector<8x384xf32>
    %90 = vector.extract_strided_slice %83 {offsets = [0, 384], sizes = [8, 128], strides = [1, 1]} : vector<8x512xf32> to vector<8x128xf32>
    %91 = math.tanh %90 : vector<8x128xf32>
    %92 = vector.extract_strided_slice %89 {offsets = [0, 0], sizes = [8, 128], strides = [1, 1]} : vector<8x384xf32> to vector<8x128xf32>
    %93 = vector.extract_strided_slice %89 {offsets = [0, 128], sizes = [8, 128], strides = [1, 1]} : vector<8x384xf32> to vector<8x128xf32>
    %94 = vector.extract_strided_slice %89 {offsets = [0, 256], sizes = [8, 128], strides = [1, 1]} : vector<8x384xf32> to vector<8x128xf32>
    %95 = arith.mulf %93, %78 : vector<8x128xf32>
    %96 = arith.mulf %92, %91 : vector<8x128xf32>
    %97 = arith.addf %95, %96 : vector<8x128xf32>
    %98 = math.tanh %97 : vector<8x128xf32>
    %99 = arith.mulf %94, %98 : vector<8x128xf32>
    %c32 = arith.constant 32 : index
    %c0_39 = arith.constant 0 : index
    %100 = vector.load %arg16[%c32, %c0_39] : memref<64x512xf32, #tpu.memory_space<vmem>>, vector<8x512xf32>
    %cst_40 = arith.constant dense<0.000000e+00> : vector<8x512xf32>
    %101 = tpu.matmul %99, %0, %cst_40 {dimension_numbers = #tpu.dot_dimension_numbers<[1], [0], [0], [1], [0, 0, 1, 1], [], []>} : vector<8x128xf32>, vector<128x512xf32>, vector<8x512xf32> -> vector<8x512xf32>
    %102 = arith.addf %100, %101 : vector<8x512xf32>
    %103 = vector.extract_strided_slice %102 {offsets = [0, 0], sizes = [8, 384], strides = [1, 1]} : vector<8x512xf32> to vector<8x384xf32>
    %104 = arith.negf %103 : vector<8x384xf32>
    %105 = math.exp %104 : vector<8x384xf32>
    %cst_41 = arith.constant 1.000000e+00 : f32
    %106 = vector.broadcast %cst_41 : f32 to vector<8x384xf32>
    %107 = arith.addf %106, %105 : vector<8x384xf32>
    %108 = arith.divf %106, %107 : vector<8x384xf32>
    %109 = vector.extract_strided_slice %102 {offsets = [0, 384], sizes = [8, 128], strides = [1, 1]} : vector<8x512xf32> to vector<8x128xf32>
    %110 = math.tanh %109 : vector<8x128xf32>
    %111 = vector.extract_strided_slice %108 {offsets = [0, 0], sizes = [8, 128], strides = [1, 1]} : vector<8x384xf32> to vector<8x128xf32>
    %112 = vector.extract_strided_slice %108 {offsets = [0, 128], sizes = [8, 128], strides = [1, 1]} : vector<8x384xf32> to vector<8x128xf32>
    %113 = vector.extract_strided_slice %108 {offsets = [0, 256], sizes = [8, 128], strides = [1, 1]} : vector<8x384xf32> to vector<8x128xf32>
    %114 = arith.mulf %112, %97 : vector<8x128xf32>
    %115 = arith.mulf %111, %110 : vector<8x128xf32>
    %116 = arith.addf %114, %115 : vector<8x128xf32>
    %117 = math.tanh %116 : vector<8x128xf32>
    %118 = arith.mulf %113, %117 : vector<8x128xf32>
    %c40 = arith.constant 40 : index
    %c0_42 = arith.constant 0 : index
    %119 = vector.load %arg16[%c40, %c0_42] : memref<64x512xf32, #tpu.memory_space<vmem>>, vector<8x512xf32>
    %cst_43 = arith.constant dense<0.000000e+00> : vector<8x512xf32>
    %120 = tpu.matmul %118, %0, %cst_43 {dimension_numbers = #tpu.dot_dimension_numbers<[1], [0], [0], [1], [0, 0, 1, 1], [], []>} : vector<8x128xf32>, vector<128x512xf32>, vector<8x512xf32> -> vector<8x512xf32>
    %121 = arith.addf %119, %120 : vector<8x512xf32>
    %122 = vector.extract_strided_slice %121 {offsets = [0, 0], sizes = [8, 384], strides = [1, 1]} : vector<8x512xf32> to vector<8x384xf32>
    %123 = arith.negf %122 : vector<8x384xf32>
    %124 = math.exp %123 : vector<8x384xf32>
    %cst_44 = arith.constant 1.000000e+00 : f32
    %125 = vector.broadcast %cst_44 : f32 to vector<8x384xf32>
    %126 = arith.addf %125, %124 : vector<8x384xf32>
    %127 = arith.divf %125, %126 : vector<8x384xf32>
    %128 = vector.extract_strided_slice %121 {offsets = [0, 384], sizes = [8, 128], strides = [1, 1]} : vector<8x512xf32> to vector<8x128xf32>
    %129 = math.tanh %128 : vector<8x128xf32>
    %130 = vector.extract_strided_slice %127 {offsets = [0, 0], sizes = [8, 128], strides = [1, 1]} : vector<8x384xf32> to vector<8x128xf32>
    %131 = vector.extract_strided_slice %127 {offsets = [0, 128], sizes = [8, 128], strides = [1, 1]} : vector<8x384xf32> to vector<8x128xf32>
    %132 = vector.extract_strided_slice %127 {offsets = [0, 256], sizes = [8, 128], strides = [1, 1]} : vector<8x384xf32> to vector<8x128xf32>
    %133 = arith.mulf %131, %116 : vector<8x128xf32>
    %134 = arith.mulf %130, %129 : vector<8x128xf32>
    %135 = arith.addf %133, %134 : vector<8x128xf32>
    %136 = math.tanh %135 : vector<8x128xf32>
    %137 = arith.mulf %132, %136 : vector<8x128xf32>
    %c48 = arith.constant 48 : index
    %c0_45 = arith.constant 0 : index
    %138 = vector.load %arg16[%c48, %c0_45] : memref<64x512xf32, #tpu.memory_space<vmem>>, vector<8x512xf32>
    %cst_46 = arith.constant dense<0.000000e+00> : vector<8x512xf32>
    %139 = tpu.matmul %137, %0, %cst_46 {dimension_numbers = #tpu.dot_dimension_numbers<[1], [0], [0], [1], [0, 0, 1, 1], [], []>} : vector<8x128xf32>, vector<128x512xf32>, vector<8x512xf32> -> vector<8x512xf32>
    %140 = arith.addf %138, %139 : vector<8x512xf32>
    %141 = vector.extract_strided_slice %140 {offsets = [0, 0], sizes = [8, 384], strides = [1, 1]} : vector<8x512xf32> to vector<8x384xf32>
    %142 = arith.negf %141 : vector<8x384xf32>
    %143 = math.exp %142 : vector<8x384xf32>
    %cst_47 = arith.constant 1.000000e+00 : f32
    %144 = vector.broadcast %cst_47 : f32 to vector<8x384xf32>
    %145 = arith.addf %144, %143 : vector<8x384xf32>
    %146 = arith.divf %144, %145 : vector<8x384xf32>
    %147 = vector.extract_strided_slice %140 {offsets = [0, 384], sizes = [8, 128], strides = [1, 1]} : vector<8x512xf32> to vector<8x128xf32>
    %148 = math.tanh %147 : vector<8x128xf32>
    %149 = vector.extract_strided_slice %146 {offsets = [0, 0], sizes = [8, 128], strides = [1, 1]} : vector<8x384xf32> to vector<8x128xf32>
    %150 = vector.extract_strided_slice %146 {offsets = [0, 128], sizes = [8, 128], strides = [1, 1]} : vector<8x384xf32> to vector<8x128xf32>
    %151 = vector.extract_strided_slice %146 {offsets = [0, 256], sizes = [8, 128], strides = [1, 1]} : vector<8x384xf32> to vector<8x128xf32>
    %152 = arith.mulf %150, %135 : vector<8x128xf32>
    %153 = arith.mulf %149, %148 : vector<8x128xf32>
    %154 = arith.addf %152, %153 : vector<8x128xf32>
    %155 = math.tanh %154 : vector<8x128xf32>
    %156 = arith.mulf %151, %155 : vector<8x128xf32>
    %c56 = arith.constant 56 : index
    %c0_48 = arith.constant 0 : index
    %157 = vector.load %arg16[%c56, %c0_48] : memref<64x512xf32, #tpu.memory_space<vmem>>, vector<8x512xf32>
    %cst_49 = arith.constant dense<0.000000e+00> : vector<8x512xf32>
    %158 = tpu.matmul %156, %0, %cst_49 {dimension_numbers = #tpu.dot_dimension_numbers<[1], [0], [0], [1], [0, 0, 1, 1], [], []>} : vector<8x128xf32>, vector<128x512xf32>, vector<8x512xf32> -> vector<8x512xf32>
    %159 = arith.addf %157, %158 : vector<8x512xf32>
    %160 = vector.extract_strided_slice %159 {offsets = [0, 0], sizes = [8, 384], strides = [1, 1]} : vector<8x512xf32> to vector<8x384xf32>
    %161 = arith.negf %160 : vector<8x384xf32>
    %162 = math.exp %161 : vector<8x384xf32>
    %cst_50 = arith.constant 1.000000e+00 : f32
    %163 = vector.broadcast %cst_50 : f32 to vector<8x384xf32>
    %164 = arith.addf %163, %162 : vector<8x384xf32>
    %165 = arith.divf %163, %164 : vector<8x384xf32>
    %166 = vector.extract_strided_slice %159 {offsets = [0, 384], sizes = [8, 128], strides = [1, 1]} : vector<8x512xf32> to vector<8x128xf32>
    %167 = math.tanh %166 : vector<8x128xf32>
    %168 = vector.extract_strided_slice %165 {offsets = [0, 0], sizes = [8, 128], strides = [1, 1]} : vector<8x384xf32> to vector<8x128xf32>
    %169 = vector.extract_strided_slice %165 {offsets = [0, 128], sizes = [8, 128], strides = [1, 1]} : vector<8x384xf32> to vector<8x128xf32>
    %170 = vector.extract_strided_slice %165 {offsets = [0, 256], sizes = [8, 128], strides = [1, 1]} : vector<8x384xf32> to vector<8x128xf32>
    %171 = arith.mulf %169, %154 : vector<8x128xf32>
    %172 = arith.mulf %168, %167 : vector<8x128xf32>
    %173 = arith.addf %171, %172 : vector<8x128xf32>
    %174 = math.tanh %173 : vector<8x128xf32>
    %175 = arith.mulf %170, %174 : vector<8x128xf32>
    %c0_51 = arith.constant 0 : index
    %c56_52 = arith.constant 56 : index
    %c0_53 = arith.constant 0 : index
    %176 = vector.load %arg1[%c0_51, %c56_52, %c0_53] : memref<1x64x2xf32, #tpu.memory_space<vmem>>, vector<1x8x2xf32>
    %177 = vector.shape_cast %176 : vector<1x8x2xf32> to vector<8x2xf32>
    %cst_54 = arith.constant dense<0.000000e+00> : vector<8x16xf32>
    %178 = tpu.matmul %177, %1, %cst_54 {dimension_numbers = #tpu.dot_dimension_numbers<[1], [0], [0], [1], [0, 0, 1, 1], [], []>} : vector<8x2xf32>, vector<2x16xf32>, vector<8x16xf32> -> vector<8x16xf32>
    %179 = arith.addf %178, %7 : vector<8x16xf32>
    %180 = arith.negf %179 : vector<8x16xf32>
    %181 = math.exp %180 : vector<8x16xf32>
    %cst_55 = arith.constant 1.000000e+00 : f32
    %182 = vector.broadcast %cst_55 : f32 to vector<8x16xf32>
    %183 = arith.addf %182, %181 : vector<8x16xf32>
    %184 = arith.divf %182, %183 : vector<8x16xf32>
    %185 = arith.mulf %179, %184 : vector<8x16xf32>
    %cst_56 = arith.constant dense<0.000000e+00> : vector<8x512xf32>
    %186 = tpu.matmul %185, %2, %cst_56 {dimension_numbers = #tpu.dot_dimension_numbers<[1], [0], [0], [1], [0, 0, 1, 1], [], []>} : vector<8x16xf32>, vector<16x512xf32>, vector<8x512xf32> -> vector<8x512xf32>
    %187 = arith.addf %186, %10 : vector<8x512xf32>
    %cst_57 = arith.constant dense<0.000000e+00> : vector<8x512xf32>
    %188 = tpu.matmul %175, %3, %cst_57 {dimension_numbers = #tpu.dot_dimension_numbers<[1], [0], [0], [1], [0, 0, 1, 1], [], []>} : vector<8x128xf32>, vector<128x512xf32>, vector<8x512xf32> -> vector<8x512xf32>
    %189 = arith.addf %187, %188 : vector<8x512xf32>
    %190 = vector.extract_strided_slice %189 {offsets = [0, 0], sizes = [8, 384], strides = [1, 1]} : vector<8x512xf32> to vector<8x384xf32>
    %191 = arith.negf %190 : vector<8x384xf32>
    %192 = math.exp %191 : vector<8x384xf32>
    %cst_58 = arith.constant 1.000000e+00 : f32
    %193 = vector.broadcast %cst_58 : f32 to vector<8x384xf32>
    %194 = arith.addf %193, %192 : vector<8x384xf32>
    %195 = arith.divf %193, %194 : vector<8x384xf32>
    %196 = vector.extract_strided_slice %189 {offsets = [0, 384], sizes = [8, 128], strides = [1, 1]} : vector<8x512xf32> to vector<8x128xf32>
    %197 = math.tanh %196 : vector<8x128xf32>
    %198 = vector.extract_strided_slice %195 {offsets = [0, 0], sizes = [8, 128], strides = [1, 1]} : vector<8x384xf32> to vector<8x128xf32>
    %199 = vector.extract_strided_slice %195 {offsets = [0, 128], sizes = [8, 128], strides = [1, 1]} : vector<8x384xf32> to vector<8x128xf32>
    %200 = vector.extract_strided_slice %195 {offsets = [0, 256], sizes = [8, 128], strides = [1, 1]} : vector<8x384xf32> to vector<8x128xf32>
    %201 = arith.mulf %199, %173 : vector<8x128xf32>
    %202 = arith.mulf %198, %197 : vector<8x128xf32>
    %203 = arith.addf %201, %202 : vector<8x128xf32>
    %204 = math.tanh %203 : vector<8x128xf32>
    %205 = arith.mulf %200, %204 : vector<8x128xf32>
    %206 = arith.negf %205 : vector<8x128xf32>
    %207 = math.exp %206 : vector<8x128xf32>
    %cst_59 = arith.constant 1.000000e+00 : f32
    %208 = vector.broadcast %cst_59 : f32 to vector<8x128xf32>
    %209 = arith.addf %208, %207 : vector<8x128xf32>
    %210 = arith.divf %208, %209 : vector<8x128xf32>
    %211 = arith.mulf %205, %210 : vector<8x128xf32>
    %cst_60 = arith.constant dense<0.000000e+00> : vector<8x5xf32>
    %212 = tpu.matmul %211, %4, %cst_60 {dimension_numbers = #tpu.dot_dimension_numbers<[1], [0], [0], [1], [0, 0, 1, 1], [], []>} : vector<8x128xf32>, vector<128x5xf32>, vector<8x5xf32> -> vector<8x5xf32>
    %213 = arith.addf %212, %13 : vector<8x5xf32>
    %214 = vector.extract_strided_slice %213 {offsets = [0, 0], sizes = [8, 2], strides = [1, 1]} : vector<8x5xf32> to vector<8x2xf32>
    %215 = arith.addf %214, %177 : vector<8x2xf32>
    %cst_61 = arith.constant dense<0.000000e+00> : vector<8x16xf32>
    %216 = tpu.matmul %215, %1, %cst_61 {dimension_numbers = #tpu.dot_dimension_numbers<[1], [0], [0], [1], [0, 0, 1, 1], [], []>} : vector<8x2xf32>, vector<2x16xf32>, vector<8x16xf32> -> vector<8x16xf32>
    %217 = arith.addf %216, %7 : vector<8x16xf32>
    %218 = arith.negf %217 : vector<8x16xf32>
    %219 = math.exp %218 : vector<8x16xf32>
    %cst_62 = arith.constant 1.000000e+00 : f32
    %220 = vector.broadcast %cst_62 : f32 to vector<8x16xf32>
    %221 = arith.addf %220, %219 : vector<8x16xf32>
    %222 = arith.divf %220, %221 : vector<8x16xf32>
    %223 = arith.mulf %217, %222 : vector<8x16xf32>
    %cst_63 = arith.constant dense<0.000000e+00> : vector<8x512xf32>
    %224 = tpu.matmul %223, %2, %cst_63 {dimension_numbers = #tpu.dot_dimension_numbers<[1], [0], [0], [1], [0, 0, 1, 1], [], []>} : vector<8x16xf32>, vector<16x512xf32>, vector<8x512xf32> -> vector<8x512xf32>
    %225 = arith.addf %224, %10 : vector<8x512xf32>
    %cst_64 = arith.constant dense<0.000000e+00> : vector<8x512xf32>
    %226 = tpu.matmul %205, %3, %cst_64 {dimension_numbers = #tpu.dot_dimension_numbers<[1], [0], [0], [1], [0, 0, 1, 1], [], []>} : vector<8x128xf32>, vector<128x512xf32>, vector<8x512xf32> -> vector<8x512xf32>
    %227 = arith.addf %225, %226 : vector<8x512xf32>
    %228 = vector.extract_strided_slice %227 {offsets = [0, 0], sizes = [8, 384], strides = [1, 1]} : vector<8x512xf32> to vector<8x384xf32>
    %229 = arith.negf %228 : vector<8x384xf32>
    %230 = math.exp %229 : vector<8x384xf32>
    %cst_65 = arith.constant 1.000000e+00 : f32
    %231 = vector.broadcast %cst_65 : f32 to vector<8x384xf32>
    %232 = arith.addf %231, %230 : vector<8x384xf32>
    %233 = arith.divf %231, %232 : vector<8x384xf32>
    %234 = vector.extract_strided_slice %227 {offsets = [0, 384], sizes = [8, 128], strides = [1, 1]} : vector<8x512xf32> to vector<8x128xf32>
    %235 = math.tanh %234 : vector<8x128xf32>
    %236 = vector.extract_strided_slice %233 {offsets = [0, 0], sizes = [8, 128], strides = [1, 1]} : vector<8x384xf32> to vector<8x128xf32>
    %237 = vector.extract_strided_slice %233 {offsets = [0, 128], sizes = [8, 128], strides = [1, 1]} : vector<8x384xf32> to vector<8x128xf32>
    %238 = vector.extract_strided_slice %233 {offsets = [0, 256], sizes = [8, 128], strides = [1, 1]} : vector<8x384xf32> to vector<8x128xf32>
    %239 = arith.mulf %237, %203 : vector<8x128xf32>
    %240 = arith.mulf %236, %235 : vector<8x128xf32>
    %241 = arith.addf %239, %240 : vector<8x128xf32>
    %242 = math.tanh %241 : vector<8x128xf32>
    %243 = arith.mulf %238, %242 : vector<8x128xf32>
    %244 = arith.negf %243 : vector<8x128xf32>
    %245 = math.exp %244 : vector<8x128xf32>
    %cst_66 = arith.constant 1.000000e+00 : f32
    %246 = vector.broadcast %cst_66 : f32 to vector<8x128xf32>
    %247 = arith.addf %246, %245 : vector<8x128xf32>
    %248 = arith.divf %246, %247 : vector<8x128xf32>
    %249 = arith.mulf %243, %248 : vector<8x128xf32>
    %cst_67 = arith.constant dense<0.000000e+00> : vector<8x5xf32>
    %250 = tpu.matmul %249, %4, %cst_67 {dimension_numbers = #tpu.dot_dimension_numbers<[1], [0], [0], [1], [0, 0, 1, 1], [], []>} : vector<8x128xf32>, vector<128x5xf32>, vector<8x5xf32> -> vector<8x5xf32>
    %251 = arith.addf %250, %13 : vector<8x5xf32>
    %252 = vector.extract_strided_slice %251 {offsets = [0, 0], sizes = [8, 2], strides = [1, 1]} : vector<8x5xf32> to vector<8x2xf32>
    %253 = arith.addf %252, %215 : vector<8x2xf32>
    %cst_68 = arith.constant dense<0.000000e+00> : vector<8x16xf32>
    %254 = tpu.matmul %253, %1, %cst_68 {dimension_numbers = #tpu.dot_dimension_numbers<[1], [0], [0], [1], [0, 0, 1, 1], [], []>} : vector<8x2xf32>, vector<2x16xf32>, vector<8x16xf32> -> vector<8x16xf32>
    %255 = arith.addf %254, %7 : vector<8x16xf32>
    %256 = arith.negf %255 : vector<8x16xf32>
    %257 = math.exp %256 : vector<8x16xf32>
    %cst_69 = arith.constant 1.000000e+00 : f32
    %258 = vector.broadcast %cst_69 : f32 to vector<8x16xf32>
    %259 = arith.addf %258, %257 : vector<8x16xf32>
    %260 = arith.divf %258, %259 : vector<8x16xf32>
    %261 = arith.mulf %255, %260 : vector<8x16xf32>
    %cst_70 = arith.constant dense<0.000000e+00> : vector<8x512xf32>
    %262 = tpu.matmul %261, %2, %cst_70 {dimension_numbers = #tpu.dot_dimension_numbers<[1], [0], [0], [1], [0, 0, 1, 1], [], []>} : vector<8x16xf32>, vector<16x512xf32>, vector<8x512xf32> -> vector<8x512xf32>
    %263 = arith.addf %262, %10 : vector<8x512xf32>
    %cst_71 = arith.constant dense<0.000000e+00> : vector<8x512xf32>
    %264 = tpu.matmul %243, %3, %cst_71 {dimension_numbers = #tpu.dot_dimension_numbers<[1], [0], [0], [1], [0, 0, 1, 1], [], []>} : vector<8x128xf32>, vector<128x512xf32>, vector<8x512xf32> -> vector<8x512xf32>
    %265 = arith.addf %263, %264 : vector<8x512xf32>
    %266 = vector.extract_strided_slice %265 {offsets = [0, 0], sizes = [8, 384], strides = [1, 1]} : vector<8x512xf32> to vector<8x384xf32>
    %267 = arith.negf %266 : vector<8x384xf32>
    %268 = math.exp %267 : vector<8x384xf32>
    %cst_72 = arith.constant 1.000000e+00 : f32
    %269 = vector.broadcast %cst_72 : f32 to vector<8x384xf32>
    %270 = arith.addf %269, %268 : vector<8x384xf32>
    %271 = arith.divf %269, %270 : vector<8x384xf32>
    %272 = vector.extract_strided_slice %265 {offsets = [0, 384], sizes = [8, 128], strides = [1, 1]} : vector<8x512xf32> to vector<8x128xf32>
    %273 = math.tanh %272 : vector<8x128xf32>
    %274 = vector.extract_strided_slice %271 {offsets = [0, 0], sizes = [8, 128], strides = [1, 1]} : vector<8x384xf32> to vector<8x128xf32>
    %275 = vector.extract_strided_slice %271 {offsets = [0, 128], sizes = [8, 128], strides = [1, 1]} : vector<8x384xf32> to vector<8x128xf32>
    %276 = vector.extract_strided_slice %271 {offsets = [0, 256], sizes = [8, 128], strides = [1, 1]} : vector<8x384xf32> to vector<8x128xf32>
    %277 = arith.mulf %275, %241 : vector<8x128xf32>
    %278 = arith.mulf %274, %273 : vector<8x128xf32>
    %279 = arith.addf %277, %278 : vector<8x128xf32>
    %280 = math.tanh %279 : vector<8x128xf32>
    %281 = arith.mulf %276, %280 : vector<8x128xf32>
    %282 = arith.negf %281 : vector<8x128xf32>
    %283 = math.exp %282 : vector<8x128xf32>
    %cst_73 = arith.constant 1.000000e+00 : f32
    %284 = vector.broadcast %cst_73 : f32 to vector<8x128xf32>
    %285 = arith.addf %284, %283 : vector<8x128xf32>
    %286 = arith.divf %284, %285 : vector<8x128xf32>
    %287 = arith.mulf %281, %286 : vector<8x128xf32>
    %cst_74 = arith.constant dense<0.000000e+00> : vector<8x5xf32>
    %288 = tpu.matmul %287, %4, %cst_74 {dimension_numbers = #tpu.dot_dimension_numbers<[1], [0], [0], [1], [0, 0, 1, 1], [], []>} : vector<8x128xf32>, vector<128x5xf32>, vector<8x5xf32> -> vector<8x5xf32>
    %289 = arith.addf %288, %13 : vector<8x5xf32>
    %290 = vector.extract_strided_slice %289 {offsets = [0, 0], sizes = [8, 2], strides = [1, 1]} : vector<8x5xf32> to vector<8x2xf32>
    %291 = arith.addf %290, %253 : vector<8x2xf32>
    %cst_75 = arith.constant dense<0.000000e+00> : vector<8x16xf32>
    %292 = tpu.matmul %291, %1, %cst_75 {dimension_numbers = #tpu.dot_dimension_numbers<[1], [0], [0], [1], [0, 0, 1, 1], [], []>} : vector<8x2xf32>, vector<2x16xf32>, vector<8x16xf32> -> vector<8x16xf32>
    %293 = arith.addf %292, %7 : vector<8x16xf32>
    %294 = arith.negf %293 : vector<8x16xf32>
    %295 = math.exp %294 : vector<8x16xf32>
    %cst_76 = arith.constant 1.000000e+00 : f32
    %296 = vector.broadcast %cst_76 : f32 to vector<8x16xf32>
    %297 = arith.addf %296, %295 : vector<8x16xf32>
    %298 = arith.divf %296, %297 : vector<8x16xf32>
    %299 = arith.mulf %293, %298 : vector<8x16xf32>
    %cst_77 = arith.constant dense<0.000000e+00> : vector<8x512xf32>
    %300 = tpu.matmul %299, %2, %cst_77 {dimension_numbers = #tpu.dot_dimension_numbers<[1], [0], [0], [1], [0, 0, 1, 1], [], []>} : vector<8x16xf32>, vector<16x512xf32>, vector<8x512xf32> -> vector<8x512xf32>
    %301 = arith.addf %300, %10 : vector<8x512xf32>
    %cst_78 = arith.constant dense<0.000000e+00> : vector<8x512xf32>
    %302 = tpu.matmul %281, %3, %cst_78 {dimension_numbers = #tpu.dot_dimension_numbers<[1], [0], [0], [1], [0, 0, 1, 1], [], []>} : vector<8x128xf32>, vector<128x512xf32>, vector<8x512xf32> -> vector<8x512xf32>
    %303 = arith.addf %301, %302 : vector<8x512xf32>
    %304 = vector.extract_strided_slice %303 {offsets = [0, 0], sizes = [8, 384], strides = [1, 1]} : vector<8x512xf32> to vector<8x384xf32>
    %305 = arith.negf %304 : vector<8x384xf32>
    %306 = math.exp %305 : vector<8x384xf32>
    %cst_79 = arith.constant 1.000000e+00 : f32
    %307 = vector.broadcast %cst_79 : f32 to vector<8x384xf32>
    %308 = arith.addf %307, %306 : vector<8x384xf32>
    %309 = arith.divf %307, %308 : vector<8x384xf32>
    %310 = vector.extract_strided_slice %303 {offsets = [0, 384], sizes = [8, 128], strides = [1, 1]} : vector<8x512xf32> to vector<8x128xf32>
    %311 = math.tanh %310 : vector<8x128xf32>
    %312 = vector.extract_strided_slice %309 {offsets = [0, 0], sizes = [8, 128], strides = [1, 1]} : vector<8x384xf32> to vector<8x128xf32>
    %313 = vector.extract_strided_slice %309 {offsets = [0, 128], sizes = [8, 128], strides = [1, 1]} : vector<8x384xf32> to vector<8x128xf32>
    %314 = vector.extract_strided_slice %309 {offsets = [0, 256], sizes = [8, 128], strides = [1, 1]} : vector<8x384xf32> to vector<8x128xf32>
    %315 = arith.mulf %313, %279 : vector<8x128xf32>
    %316 = arith.mulf %312, %311 : vector<8x128xf32>
    %317 = arith.addf %315, %316 : vector<8x128xf32>
    %318 = math.tanh %317 : vector<8x128xf32>
    %319 = arith.mulf %314, %318 : vector<8x128xf32>
    %320 = arith.negf %319 : vector<8x128xf32>
    %321 = math.exp %320 : vector<8x128xf32>
    %cst_80 = arith.constant 1.000000e+00 : f32
    %322 = vector.broadcast %cst_80 : f32 to vector<8x128xf32>
    %323 = arith.addf %322, %321 : vector<8x128xf32>
    %324 = arith.divf %322, %323 : vector<8x128xf32>
    %325 = arith.mulf %319, %324 : vector<8x128xf32>
    %cst_81 = arith.constant dense<0.000000e+00> : vector<8x5xf32>
    %326 = tpu.matmul %325, %4, %cst_81 {dimension_numbers = #tpu.dot_dimension_numbers<[1], [0], [0], [1], [0, 0, 1, 1], [], []>} : vector<8x128xf32>, vector<128x5xf32>, vector<8x5xf32> -> vector<8x5xf32>
    %327 = arith.addf %326, %13 : vector<8x5xf32>
    %328 = vector.extract_strided_slice %327 {offsets = [0, 0], sizes = [8, 2], strides = [1, 1]} : vector<8x5xf32> to vector<8x2xf32>
    %329 = arith.addf %328, %291 : vector<8x2xf32>
    %c0_82 = arith.constant 0 : index
    %c0_83 = arith.constant 0 : index
    %330 = vector.load %arg4[%c0_82, %c0_83] : memref<4x4xf32, #tpu.memory_space<vmem>>, vector<4x4xf32>
    %331 = vector.extract_strided_slice %213 {offsets = [0, 2], sizes = [8, 1], strides = [1, 1]} : vector<8x5xf32> to vector<8x1xf32>
    %332 = vector.extract_strided_slice %251 {offsets = [0, 2], sizes = [8, 1], strides = [1, 1]} : vector<8x5xf32> to vector<8x1xf32>
    %333 = vector.extract_strided_slice %289 {offsets = [0, 2], sizes = [8, 1], strides = [1, 1]} : vector<8x5xf32> to vector<8x1xf32>
    %334 = vector.extract_strided_slice %327 {offsets = [0, 2], sizes = [8, 1], strides = [1, 1]} : vector<8x5xf32> to vector<8x1xf32>
    %335 = tpu.concatenate %331, %332, %333, %334 in 1 : vector<8x1xf32>, vector<8x1xf32>, vector<8x1xf32>, vector<8x1xf32> -> vector<8x4xf32>
    %336 = vector.extract_strided_slice %213 {offsets = [0, 3], sizes = [8, 1], strides = [1, 1]} : vector<8x5xf32> to vector<8x1xf32>
    %337 = vector.extract_strided_slice %251 {offsets = [0, 3], sizes = [8, 1], strides = [1, 1]} : vector<8x5xf32> to vector<8x1xf32>
    %338 = vector.extract_strided_slice %289 {offsets = [0, 3], sizes = [8, 1], strides = [1, 1]} : vector<8x5xf32> to vector<8x1xf32>
    %339 = vector.extract_strided_slice %327 {offsets = [0, 3], sizes = [8, 1], strides = [1, 1]} : vector<8x5xf32> to vector<8x1xf32>
    %340 = tpu.concatenate %336, %337, %338, %339 in 1 : vector<8x1xf32>, vector<8x1xf32>, vector<8x1xf32>, vector<8x1xf32> -> vector<8x4xf32>
    %341 = vector.extract_strided_slice %213 {offsets = [0, 4], sizes = [8, 1], strides = [1, 1]} : vector<8x5xf32> to vector<8x1xf32>
    %342 = vector.extract_strided_slice %251 {offsets = [0, 4], sizes = [8, 1], strides = [1, 1]} : vector<8x5xf32> to vector<8x1xf32>
    %343 = vector.extract_strided_slice %289 {offsets = [0, 4], sizes = [8, 1], strides = [1, 1]} : vector<8x5xf32> to vector<8x1xf32>
    %344 = vector.extract_strided_slice %327 {offsets = [0, 4], sizes = [8, 1], strides = [1, 1]} : vector<8x5xf32> to vector<8x1xf32>
    %345 = tpu.concatenate %341, %342, %343, %344 in 1 : vector<8x1xf32>, vector<8x1xf32>, vector<8x1xf32>, vector<8x1xf32> -> vector<8x4xf32>
    %346 = vector.extract_strided_slice %215 {offsets = [0, 0], sizes = [8, 1], strides = [1, 1]} : vector<8x2xf32> to vector<8x1xf32>
    %347 = vector.extract_strided_slice %253 {offsets = [0, 0], sizes = [8, 1], strides = [1, 1]} : vector<8x2xf32> to vector<8x1xf32>
    %348 = vector.extract_strided_slice %291 {offsets = [0, 0], sizes = [8, 1], strides = [1, 1]} : vector<8x2xf32> to vector<8x1xf32>
    %349 = vector.extract_strided_slice %329 {offsets = [0, 0], sizes = [8, 1], strides = [1, 1]} : vector<8x2xf32> to vector<8x1xf32>
    %350 = tpu.concatenate %346, %347, %348, %349 in 1 : vector<8x1xf32>, vector<8x1xf32>, vector<8x1xf32>, vector<8x1xf32> -> vector<8x4xf32>
    %351 = vector.extract_strided_slice %215 {offsets = [0, 1], sizes = [8, 1], strides = [1, 1]} : vector<8x2xf32> to vector<8x1xf32>
    %352 = vector.extract_strided_slice %253 {offsets = [0, 1], sizes = [8, 1], strides = [1, 1]} : vector<8x2xf32> to vector<8x1xf32>
    %353 = vector.extract_strided_slice %291 {offsets = [0, 1], sizes = [8, 1], strides = [1, 1]} : vector<8x2xf32> to vector<8x1xf32>
    %354 = vector.extract_strided_slice %329 {offsets = [0, 1], sizes = [8, 1], strides = [1, 1]} : vector<8x2xf32> to vector<8x1xf32>
    %355 = tpu.concatenate %351, %352, %353, %354 in 1 : vector<8x1xf32>, vector<8x1xf32>, vector<8x1xf32>, vector<8x1xf32> -> vector<8x4xf32>
    %356 = tpu.concatenate %335, %340 in 1 : vector<8x4xf32>, vector<8x4xf32> -> vector<8x8xf32>
    %357 = math.exp %356 : vector<8x8xf32>
    %358 = vector.extract_strided_slice %357 {offsets = [0, 0], sizes = [8, 4], strides = [1, 1]} : vector<8x8xf32> to vector<8x4xf32>
    %cst_84 = arith.constant dense<0.000000e+00> : vector<8x4xf32>
    %359 = tpu.matmul %358, %330, %cst_84 {dimension_numbers = #tpu.dot_dimension_numbers<[1], [0], [0], [1], [0, 0, 1, 1], [], []>} : vector<8x4xf32>, vector<4x4xf32>, vector<8x4xf32> -> vector<8x4xf32>
    %cst_85 = arith.constant 1.600000e-01 : f32
    %360 = vector.broadcast %cst_85 : f32 to vector<8x4xf32>
    %361 = arith.mulf %360, %359 : vector<8x4xf32>
    %362 = vector.extract_strided_slice %357 {offsets = [0, 4], sizes = [8, 4], strides = [1, 1]} : vector<8x8xf32> to vector<8x4xf32>
    %cst_86 = arith.constant dense<0.000000e+00> : vector<8x4xf32>
    %363 = tpu.matmul %362, %330, %cst_86 {dimension_numbers = #tpu.dot_dimension_numbers<[1], [0], [0], [1], [0, 0, 1, 1], [], []>} : vector<8x4xf32>, vector<4x4xf32>, vector<8x4xf32> -> vector<8x4xf32>
    %cst_87 = arith.constant 1.600000e-01 : f32
    %364 = vector.broadcast %cst_87 : f32 to vector<8x4xf32>
    %365 = arith.mulf %364, %363 : vector<8x4xf32>
    %366 = math.tanh %345 : vector<8x4xf32>
    %c0_88 = arith.constant 0 : index
    %c0_89 = arith.constant 0 : index
    %c0_90 = arith.constant 0 : index
    %367 = vector.load %arg2[%c0_88, %c0_89, %c0_90] : memref<1x8x2xf32, #tpu.memory_space<vmem>>, vector<1x8x2xf32>
    %368 = vector.shape_cast %367 : vector<1x8x2xf32> to vector<8x2xf32>
    %cst_91 = arith.constant dense<0.000000e+00> : vector<8x4xf32>
    %369 = tpu.matmul %350, %330, %cst_91 {dimension_numbers = #tpu.dot_dimension_numbers<[1], [0], [0], [1], [0, 0, 1, 1], [], []>} : vector<8x4xf32>, vector<4x4xf32>, vector<8x4xf32> -> vector<8x4xf32>
    %cst_92 = arith.constant dense<0.000000e+00> : vector<8x4xf32>
    %370 = tpu.matmul %355, %330, %cst_92 {dimension_numbers = #tpu.dot_dimension_numbers<[1], [0], [0], [1], [0, 0, 1, 1], [], []>} : vector<8x4xf32>, vector<4x4xf32>, vector<8x4xf32> -> vector<8x4xf32>
    %c0_93 = arith.constant 0 : index
    %c0_94 = arith.constant 0 : index
    %c0_95 = arith.constant 0 : index
    %371 = vector.load %arg3[%c0_93, %c0_94, %c0_95] : memref<1x8x8xf32, #tpu.memory_space<vmem>>, vector<1x8x8xf32>
    %372 = vector.shape_cast %371 : vector<1x8x8xf32> to vector<8x8xf32>
    %373 = vector.extract_strided_slice %372 {offsets = [0, 0], sizes = [8, 4], strides = [1, 1]} : vector<8x8xf32> to vector<8x4xf32>
    %374 = vector.extract_strided_slice %368 {offsets = [0, 0], sizes = [8, 1], strides = [1, 1]} : vector<8x2xf32> to vector<8x1xf32>
    %cst_96 = arith.constant 4.000000e-01 : f32
    %375 = vector.broadcast %cst_96 : f32 to vector<8x4xf32>
    %376 = arith.mulf %375, %369 : vector<8x4xf32>
    %377 = vector.broadcast %374 : vector<8x1xf32> to vector<8x4xf32>
    %378 = arith.addf %377, %376 : vector<8x4xf32>
    %379 = arith.subf %373, %378 : vector<8x4xf32>
    %380 = vector.extract_strided_slice %372 {offsets = [0, 4], sizes = [8, 4], strides = [1, 1]} : vector<8x8xf32> to vector<8x4xf32>
    %381 = vector.extract_strided_slice %368 {offsets = [0, 1], sizes = [8, 1], strides = [1, 1]} : vector<8x2xf32> to vector<8x1xf32>
    %cst_97 = arith.constant 4.000000e-01 : f32
    %382 = vector.broadcast %cst_97 : f32 to vector<8x4xf32>
    %383 = arith.mulf %382, %370 : vector<8x4xf32>
    %384 = vector.broadcast %381 : vector<8x1xf32> to vector<8x4xf32>
    %385 = arith.addf %384, %383 : vector<8x4xf32>
    %386 = arith.subf %380, %385 : vector<8x4xf32>
    %387 = arith.mulf %366, %366 : vector<8x4xf32>
    %cst_98 = arith.constant 1.000000e+00 : f32
    %388 = vector.broadcast %cst_98 : f32 to vector<8x4xf32>
    %389 = arith.subf %388, %387 : vector<8x4xf32>
    %cst_99 = arith.constant 1.000000e+00 : f32
    %390 = vector.broadcast %cst_99 : f32 to vector<8x4xf32>
    %391 = arith.divf %390, %361 : vector<8x4xf32>
    %cst_100 = arith.constant 1.000000e+00 : f32
    %392 = vector.broadcast %cst_100 : f32 to vector<8x4xf32>
    %393 = arith.divf %392, %365 : vector<8x4xf32>
    %394 = arith.mulf %391, %393 : vector<8x4xf32>
    %395 = math.sqrt %394 : vector<8x4xf32>
    %cst_101 = arith.constant 1.000000e+00 : f32
    %396 = vector.broadcast %cst_101 : f32 to vector<8x4xf32>
    %397 = arith.divf %396, %389 : vector<8x4xf32>
    %398 = arith.mulf %379, %379 : vector<8x4xf32>
    %399 = arith.mulf %398, %391 : vector<8x4xf32>
    %400 = arith.mulf %386, %386 : vector<8x4xf32>
    %401 = arith.mulf %400, %393 : vector<8x4xf32>
    %402 = arith.addf %399, %401 : vector<8x4xf32>
    %cst_102 = arith.constant 2.000000e+00 : f32
    %403 = vector.broadcast %cst_102 : f32 to vector<8x4xf32>
    %404 = arith.mulf %403, %366 : vector<8x4xf32>
    %405 = arith.mulf %404, %379 : vector<8x4xf32>
    %406 = arith.mulf %405, %386 : vector<8x4xf32>
    %407 = arith.mulf %406, %395 : vector<8x4xf32>
    %408 = arith.subf %402, %407 : vector<8x4xf32>
    %cst_103 = arith.constant -5.000000e-01 : f32
    %409 = vector.broadcast %cst_103 : f32 to vector<8x4xf32>
    %410 = arith.mulf %409, %408 : vector<8x4xf32>
    %411 = arith.mulf %410, %397 : vector<8x4xf32>
    %412 = math.exp %411 : vector<8x4xf32>
    %413 = math.sqrt %397 : vector<8x4xf32>
    %414 = arith.mulf %395, %413 : vector<8x4xf32>
    %cst_104 = arith.constant 0.159154937 : f32
    %415 = vector.broadcast %cst_104 : f32 to vector<8x4xf32>
    %416 = arith.mulf %414, %415 : vector<8x4xf32>
    %417 = arith.mulf %412, %416 : vector<8x4xf32>
    %cst_105 = arith.constant 9.99999968E-21 : f32
    %418 = vector.broadcast %cst_105 : f32 to vector<8x4xf32>
    %419 = arith.maximumf %417, %418 : vector<8x4xf32>
    %420 = math.log %419 : vector<8x4xf32>
    %cst_106 = arith.constant 0.000000e+00 : f32
    %421 = vector.broadcast %cst_106 : f32 to vector<8x4xf32>
    %422 = arith.subf %421, %420 : vector<8x4xf32>
    %cst_107 = arith.constant dense<0.000000e+00> : vector<8xf32>
    %423 = vector.multi_reduction <add>, %422, %cst_107 [1] : vector<8x4xf32> to vector<8xf32>
    %424 = vector.shape_cast %423 : vector<8xf32> to vector<8x1xf32>
    %cst_108 = arith.constant dense<0.000000e+00> : vector<1xf32>
    %425 = vector.multi_reduction <add>, %424, %cst_108 [0] : vector<8x1xf32> to vector<1xf32>
    %426 = vector.shape_cast %425 : vector<1xf32> to vector<1x1xf32>
    %c0_109 = arith.constant 0 : index
    %c0_110 = arith.constant 0 : index
    %c0_111 = arith.constant 0 : index
    %427 = vector.load %arg15[%c0_109, %c0_110, %c0_111] : memref<1x1x1xf32, #tpu.memory_space<vmem>>, vector<1x1x1xf32>
    %428 = vector.shape_cast %427 : vector<1x1x1xf32> to vector<1x1xf32>
    %429 = vector.shape_cast %426 : vector<1x1xf32> to vector<1x1x1xf32>
    tpu.vector_store %arg15[%c0_109, %c0_110, %c0_111], %429 {strides = array<i32>} : memref<1x1x1xf32, #tpu.memory_space<vmem>>, vector<1x1x1xf32>,
    return
  }
  func.func @transform_0(%arg0: i32) -> (i32, i32, i32) {
    %c0_i32 = arith.constant 0 : i32
    %c0_i32_0 = arith.constant 0 : i32
    %c0_i32_1 = arith.constant 0 : i32
    return %arg0, %c0_i32, %c0_i32_0 : i32, i32, i32
  }
  func.func @transform_1(%arg0: i32) -> (i32, i32, i32) {
    %c0_i32 = arith.constant 0 : i32
    %c0_i32_0 = arith.constant 0 : i32
    %c0_i32_1 = arith.constant 0 : i32
    return %arg0, %c0_i32, %c0_i32_0 : i32, i32, i32
  }
  func.func @transform_2(%arg0: i32) -> (i32, i32, i32) {
    %c0_i32 = arith.constant 0 : i32
    %c0_i32_0 = arith.constant 0 : i32
    %c0_i32_1 = arith.constant 0 : i32
    return %arg0, %c0_i32, %c0_i32_0 : i32, i32, i32
  }
  func.func @transform_3(%arg0: i32) -> (i32, i32) {
    %c0_i32 = arith.constant 0 : i32
    %c0_i32_0 = arith.constant 0 : i32
    %c0_i32_1 = arith.constant 0 : i32
    return %c0_i32, %c0_i32_0 : i32, i32
  }
  func.func @transform_4(%arg0: i32) -> (i32, i32) {
    %c0_i32 = arith.constant 0 : i32
    %c0_i32_0 = arith.constant 0 : i32
    %c0_i32_1 = arith.constant 0 : i32
    return %c0_i32, %c0_i32_0 : i32, i32
  }
  func.func @transform_5(%arg0: i32) -> (i32, i32) {
    %c0_i32 = arith.constant 0 : i32
    %c0_i32_0 = arith.constant 0 : i32
    %c0_i32_1 = arith.constant 0 : i32
    return %c0_i32, %c0_i32_0 : i32, i32
  }
  func.func @transform_6(%arg0: i32) -> (i32, i32) {
    %c0_i32 = arith.constant 0 : i32
    %c0_i32_0 = arith.constant 0 : i32
    %c0_i32_1 = arith.constant 0 : i32
    return %c0_i32, %c0_i32_0 : i32, i32
  }
  func.func @transform_7(%arg0: i32) -> (i32, i32) {
    %c0_i32 = arith.constant 0 : i32
    %c0_i32_0 = arith.constant 0 : i32
    %c0_i32_1 = arith.constant 0 : i32
    return %c0_i32, %c0_i32_0 : i32, i32
  }
  func.func @transform_8(%arg0: i32) -> (i32, i32) {
    %c0_i32 = arith.constant 0 : i32
    %c0_i32_0 = arith.constant 0 : i32
    %c0_i32_1 = arith.constant 0 : i32
    return %c0_i32, %c0_i32_0 : i32, i32
  }
  func.func @transform_9(%arg0: i32) -> (i32, i32) {
    %c0_i32 = arith.constant 0 : i32
    %c0_i32_0 = arith.constant 0 : i32
    %c0_i32_1 = arith.constant 0 : i32
    return %c0_i32, %c0_i32_0 : i32, i32
  }
  func.func @transform_10(%arg0: i32) -> (i32, i32) {
    %c0_i32 = arith.constant 0 : i32
    %c0_i32_0 = arith.constant 0 : i32
    %c0_i32_1 = arith.constant 0 : i32
    return %c0_i32, %c0_i32_0 : i32, i32
  }
  func.func @transform_11(%arg0: i32) -> (i32, i32) {
    %c0_i32 = arith.constant 0 : i32
    %c0_i32_0 = arith.constant 0 : i32
    %c0_i32_1 = arith.constant 0 : i32
    return %c0_i32, %c0_i32_0 : i32, i32
  }
  func.func @transform_12(%arg0: i32) -> (i32, i32) {
    %c0_i32 = arith.constant 0 : i32
    %c0_i32_0 = arith.constant 0 : i32
    %c0_i32_1 = arith.constant 0 : i32
    return %c0_i32, %c0_i32_0 : i32, i32
  }
  func.func @transform_13(%arg0: i32) -> (i32, i32) {
    %c0_i32 = arith.constant 0 : i32
    %c0_i32_0 = arith.constant 0 : i32
    %c0_i32_1 = arith.constant 0 : i32
    return %c0_i32, %c0_i32_0 : i32, i32
  }
  func.func @transform_14(%arg0: i32) -> (i32, i32, i32) {
    %c0_i32 = arith.constant 0 : i32
    %c0_i32_0 = arith.constant 0 : i32
    %c0_i32_1 = arith.constant 0 : i32
    return %arg0, %c0_i32, %c0_i32_0 : i32, i32, i32
  }
}

</mosaic_0001>

<bundles_post_ra>
// kernel: tpu_custom_call.1
= control target key start
LH: loop header
LB: loop body
LE: loop exit
PB: predicated region body
PF: predicated region fallthrough
CT: control target
= control target key end

     0   :  { %19 = vsyncpa [#allocation4], 0  ;;  %s6496_s0 = inlined_call_operand.vmem [shape: f32[2,64,2], index: 0, kind: input, shape index: {}]   ;;  %s6497_s1 = inlined_call_operand.vmem [shape: f32[2,8,2], index: 1, kind: input, shape index: {}]   ;;  %s6498_s2 = inlined_call_operand.vmem [shape: f32[2,8,8], index: 2, kind: input, shape index: {}]   ;;  %s6499_s3 = inlined_call_operand.vmem [shape: f32[4,4], index: 3, kind: input, shape index: {}]   ;;  %s6500_s4 = inlined_call_operand.vmem [shape: f32[2,16], index: 4, kind: input, shape index: {}]   ;;  %s6501_s5 = inlined_call_operand.vmem [shape: f32[1,16], index: 5, kind: input, shape index: {}]   ;;  %s6502_s6 = inlined_call_operand.vmem [shape: f32[2,512], index: 6, kind: input, shape index: {}]   ;;  %s6503_s7 = inlined_call_operand.hbm [shape: f32[128,512], index: 7, kind: input, shape index: {}]   ;;  %s6504_s8 = inlined_call_operand.vmem [shape: f32[1,512], index: 8, kind: input, shape index: {}]   ;;  %s6505_s9 = inlined_call_operand.vmem [shape: f32[16,512], index: 9, kind: input, shape index: {}]   ;;  %s6506_s10 = inlined_call_operand.hbm [shape: f32[128,512], index: 10, kind: input, shape index: {}]   ;;  %s6507_s11 = inlined_call_operand.vmem [shape: f32[1,512], index: 11, kind: input, shape index: {}]   ;;  %s6508_s12 = inlined_call_operand.vmem [shape: f32[128,5], index: 12, kind: input, shape index: {}]   ;;  %s6509_s13 = inlined_call_operand.vmem [shape: f32[1,5], index: 13, kind: input, shape index: {}]   ;;  %s6510_s14 = inlined_call_operand.vmem [shape: f32[2,1,1], index: 14, kind: output, shape index: {}]  }
   0x1   :  { %20 = vsyncpa [#allocation6], 0  ;;  %s4562_s29 = smov 0  }
   0x2 LB: > { %s389_s16 = sshll.u32 %s6503_s7, 4  ;;  %s3836_s17 = sadd.s32 4294967295, %s4470_s29   ;;  %s4470_s29 = sphi %s4562_s29, %s26_s29   ;;  %s390_s16 = int_to_ptr.hbm [resolvable:$true] %s389_s16 }
   0x3   : > { %p3838_p0 = scmp.ge.s32.totalorder %s4470_s29, 1  ;;  %p366_p1 = scmp.lt.s32.totalorder %s4470_s29, 3 }
   0x4   : > { %p3979_p2 = scmp.eq.s32.totalorder %s3836_s17, 0  ;;  %s4472_s19 = smov [#allocation3]  }
   0x5   : > { %p4573_p3 = pnand %p3838_p0, %p366_p1  ;;  %s391_s20 = sshll.u32 %s4472_s19, 4  ;;  %s392_s20 = int_to_ptr.vmem [resolvable:$true] %s391_s20 }
   0x6   : > { %s409_s23 = sshll.u32 %s6506_s10, 4  ;;  %s4473_s24 = smov [#allocation5]   ;;  %s410_s23 = int_to_ptr.hbm [resolvable:$true] %s409_s23 }
   0x7   : > { %p3972_p4 = pneg %p4573_p3  ;;  %s411_s25 = sshll.u32 %s4473_s24, 4  ;;  %s412_s25 = int_to_ptr.vmem [resolvable:$true] %s411_s25 }
   0x8   : > { %s4474_s26 = smov 512   ;;  %s4475_s27 = smov 32  }
   0x9   : > { %p3973_p5 = pnand %p3979_p2, %p3972_p4  ;;  %458 = sbr.rel (%p4573_p3) target bundleno = 4166 (0x1046), region = 76 }
   0xb   : > { %3975 = dma.hbm_to_vmem [thread:$0]  (!%p3973_p5), %s390_s16, 8192, %s392_s20, [#allocation4], %s4474_s26, %s4474_s26, %s4475_s27  }
   0xc   : > { %3978 = dma.hbm_to_vmem [thread:$0]  (!%p3973_p5), %s410_s23, 8192, %s412_s25, [#allocation6], %s4474_s26, %s4474_s26, %s4475_s27  }
   0xe   : > { %4461 = dma.done.wait (%p3979_p2), [#allocation4], 8192  }
   0xf   : > { %4463 = vsyncadd (%p3979_p2), [#allocation4], 4294959104 }
  0x10   : > { %4465 = dma.done.wait (%p3979_p2), [#allocation6], 8192  }
  0x11   : > { %4467 = vsyncadd (%p3979_p2), [#allocation6], 4294959104  ;;  %p516_p6 = scmp.lt.s32.totalorder %s3836_s17, 1  ;;  %v711_v0 = vld [vmem:[%s6502_s6] sm:$0xff]  ;;  %vm753_vm0 = vcmask 1041408   ;;  %vm728_vm1 = vcmask 15360  }
  0x12   : > { %723 = vst [vmem:[#allocation1] ss:$4 sm:$0xff] %v711_v0  ;;  %v4605_v6 = vld [vmem:[#allocation3 + $0x1e0] sm:$0xff]  ;;  %v4607_v7 = vld [vmem:[#allocation3 + $0x1e8] sm:$0xff]  ;;  %v4611_v8 = vld [vmem:[#allocation3 + $0x1f0] sm:$0xff]  ;;  %s4477_s22 = smov 125  }
  0x13   : > { %s7046_s17 = smov (!%p516_p6, %s3836_s17), 1  ;;  %v4613_v9 = vld [vmem:[#allocation3 + $0x1f8] sm:$0xff]  ;;  %v4617_v10 = vld [vmem:[#allocation3 + $0x1c0] sm:$0xff]  ;;  %v4619_v11 = vld [vmem:[#allocation3 + $0x1c8] sm:$0xff]  ;;  %s4479_s20 = smov 126  }
  0x14   : > { %s3963_s15 = sshll.u32 %s7046_s17, 6  ;;  %v4623_v12 = vld [vmem:[#allocation3 + $0x1d0] sm:$0xff]  ;;  %v4625_v13 = vld [vmem:[#allocation3 + $0x1d8] sm:$0xff]  ;;  %v4628_v14 = vld [vmem:[#allocation3 + $0x1a0] sm:$0xff]  ;;  %s4481_s21 = smov 1  }
  0x15   : > { %s4598_s19 = scalar_lea.vmem %s6496_s0, %s3963_s15  ;;  %v4630_v15 = vld [vmem:[#allocation3 + $0x1a8] sm:$0xff]  ;;  %v4635_v16 = vld [vmem:[#allocation3 + $0x1b0] sm:$0xff]  ;;  %v4637_v17 = vld [vmem:[#allocation3 + $0x1b8] sm:$0xff]  ;;  %s4482_s23 = smov 4  }
  0x16   : > { %v703_v1 = vld [vmem:[%s4598_s19] sm:$0xff]  ;;  %v704_v18 = vld [vmem:[%s4598_s19 + $0x8] sm:$0xff]  ;;  %v4646_v20 = vld [vmem:[#allocation3 + $0x188] sm:$0xff]  ;;  %s3847_s24 = sshll.u32 %s7046_s17, 3  ;;  %s4483_s25 = smov 2  }
  0x17   : > { %v4644_v19 = vld [vmem:[#allocation3 + $0x180] sm:$0xff]  ;;  %v4652_v21 = vld [vmem:[#allocation3 + $0x190] sm:$0xff]  ;;  %v4654_v22 = vld [vmem:[#allocation3 + $0x198] sm:$0xff]  ;;  %s524_s28 = scalar_lea.vmem %s6497_s1, %s3847_s24  ;;  %s4484_s30 = smov 124  }
  0x18   : > { %v4658_v23 = vld [vmem:[#allocation3 + $0x160] sm:$0xff]  ;;  %v4660_v24 = vld [vmem:[#allocation3 + $0x168] sm:$0xff]  ;;  %v4664_v25 = vld [vmem:[#allocation3 + $0x170] sm:$0xff] }
  0x19   : > { %v724_v2 = vld.sshfl [vmem:[#allocation1] sm:$0xff pattern:$0x73625140]  ;;  %v725_v3 = vld.sshfl [vmem:[#allocation1 + $0x8] sm:$0xff pattern:$0x73625140] }
  0x1a   : > { %3849 = vmatpush.msk.msra.mxu0 %vm753_vm0, %v724_v2  ;;  %3858 = vmatpush.msk.msra.mxu1 %vm753_vm0, %v725_v3  ;;  %v726_v4 = vld.sshfl [vmem:[#allocation1 + $0x10] sm:$0xff pattern:$0x73625140]  ;;  %v727_v5 = vld.sshfl [vmem:[#allocation1 + $0x18] sm:$0xff pattern:$0x73625140] }
  0x1b   : > { %3867 = vmatpush.msk.msra.mxu2 %vm753_vm0, %v726_v4  ;;  %3876 = vmatpush.msk.msra.mxu3 %vm753_vm0, %v727_v5  ;;  %v4666_v26 = vld [vmem:[#allocation3 + $0x178] sm:$0xff]  ;;  %v4669_v27 = vld [vmem:[#allocation3 + $0x140] sm:$0xff]  ;;  %v4671_v28 = vld [vmem:[#allocation3 + $0x148] sm:$0xff] }
  0x1c   : > { %3850 = vmatmul.msk.f32.vlgmr.msra.gmra.mxu0 %vm728_vm1, %v703_v1  ;;  %3859 = vmatmul.msk.f32.vlgmr.msra.gmra.mxu1 %vm728_vm1, %v703_v1  ;;  %v4676_v29 = vld [vmem:[#allocation3 + $0x150] sm:$0xff]  ;;  %v4678_v30 = vld [vmem:[#allocation3 + $0x158] sm:$0xff]  ;;  %v705_v31 = vld [vmem:[%s4598_s19 + $0x10] sm:$0xff] }
  0x1d   : > { %3868 = vmatmul.msk.f32.vlgmr.msra.gmra.mxu2 %vm728_vm1, %v703_v1  ;;  %3877 = vmatmul.msk.f32.vlgmr.msra.gmra.mxu3 %vm728_vm1, %v703_v1  ;;  %v4685_v32 = vld [vmem:[#allocation3 + $0x120] sm:$0xff]  ;;  %v4687_v33 = vld [vmem:[#allocation3 + $0x128] sm:$0xff]  ;;  %v4693_v34 = vld [vmem:[#allocation3 + $0x130] sm:$0xff] }
  0x1e   : > { %962 = vmatpush.msrb.mxu0 %v4605_v6  ;;  %982 = vmatpush.msrb.mxu1 %v4607_v7  ;;  %v4695_v35 = vld [vmem:[#allocation3 + $0x138] sm:$0xff]  ;;  %v4699_v36 = vld [vmem:[#allocation3 + $0x100] sm:$0xff]  ;;  %v4701_v37 = vld [vmem:[#allocation3 + $0x108] sm:$0xff] }
  0x1f   : > { %1002 = vmatpush.msrb.mxu2 %v4611_v8  ;;  %1022 = vmatpush.msrb.mxu3 %v4613_v9  ;;  %v4705_v38 = vld [vmem:[#allocation3 + $0x110] sm:$0xff]  ;;  %v4707_v39 = vld [vmem:[#allocation3 + $0x118] sm:$0xff]  ;;  %v4710_v40 = vld [vmem:[#allocation3 + $0xe0] sm:$0xff] }
  0x20   : > { %963 = vmatpush.msrb.mxu0 %v4617_v10  ;;  %983 = vmatpush.msrb.mxu1 %v4619_v11  ;;  %v4712_v41 = vld [vmem:[#allocation3 + $0xe8] sm:$0xff]  ;;  %v4717_v42 = vld [vmem:[#allocation3 + $0xf0] sm:$0xff]  ;;  %v4719_v43 = vld [vmem:[#allocation3 + $0xf8] sm:$0xff] }
  0x21   : > { %1003 = vmatpush.msrb.mxu2 %v4623_v12  ;;  %1023 = vmatpush.msrb.mxu3 %v4625_v13  ;;  %v706_v44 = vld [vmem:[%s4598_s19 + $0x18] sm:$0xff]  ;;  %v4726_v45 = vld [vmem:[#allocation3 + $0xc0] sm:$0xff]  ;;  %v4728_v46 = vld [vmem:[#allocation3 + $0xc8] sm:$0xff] }
  0x22   : > { %964 = vmatpush.msrb.mxu0 %v4628_v14  ;;  %984 = vmatpush.msrb.mxu1 %v4630_v15  ;;  %v4734_v47 = vld [vmem:[#allocation3 + $0xd0] sm:$0xff]  ;;  %v4736_v48 = vld [vmem:[#allocation3 + $0xd8] sm:$0xff]  ;;  %v4740_v49 = vld [vmem:[#allocation3 + $0xa0] sm:$0xff] }
  0x23   : > { %1004 = vmatpush.msrb.mxu2 %v4635_v16  ;;  %1024 = vmatpush.msrb.mxu3 %v4637_v17  ;;  %6714 = vst [vmem:[#allocation9_spill] sm:$0xff] %v4734_v47  ;;  %v4742_v50 = vld [vmem:[#allocation3 + $0xa8] sm:$0xff]  ;;  %v4746_v51 = vld [vmem:[#allocation3 + $0xb0] sm:$0xff]  ;;  %v4748_v52 = vld [vmem:[#allocation3 + $0xb8] sm:$0xff] }
  0x24   : > { %3851 = vmatmul.msk.f32.gmra.mxu0 %vm728_vm1, %v704_v18  ;;  %3860 = vmatmul.msk.f32.gmra.mxu1 %vm728_vm1, %v704_v18  ;;  %6715 = vst [vmem:[#allocation10_spill] sm:$0xff] %v4736_v48  ;;  %v4751_v53 = vld [vmem:[#allocation3 + $0x80] sm:$0xff]  ;;  %v4753_v54 = vld [vmem:[#allocation3 + $0x88] sm:$0xff]  ;;  %v4758_v55 = vld [vmem:[#allocation3 + $0x90] sm:$0xff] }
  0x25   : > { %3869 = vmatmul.msk.f32.gmra.mxu2 %vm728_vm1, %v704_v18  ;;  %3878 = vmatmul.msk.f32.gmra.mxu3 %vm728_vm1, %v704_v18  ;;  %6716 = vst [vmem:[#allocation11_spill] sm:$0xff] %v4740_v49  ;;  %v4760_v56 = vld [vmem:[#allocation3 + $0x98] sm:$0xff]  ;;  %v4767_v58 = vld [vmem:[#allocation3 + $0x60] sm:$0xff]  ;;  %v4769_v59 = vld [vmem:[#allocation3 + $0x68] sm:$0xff] }
  0x26   : > { %965 = vmatpush.msrb.mxu0 %v4644_v19  ;;  %985 = vmatpush.msrb.mxu1 %v4646_v20  ;;  %6717 = vst [vmem:[#allocation12_spill] sm:$0xff] %v4742_v50  ;;  %v707_v57 = vld [vmem:[%s4598_s19 + $0x20] sm:$0xff]  ;;  %v4775_v60 = vld [vmem:[#allocation3 + $0x70] sm:$0xff]  ;;  %v4781_v62 = vld [vmem:[#allocation3 + $0x40] sm:$0xff] }
  0x27   : > { %1005 = vmatpush.msrb.mxu2 %v4652_v21  ;;  %1025 = vmatpush.msrb.mxu3 %v4654_v22  ;;  %6718 = vst [vmem:[#allocation13_spill] sm:$0xff] %v4746_v51  ;;  %v4777_v61 = vld [vmem:[#allocation3 + $0x78] sm:$0xff]  ;;  %v4783_v63 = vld [vmem:[#allocation3 + $0x48] sm:$0xff]  ;;  %v4787_v0 = vld [vmem:[#allocation3 + $0x50] sm:$0xff] }
  0x28   : > { %966 = vmatpush.msrb.mxu0 %v4658_v23  ;;  %986 = vmatpush.msrb.mxu1 %v4660_v24  ;;  %6719 = vst [vmem:[#allocation14_spill] sm:$0xff] %v4748_v52  ;;  %v4789_v1 = vld [vmem:[#allocation3 + $0x58] sm:$0xff]  ;;  %v4792_v2 = vld [vmem:[#allocation3 + $0x20] sm:$0xff]  ;;  %v4794_v3 = vld [vmem:[#allocation3 + $0x28] sm:$0xff] }
  0x29   : > { %1006 = vmatpush.msrb.mxu2 %v4664_v25  ;;  %1026 = vmatpush.msrb.mxu3 %v4666_v26  ;;  %6720 = vst [vmem:[#allocation15_spill] sm:$0xff] %v4751_v53  ;;  %v4799_v4 = vld [vmem:[#allocation3 + $0x30] sm:$0xff]  ;;  %v4801_v5 = vld [vmem:[#allocation3 + $0x38] sm:$0xff]  ;;  %v708_v18 = vld [vmem:[%s4598_s19 + $0x28] sm:$0xff] }
  0x2a   : > { %967 = vmatpush.msrb.mxu0 %v4669_v27  ;;  %987 = vmatpush.msrb.mxu1 %v4671_v28  ;;  %6721 = vst [vmem:[#allocation16_spill] sm:$0xff] %v4753_v54 }
  0x2b   : > { %1007 = vmatpush.msrb.mxu2 %v4676_v29  ;;  %1027 = vmatpush.msrb.mxu3 %v4678_v30  ;;  %6722 = vst [vmem:[#allocation17_spill] sm:$0xff] %v4758_v55 }
  0x2c   : > { %3852 = vmatmul.msk.f32.gmra.mxu0 %vm728_vm1, %v705_v31  ;;  %3861 = vmatmul.msk.f32.gmra.mxu1 %vm728_vm1, %v705_v31  ;;  %6723 = vst [vmem:[#allocation18_spill] sm:$0xff] %v4760_v56 }
  0x2d   : > { %3870 = vmatmul.msk.f32.gmra.mxu2 %vm728_vm1, %v705_v31  ;;  %3879 = vmatmul.msk.f32.gmra.mxu3 %vm728_vm1, %v705_v31  ;;  %6724 = vst [vmem:[#allocation19_spill] sm:$0xff] %v4767_v58  ;;  %v4808_v31 = vld [vmem:[#allocation3] sm:$0xff] }
  0x2e   : > { %968 = vmatpush.msrb.mxu0 %v4685_v32  ;;  %988 = vmatpush.msrb.mxu1 %v4687_v33  ;;  %6725 = vst [vmem:[#allocation20_spill] sm:$0xff] %v4769_v59 }
  0x2f   : > { %1008 = vmatpush.msrb.mxu2 %v4693_v34  ;;  %1028 = vmatpush.msrb.mxu3 %v4695_v35  ;;  %6726 = vst [vmem:[#allocation21_spill] sm:$0xff] %v4775_v60 }
  0x30   : > { %969 = vmatpush.msrb.mxu0 %v4699_v36  ;;  %989 = vmatpush.msrb.mxu1 %v4701_v37  ;;  %6727 = vst [vmem:[#allocation22_spill] sm:$0xff] %v4777_v61 }
  0x31   : > { %1009 = vmatpush.msrb.mxu2 %v4705_v38  ;;  %1029 = vmatpush.msrb.mxu3 %v4707_v39  ;;  %6728 = vst [vmem:[#allocation23_spill] sm:$0xff] %v4781_v62 }
  0x32   : > { %970 = vmatpush.msrb.mxu0 %v4710_v40  ;;  %990 = vmatpush.msrb.mxu1 %v4712_v41  ;;  %6729 = vst [vmem:[#allocation24_spill] sm:$0xff] %v4783_v63 }
  0x33   : > { %1010 = vmatpush.msrb.mxu2 %v4717_v42  ;;  %1030 = vmatpush.msrb.mxu3 %v4719_v43  ;;  %6730 = vst [vmem:[#allocation25_spill] sm:$0xff] %v4787_v0 }
  0x34   : > { %3853 = vmatmul.msk.f32.gmra.mxu0 %vm728_vm1, %v706_v44  ;;  %3862 = vmatmul.msk.f32.gmra.mxu1 %vm728_vm1, %v706_v44  ;;  %6731 = vst [vmem:[#allocation26_spill] sm:$0xff] %v4789_v1 }
  0x35   : > { %3871 = vmatmul.msk.f32.gmra.mxu2 %vm728_vm1, %v706_v44  ;;  %3880 = vmatmul.msk.f32.gmra.mxu3 %vm728_vm1, %v706_v44  ;;  %6732 = vst [vmem:[#allocation27_spill] sm:$0xff] %v4792_v2  ;;  %v4810_v44 = vld [vmem:[#allocation3 + $0x8] sm:$0xff] }
  0x36   : > { %971 = vmatpush.msrb.mxu0 %v4726_v45  ;;  %991 = vmatpush.msrb.mxu1 %v4728_v46  ;;  %6733 = vst [vmem:[#allocation28_spill] sm:$0xff] %v4794_v3 }
  0x37   : > { %1011 = vmatpush.msrb.mxu2 %v4734_v47  ;;  %1031 = vmatpush.msrb.mxu3 %v4736_v48  ;;  %6734 = vst [vmem:[#allocation29_spill] sm:$0xff] %v4799_v4 }
  0x38   : > { %972 = vmatpush.msrb.mxu0 %v4740_v49  ;;  %992 = vmatpush.msrb.mxu1 %v4742_v50  ;;  %6735 = vst [vmem:[#allocation30_spill] sm:$0xff] %v4801_v5 }
  0x39   : > { %1012 = vmatpush.msrb.mxu2 %v4746_v51  ;;  %1032 = vmatpush.msrb.mxu3 %v4748_v52  ;;  %6736 = vst [vmem:[#allocation31_spill] sm:$0xff] %v4808_v31 }
  0x3a   : > { %973 = vmatpush.msrb.mxu0 %v4751_v53  ;;  %993 = vmatpush.msrb.mxu1 %v4753_v54  ;;  %6737 = vst [vmem:[#allocation32_spill] sm:$0xff] %v4810_v44 }
  0x3b   : > { %1013 = vmatpush.msrb.mxu2 %v4758_v55  ;;  %1033 = vmatpush.msrb.mxu3 %v4760_v56 }
  0x3c   : > { %3854 = vmatmul.msk.f32.gmra.mxu0 %vm728_vm1, %v707_v57  ;;  %3863 = vmatmul.msk.f32.gmra.mxu1 %vm728_vm1, %v707_v57 }
  0x3d   : > { %3872 = vmatmul.msk.f32.gmra.mxu2 %vm728_vm1, %v707_v57  ;;  %3881 = vmatmul.msk.f32.gmra.mxu3 %vm728_vm1, %v707_v57  ;;  %v4816_v57 = vld [vmem:[#allocation3 + $0x10] sm:$0xff] }
  0x3e   : > { %974 = vmatpush.msrb.mxu0 %v4767_v58  ;;  %994 = vmatpush.msrb.mxu1 %v4769_v59  ;;  %6738 = vst [vmem:[#allocation33_spill] sm:$0xff] %v4816_v57 }
  0x3f   : > { %1014 = vmatpush.msrb.mxu2 %v4775_v60  ;;  %1034 = vmatpush.msrb.mxu3 %v4777_v61 }
  0x40   : > { %975 = vmatpush.msrb.mxu0 %v4781_v62  ;;  %995 = vmatpush.msrb.mxu1 %v4783_v63 }
  0x41   : > { %1015 = vmatpush.msrb.mxu2 %v4787_v0  ;;  %1035 = vmatpush.msrb.mxu3 %v4789_v1  ;;  %v4818_v1 = vld [vmem:[#allocation3 + $0x18] sm:$0xff] }
  0x42   : > { %976 = vmatpush.msrb.mxu0 %v4792_v2  ;;  %996 = vmatpush.msrb.mxu1 %v4794_v3  ;;  %6739 = vst [vmem:[#allocation34_spill] sm:$0xff] %v4818_v1 }
  0x43   : > { %1016 = vmatpush.msrb.mxu2 %v4799_v4  ;;  %1036 = vmatpush.msrb.mxu3 %v4801_v5  ;;  %v709_v5 = vld [vmem:[%s4598_s19 + $0x30] sm:$0xff] }
  0x44   : > { %3855 = vmatmul.msk.f32.gmra.mxu0 %vm728_vm1, %v708_v18  ;;  %3864 = vmatmul.msk.f32.gmra.mxu1 %vm728_vm1, %v708_v18 }
  0x45   : > { %3873 = vmatmul.msk.f32.gmra.mxu2 %vm728_vm1, %v708_v18  ;;  %3882 = vmatmul.msk.f32.gmra.mxu3 %vm728_vm1, %v708_v18  ;;  %v710_v18 = vld [vmem:[%s4598_s19 + $0x38] sm:$0xff] }
  0x46   : > { %977 = vmatpush.msrb.mxu0 %v4808_v31  ;;  %997 = vmatpush.msrb.mxu1 %v4810_v44 }
  0x47   : > { %1017 = vmatpush.msrb.mxu2 %v4816_v57  ;;  %1037 = vmatpush.msrb.mxu3 %v4818_v1 }
  0x48   : > { %1113 = vmatpush.msra.mxu0 %v4605_v6  ;;  %1133 = vmatpush.msra.mxu1 %v4607_v7 }
  0x49   : > { %1153 = vmatpush.msra.mxu2 %v4611_v8  ;;  %1173 = vmatpush.msra.mxu3 %v4613_v9 }
  0x4a   : > { %1114 = vmatpush.msra.mxu0 %v4617_v10  ;;  %1134 = vmatpush.msra.mxu1 %v4619_v11 }
  0x4b   : > { %1154 = vmatpush.msra.mxu2 %v4623_v12  ;;  %1174 = vmatpush.msra.mxu3 %v4625_v13 }
  0x4c   : > { %3856 = vmatmul.msk.f32.gmra.mxu0 %vm728_vm1, %v709_v5  ;;  %3865 = vmatmul.msk.f32.gmra.mxu1 %vm728_vm1, %v709_v5 }
  0x4d   : > { %3874 = vmatmul.msk.f32.gmra.mxu2 %vm728_vm1, %v709_v5  ;;  %3883 = vmatmul.msk.f32.gmra.mxu3 %vm728_vm1, %v709_v5  ;;  %v4476_v5 = vmov 0.0  }
  0x4e   : > { %1115 = vmatpush.msra.mxu0 %v4628_v14  ;;  %1135 = vmatpush.msra.mxu1 %v4630_v15 }
  0x4f   : > { %1155 = vmatpush.msra.mxu2 %v4635_v16  ;;  %1175 = vmatpush.msra.mxu3 %v4637_v17 }
  0x50   : > { %1116 = vmatpush.msra.mxu0 %v4644_v19  ;;  %1136 = vmatpush.msra.mxu1 %v4646_v20 }
  0x51   : > { %1156 = vmatpush.msra.mxu2 %v4652_v21  ;;  %1176 = vmatpush.msra.mxu3 %v4654_v22 }
  0x52   : > { %1117 = vmatpush.msra.mxu0 %v4658_v23  ;;  %1137 = vmatpush.msra.mxu1 %v4660_v24 }
  0x53   : > { %1157 = vmatpush.msra.mxu2 %v4664_v25  ;;  %1177 = vmatpush.msra.mxu3 %v4666_v26 }
  0x54   : > { %3857 = vmatmul.msk.f32.gmra.mxu0 %vm728_vm1, %v710_v18  ;;  %3866 = vmatmul.msk.f32.gmra.mxu1 %vm728_vm1, %v710_v18 }
  0x55   : > { %3875 = vmatmul.msk.f32.gmra.mxu2 %vm728_vm1, %v710_v18  ;;  %3884 = vmatmul.msk.f32.gmra.mxu3 %vm728_vm1, %v710_v18  ;;  %v6740_v18 = vld [vmem:[#allocation26_spill] sm:$0xff] }
  0x56   : > { %1118 = vmatpush.msra.mxu0 %v4669_v27  ;;  %1138 = vmatpush.msra.mxu1 %v4671_v28 }
  0x57   : > { %1158 = vmatpush.msra.mxu2 %v4676_v29  ;;  %1178 = vmatpush.msra.mxu3 %v4678_v30 }
  0x58   : > { %1119 = vmatpush.msra.mxu0 %v4685_v32  ;;  %1139 = vmatpush.msra.mxu1 %v4687_v33 }
  0x59   : > { %1159 = vmatpush.msra.mxu2 %v4693_v34  ;;  %1179 = vmatpush.msra.mxu3 %v4695_v35 }
  0x5a   : > { %1120 = vmatpush.msra.mxu0 %v4699_v36  ;;  %1140 = vmatpush.msra.mxu1 %v4701_v37 }
  0x5b   : > { %1160 = vmatpush.msra.mxu2 %v4705_v38  ;;  %1180 = vmatpush.msra.mxu3 %v4707_v39 }
  0x5c   : > { %978 = vmatmul.f32.vlgmr.msrb.gmra.mxu0 %v4476_v5  ;;  %998 = vmatmul.f32.vlgmr.msrb.gmra.mxu1 %v4476_v5 }
  0x5d   : > { %1018 = vmatmul.f32.vlgmr.msrb.gmra.mxu2 %v4476_v5  ;;  %1038 = vmatmul.f32.vlgmr.msrb.gmra.mxu3 %v4476_v5  ;;  %v6741_v5 = vld [vmem:[#allocation30_spill] sm:$0xff] }
  0x5e   : > { %1121 = vmatpush.msra.mxu0 %v4710_v40  ;;  %1141 = vmatpush.msra.mxu1 %v4712_v41 }
  0x5f   : > { %1161 = vmatpush.msra.mxu2 %v4717_v42  ;;  %1181 = vmatpush.msra.mxu3 %v4719_v43 }
  0x60   : > { %1122 = vmatpush.msra.mxu0 %v4726_v45  ;;  %1142 = vmatpush.msra.mxu1 %v4728_v46 }
  0x61   : > { %1162 = vmatpush.msra.mxu2 %v4734_v47  ;;  %1182 = vmatpush.msra.mxu3 %v4736_v48 }
  0x62   : > { %1123 = vmatpush.msra.mxu0 %v4740_v49  ;;  %1143 = vmatpush.msra.mxu1 %v4742_v50 }
  0x63   : > { %1163 = vmatpush.msra.mxu2 %v4746_v51  ;;  %1183 = vmatpush.msra.mxu3 %v4748_v52 }
  0x64   : > { %1124 = vmatpush.msra.mxu0 %v4751_v53  ;;  %1144 = vmatpush.msra.mxu1 %v4753_v54 }
  0x65   : > { %1164 = vmatpush.msra.mxu2 %v4758_v55  ;;  %1184 = vmatpush.msra.mxu3 %v4760_v56 }
  0x66   : > { %1125 = vmatpush.msra.mxu0 %v4767_v58  ;;  %1145 = vmatpush.msra.mxu1 %v4769_v59 }
  0x67   : > { %1165 = vmatpush.msra.mxu2 %v4775_v60  ;;  %1185 = vmatpush.msra.mxu3 %v4777_v61 }
  0x68   : > { %1126 = vmatpush.msra.mxu0 %v4781_v62  ;;  %1146 = vmatpush.msra.mxu1 %v4783_v63 }
  0x69   : > { %1166 = vmatpush.msra.mxu2 %v4787_v0  ;;  %1186 = vmatpush.msra.mxu3 %v6740_v18 }
  0x6a   : > { %1127 = vmatpush.msra.mxu0 %v4792_v2  ;;  %1147 = vmatpush.msra.mxu1 %v4794_v3 }
  0x6b   : > { %1167 = vmatpush.msra.mxu2 %v4799_v4  ;;  %1187 = vmatpush.msra.mxu3 %v6741_v5 }
  0x6c   : > { %1128 = vmatpush.msra.mxu0 %v4808_v31  ;;  %1148 = vmatpush.msra.mxu1 %v4810_v44 }
  0x6d   : > { %1168 = vmatpush.msra.mxu2 %v4816_v57  ;;  %1188 = vmatpush.msra.mxu3 %v4818_v1 }
  0x6e   : > { %1264 = vmatpush.msrb.mxu0 %v4605_v6  ;;  %1284 = vmatpush.msrb.mxu1 %v4607_v7 }
  0x6f   : > { %1304 = vmatpush.msrb.mxu2 %v4611_v8  ;;  %1324 = vmatpush.msrb.mxu3 %v4613_v9 }
  0x70   : > { %1265 = vmatpush.msrb.mxu0 %v4617_v10  ;;  %1285 = vmatpush.msrb.mxu1 %v4619_v11 }
  0x71   : > { %1305 = vmatpush.msrb.mxu2 %v4623_v12  ;;  %1325 = vmatpush.msrb.mxu3 %v4625_v13 }
  0x72   : > { %1266 = vmatpush.msrb.mxu0 %v4628_v14  ;;  %1286 = vmatpush.msrb.mxu1 %v4630_v15 }
  0x73   : > { %1306 = vmatpush.msrb.mxu2 %v4635_v16  ;;  %1326 = vmatpush.msrb.mxu3 %v4637_v17 }
  0x74   : > { %1267 = vmatpush.msrb.mxu0 %v4644_v19  ;;  %1287 = vmatpush.msrb.mxu1 %v4646_v20 }
  0x75   : > { %1307 = vmatpush.msrb.mxu2 %v4652_v21  ;;  %1327 = vmatpush.msrb.mxu3 %v4654_v22 }
  0x76   : > { %1268 = vmatpush.msrb.mxu0 %v4658_v23  ;;  %1288 = vmatpush.msrb.mxu1 %v4660_v24 }
  0x77   : > { %1308 = vmatpush.msrb.mxu2 %v4664_v25  ;;  %1328 = vmatpush.msrb.mxu3 %v4666_v26 }
  0x78   : > { %1269 = vmatpush.msrb.mxu0 %v4669_v27  ;;  %1289 = vmatpush.msrb.mxu1 %v4671_v28 }
  0x79   : > { %1309 = vmatpush.msrb.mxu2 %v4676_v29  ;;  %1329 = vmatpush.msrb.mxu3 %v4678_v30 }
  0x7a   : > { %1270 = vmatpush.msrb.mxu0 %v4685_v32  ;;  %1290 = vmatpush.msrb.mxu1 %v4687_v33 }
  0x7b   : > { %1310 = vmatpush.msrb.mxu2 %v4693_v34  ;;  %1330 = vmatpush.msrb.mxu3 %v4695_v35 }
  0x7c   : > { %1271 = vmatpush.msrb.mxu0 %v4699_v36  ;;  %1291 = vmatpush.msrb.mxu1 %v4701_v37 }
  0x7d   : > { %1311 = vmatpush.msrb.mxu2 %v4705_v38  ;;  %1331 = vmatpush.msrb.mxu3 %v4707_v39 }
  0x7e   : > { %1272 = vmatpush.msrb.mxu0 %v4710_v40  ;;  %1292 = vmatpush.msrb.mxu1 %v4712_v41 }
  0x7f   : > { %1312 = vmatpush.msrb.mxu2 %v4717_v42  ;;  %1332 = vmatpush.msrb.mxu3 %v4719_v43 }
  0x80   : > { %1273 = vmatpush.msrb.mxu0 %v4726_v45  ;;  %1293 = vmatpush.msrb.mxu1 %v4728_v46 }
  0x81   : > { %1313 = vmatpush.msrb.mxu2 %v4734_v47  ;;  %1333 = vmatpush.msrb.mxu3 %v4736_v48 }
  0x82   : > { %1274 = vmatpush.msrb.mxu0 %v4740_v49  ;;  %1294 = vmatpush.msrb.mxu1 %v4742_v50 }
  0x83   : > { %1314 = vmatpush.msrb.mxu2 %v4746_v51  ;;  %1334 = vmatpush.msrb.mxu3 %v4748_v52 }
  0x84   : > { %1275 = vmatpush.msrb.mxu0 %v4751_v53  ;;  %1295 = vmatpush.msrb.mxu1 %v4753_v54 }
  0x85   : > { %1315 = vmatpush.msrb.mxu2 %v4758_v55  ;;  %1335 = vmatpush.msrb.mxu3 %v4760_v56 }
  0x86   : > { %1276 = vmatpush.msrb.mxu0 %v4767_v58  ;;  %1296 = vmatpush.msrb.mxu1 %v4769_v59 }
  0x87   : > { %1316 = vmatpush.msrb.mxu2 %v4775_v60  ;;  %1336 = vmatpush.msrb.mxu3 %v4777_v61 }
  0x88   : > { %1277 = vmatpush.msrb.mxu0 %v4781_v62  ;;  %1297 = vmatpush.msrb.mxu1 %v4783_v63 }
  0x89   : > { %1317 = vmatpush.msrb.mxu2 %v4787_v0  ;;  %1337 = vmatpush.msrb.mxu3 %v6740_v18 }
  0x8a   : > { %1278 = vmatpush.msrb.mxu0 %v4792_v2  ;;  %1298 = vmatpush.msrb.mxu1 %v4794_v3 }
  0x8b   : > { %1318 = vmatpush.msrb.mxu2 %v4799_v4  ;;  %1338 = vmatpush.msrb.mxu3 %v6741_v5 }
  0x8c   : > { %1279 = vmatpush.msrb.mxu0 %v4808_v31  ;;  %1299 = vmatpush.msrb.mxu1 %v4810_v44 }
  0x8d   : > { %1319 = vmatpush.msrb.mxu2 %v4816_v57  ;;  %1339 = vmatpush.msrb.mxu3 %v4818_v1  ;;  %v712_v1 = vld [vmem:[%s6504_s8] sm:$0xf] }
  0x8e   : > { %v4983_v57 = vperm.slane %v712_v1, 0  ;;  %v4985_v61 = vperm.slane %v712_v1, 1  ;;  %v4999_v59 = vperm.slane %v712_v1, 3 }
  0x90   : > { %6748 = vst [vmem:[#allocation41_spill] sm:$0xff] %v4983_v57 }
  0x91   : > { %6749 = vst [vmem:[#allocation42_spill] sm:$0xff] %v4985_v61 }
  0x92   : > { %6755 = vst [vmem:[#allocation48_spill] sm:$0xff] %v4999_v59 }
  0x99   : > { %v779_v63 = vpop.f32.mrf.mxu0  ;;  %v820_v0 = vpop.f32.mrf.mxu1 }
  0xa0   : > { %v4964_v62 = vpop.f32.mrf.mxu2  ;;  %v4966_v18 = vpop.f32.mrf.mxu3 }
  0xa1   : > { %v4968_v2 = vpop.f32.mrf.mxu0  ;;  %v4970_v3 = vpop.f32.mrf.mxu1 }
  0xa2   : > { %6742 = vst [vmem:[#allocation35_spill] sm:$0xff] %v4968_v2 }
  0xa3   : > { %6743 = vst [vmem:[#allocation36_spill] sm:$0xff] %v4970_v3 }
  0xa8   : > { %v4972_v4 = vpop.f32.mrf.mxu2  ;;  %v4974_v5 = vpop.f32.mrf.mxu3 }
  0xa9   : > { %6744 = vst [vmem:[#allocation37_spill] sm:$0xff] %v4972_v4  ;;  %v4976_v31 = vpop.f32.mrf.mxu0  ;;  %v4978_v44 = vpop.f32.mrf.mxu1 }
  0xaa   : > { %6745 = vst [vmem:[#allocation38_spill] sm:$0xff] %v4974_v5 }
  0xab   : > { %6746 = vst [vmem:[#allocation39_spill] sm:$0xff] %v4976_v31 }
  0xac   : > { %6747 = vst [vmem:[#allocation40_spill] sm:$0xff] %v4978_v44  ;;  %v4997_v44 = vperm.slane %v712_v1, 2 }
  0xae   : > { %6754 = vst [vmem:[#allocation47_spill] sm:$0xff] %v4997_v44 }
  0xb0   : > { %v4987_v60 = vpop.f32.mrf.mxu2  ;;  %v4989_v2 = vpop.f32.mrf.mxu3 }
  0xb1   : > { %6750 = vst [vmem:[#allocation43_spill] sm:$0xff] %v4987_v60  ;;  %v788_v3 = vpop.f32.mrf.mxu0  ;;  %v829_v4 = vpop.f32.mrf.mxu1 }
  0xb2   : > { %6751 = vst [vmem:[#allocation44_spill] sm:$0xff] %v4989_v2  ;;  %v4992_v5 = vadd.f32 %v788_v3, %v4983_v57  ;;  %v4995_v31 = vadd.f32 %v829_v4, %v4985_v61 }
  0xb4   : > { %6752 = vst [vmem:[#allocation45_spill] sm:$0xff] %v4992_v5 }
  0xb5   : > { %6753 = vst [vmem:[#allocation46_spill] sm:$0xff] %v4995_v31 }
  0xb8   : > { %v870_v58 = vpop.f32.mrf.mxu2  ;;  %v911_v56 = vpop.f32.mrf.mxu3 }
  0xb9   : > { %v5002_v55 = vadd.f32 %v870_v58, %v4997_v44  ;;  %v5005_v60 = vadd.f32 %v911_v56, %v4999_v59  ;;  %v791_v2 = vpop.f32.mrf.mxu0  ;;  %v832_v54 = vpop.f32.mrf.mxu1 }
  0xba   : > { %v5008_v3 = vadd.f32 %v791_v2, %v4983_v57  ;;  %v5011_v4 = vadd.f32 %v832_v54, %v4985_v61 }
  0xbb   : > { %6756 = vst [vmem:[#allocation49_spill] sm:$0xff] %v5002_v55 }
  0xbc   : > { %6757 = vst [vmem:[#allocation50_spill] sm:$0xff] %v5005_v60 }
  0xbd   : > { %6758 = vst [vmem:[#allocation51_spill] sm:$0xff] %v5008_v3 }
  0xbe   : > { %6759 = vst [vmem:[#allocation52_spill] sm:$0xff] %v5011_v4 }
  0xc0   : > { %v873_v31 = vpop.f32.mrf.mxu2  ;;  %v914_v5 = vpop.f32.mrf.mxu3 }
  0xc1   : > { %v5014_v1 = vadd.f32 %v873_v31, %v4997_v44  ;;  %v5017_v53 = vadd.f32 %v914_v5, %v4999_v59  ;;  %v794_v58 = vpop.f32.mrf.mxu0  ;;  %v835_v55 = vpop.f32.mrf.mxu1 }
  0xc2   : > { %v5020_v56 = vadd.f32 %v794_v58, %v4983_v57  ;;  %v5023_v60 = vadd.f32 %v835_v55, %v4985_v61 }
  0xc3   : > { %6760 = vst [vmem:[#allocation53_spill] sm:$0xff] %v5014_v1 }
  0xc4   : > { %6761 = vst [vmem:[#allocation54_spill] sm:$0xff] %v5017_v53 }
  0xc5   : > { %6762 = vst [vmem:[#allocation55_spill] sm:$0xff] %v5020_v56 }
  0xc6   : > { %6763 = vst [vmem:[#allocation56_spill] sm:$0xff] %v5023_v60 }
  0xc8   : > { %v876_v2 = vpop.f32.mrf.mxu2  ;;  %v917_v3 = vpop.f32.mrf.mxu3 }
  0xc9   : > { %v5026_v54 = vadd.f32 %v876_v2, %v4997_v44  ;;  %v5029_v4 = vadd.f32 %v917_v3, %v4999_v59  ;;  %v797_v31 = vpop.f32.mrf.mxu0  ;;  %v838_v1 = vpop.f32.mrf.mxu1 }
  0xca   : > { %v5032_v5 = vadd.f32 %v797_v31, %v4983_v57  ;;  %v5035_v53 = vadd.f32 %v838_v1, %v4985_v61  ;;  %v780_v31 = vadd.f32 %v779_v63, %v4983_v57  ;;  %v821_v1 = vadd.f32 %v820_v0, %v4985_v61 }
  0xcb   : > { %6764 = vst [vmem:[#allocation57_spill] sm:$0xff] %v5026_v54  ;;  %v862_v63 = vadd.f32 %v4964_v62, %v4997_v44 }
  0xcc   : > { %6765 = vst [vmem:[#allocation58_spill] sm:$0xff] %v5029_v4 }
  0xcd   : > { %6766 = vst [vmem:[#allocation59_spill] sm:$0xff] %v5032_v5 }
  0xce   : > { %6767 = vst [vmem:[#allocation60_spill] sm:$0xff] %v5035_v53 }
  0xd0   : > { %v879_v58 = vpop.f32.mrf.mxu2  ;;  %v920_v56 = vpop.f32.mrf.mxu3 }
  0xd1   : > { %v5038_v55 = vadd.f32 %v879_v58, %v4997_v44  ;;  %v5041_v60 = vadd.f32 %v920_v56, %v4999_v59  ;;  %v800_v2 = vpop.f32.mrf.mxu0  ;;  %v841_v54 = vpop.f32.mrf.mxu1 }
  0xd2   : > { %v5044_v3 = vadd.f32 %v800_v2, %v4983_v57  ;;  %v5047_v4 = vadd.f32 %v841_v54, %v4985_v61 }
  0xd3   : > { %6768 = vst [vmem:[#allocation61_spill] sm:$0xff] %v5038_v55 }
  0xd4   : > { %6769 = vst [vmem:[#allocation62_spill] sm:$0xff] %v5041_v60 }
  0xd5   : > { %6770 = vst [vmem:[#allocation63_spill] sm:$0xff] %v5044_v3 }
  0xd6   : > { %6771 = vst [vmem:[#allocation64_spill] sm:$0xff] %v5047_v4 }
  0xd8   : > { %v882_v53 = vpop.f32.mrf.mxu2  ;;  %v923_v5 = vpop.f32.mrf.mxu3 }
  0xd9   : > { %v5052_v58 = vadd.f32 %v882_v53, %v4997_v44  ;;  %v5055_v56 = vadd.f32 %v923_v5, %v4999_v59  ;;  %v979_v60 = vpop.f32.mrf.mxu0  ;;  %v999_v55 = vpop.f32.mrf.mxu1 }
  0xda   : > { %v1042_v52 = vadd.f32 %v979_v60, %v780_v31  ;;  %v1043_v2 = vadd.f32 %v999_v55, %v821_v1 }
  0xdb   : > { %6772 = vst [vmem:[#allocation65_spill] sm:$0xff] %v5052_v58 }
  0xdc   : > { %6773 = vst [vmem:[#allocation66_spill] sm:$0xff] %v5055_v56  ;;  %v3885_v3 = vmul.f32 -1.442695, %v1042_v52  ;;  %v3886_v51 = vmul.f32 -1.442695, %v1043_v2  ;;  %v903_v52 = vadd.f32 %v4966_v18, %v4999_v59 }
  0xde   : > { %4011 = vpow2.f32 %v3885_v3 }
  0xdf   : > { %4013 = vpow2.f32 %v3886_v51 }
  0xe0   : > { %v1019_v0 = vpop.f32.mrf.mxu2  ;;  %v1039_v56 = vpop.f32.mrf.mxu3 }
  0xe1   : > { %v1044_v54 = vadd.f32 %v1019_v0, %v862_v63  ;;  %v1045_v31 = vadd.f32 %v1039_v56, %v903_v52 }
  0xe3   : > { %v3887_v4 = vmul.f32 -1.442695, %v1044_v54 }
  0xe4   : > { %v4012_v61 = vpop.eup %4011 }
  0xe5   : > { %v4014_v53 = vpop.eup %4013  ;;  %v1055_v58 = vadd.f32 1.0, %v4012_v61  ;;  %4015 = vpow2.f32 %v3887_v4 }
  0xe6   : > { %v1056_v5 = vadd.f32 1.0, %v4014_v53 }
  0xe7   : > { %4017 = vrcp.f32 %v1055_v58  ;;  %v1069_v0 = vand.u32 2147483648, %v1055_v58  ;;  %v1067_v54 = vand.u32 2147483647, %v1055_v58  ;;  %vm1063_vm4 = vweird.f32 %v1055_v58 }
  0xe8   : > { %4019 = vrcp.f32 %v1056_v5  ;;  %v1084_v61 = vand.u32 2147483648, %v1056_v5  ;;  %v1082_v44 = vand.u32 2147483647, %v1056_v5  ;;  %vm1078_vm5 = vweird.f32 %v1056_v5 }
  0xe9   : > { %vm1068_vm7 = vcmp.eq.f32.partialorder %v1067_v54, 8.507059e+37 }
  0xea   : > { %v1085_v59 = vor.u32 1.1754944e-38, %v1084_v61  ;;  %vm1083_vm9 = vcmp.eq.f32.partialorder %v1082_v44, 8.507059e+37 }
  0xeb   : > { %v4016_v60 = vpop.eup %4015 }
  0xec   : > { %v1057_v55 = vadd.f32 1.0, %v4016_v60  ;;  %v1070_v60 = vor.u32 1.1754944e-38, %v1069_v0 }
  0xed   : > { %v4018_v3 = vpop.eup %4017 }
  0xee   : > { %v4020_v62 = vpop.eup %4019  ;;  %v1059_v51 = vmul.f32 %v4018_v3, %v1055_v58  ;;  %4021 = vrcp.f32 %v1057_v55  ;;  %vm1064_vm2 = vweird.f32 %v4018_v3  ;;  %vm1093_vm11 = vweird.f32 %v1057_v55 }
  0xef   : > { %v1074_v1 = vmul.f32 %v4020_v62, %v1056_v5  ;;  %4023 = vtanh.f32 %v1045_v31  ;;  %vm1079_vm3 = vweird.f32 %v4020_v62  ;;  %vm1065_vm6 = vmor %vm1063_vm4, %vm1064_vm2  ;;  %v1099_v5 = vand.u32 2147483648, %v1057_v55 }
  0xf0   : > { %v1060_v2 = vsub.f32 1.0, %v1059_v51  ;;  %vm1080_vm8 = vmor %vm1078_vm5, %vm1079_vm3 }
  0xf1   : > { %v1075_v63 = vsub.f32 1.0, %v1074_v1  ;;  %v1100_v61 = vor.u32 1.1754944e-38, %v1099_v5 }
  0xf2   : > { %v1061_v4 = vmul.f32 %v4018_v3, %v1060_v2 }
  0xf3   : > { %v1076_v53 = vmul.f32 %v4020_v62, %v1075_v63 }
  0xf4   : > { %v4022_v57 = vpop.eup %4021  ;;  %v1062_v18 = vadd.f32 %v4018_v3, %v1061_v4 }
  0xf5   : > { %v1089_v56 = vmul.f32 %v4022_v57, %v1057_v55  ;;  %v1077_v52 = vadd.f32 %v4020_v62, %v1076_v53  ;;  %v4024_v31 = vpop.eup %4023  ;;  %vm1094_vm10 = vweird.f32 %v4022_v57 }
  0xf6   : > { %v1066_v51 = vsel %vm1065_vm6, %v4018_v3, %v1062_v18  ;;  %v1097_v3 = vand.u32 2147483647, %v1057_v55  ;;  %vm1095_vm12 = vmor %vm1093_vm11, %vm1094_vm10 }
  0xf7   : > { %v1090_v1 = vsub.f32 1.0, %v1089_v56  ;;  %v1071_v2 = vsel %vm1068_vm7, %v1070_v60, %v1066_v51  ;;  %v1081_v50 = vsel %vm1080_vm8, %v4020_v62, %v1077_v52  ;;  %v6806_v51 = vld [vmem:[#allocation48_spill] sm:$0xff] }
  0xf8   : > { %v1086_v63 = vsel %vm1083_vm9, %v1085_v59, %v1081_v50  ;;  %v1105_v49 = vmul.f32 %v4024_v31, %v1071_v2  ;;  %vm1098_vm13 = vcmp.eq.f32.partialorder %v1097_v3, 8.507059e+37  ;;  %v6807_v31 = vld [vmem:[#allocation38_spill] sm:$0xff] }
  0xf9   : > { %v1104_v48 = vmul.f32 0.0, %v1086_v63  ;;  %v1091_v47 = vmul.f32 %v4022_v57, %v1090_v1  ;;  %v906_v1 = vadd.f32 %v6807_v31, %v6806_v51  ;;  %v5164_v31 = vld [vmem:[#allocation3 + $0x1a0] sm:$0xff] }
  0xfb   : > { %v5061_v4 = vadd.f32 %v1105_v49, %v1104_v48  ;;  %v1092_v58 = vadd.f32 %v4022_v57, %v1091_v47  ;;  %v6804_v47 = vld [vmem:[#allocation47_spill] sm:$0xff]  ;;  %v6805_v48 = vld [vmem:[#allocation37_spill] sm:$0xff] }
  0xfc   : > { %v865_v49 = vadd.f32 %v6805_v48, %v6804_v47 }
  0xfd   : > { %4025 = vtanh.f32 %v5061_v4  ;;  %v1096_v0 = vsel %vm1095_vm12, %v4022_v57, %v1092_v58 }
  0xfe   : > { %v1101_v62 = vsel %vm1098_vm13, %v1100_v61, %v1096_v0 }
 0x103   : > { %v4026_v54 = vpop.eup %4025 }
 0x104   : > { %v1108_v44 = vmul.f32 %v4026_v54, %v1101_v62 }
 0x106   : > { %1129 = vmatmul.f32.vlgmr.msra.gmra.mxu0 %v1108_v44  ;;  %1149 = vmatmul.f32.vlgmr.msra.gmra.mxu1 %v1108_v44 }
 0x107   : > { %1169 = vmatmul.f32.vlgmr.msra.gmra.mxu2 %v1108_v44  ;;  %1189 = vmatmul.f32.vlgmr.msra.gmra.mxu3 %v1108_v44 }
 0x108   : > { %1415 = vmatpush.msra.mxu0 %v4605_v6  ;;  %1435 = vmatpush.msra.mxu1 %v4607_v7  ;;  %v6774_v6 = vld [vmem:[#allocation9_spill] sm:$0xff]  ;;  %v6775_v7 = vld [vmem:[#allocation10_spill] sm:$0xff] }
 0x109   : > { %1455 = vmatpush.msra.mxu2 %v4611_v8  ;;  %1475 = vmatpush.msra.mxu3 %v4613_v9  ;;  %v6776_v8 = vld [vmem:[#allocation11_spill] sm:$0xff]  ;;  %v6777_v9 = vld [vmem:[#allocation12_spill] sm:$0xff] }
 0x10a   : > { %1416 = vmatpush.msra.mxu0 %v4617_v10  ;;  %1436 = vmatpush.msra.mxu1 %v4619_v11  ;;  %v6778_v10 = vld [vmem:[#allocation13_spill] sm:$0xff]  ;;  %v6779_v11 = vld [vmem:[#allocation14_spill] sm:$0xff] }
 0x10b   : > { %1456 = vmatpush.msra.mxu2 %v4623_v12  ;;  %1476 = vmatpush.msra.mxu3 %v4625_v13  ;;  %v6780_v12 = vld [vmem:[#allocation15_spill] sm:$0xff]  ;;  %v6781_v13 = vld [vmem:[#allocation16_spill] sm:$0xff] }
 0x10c   : > { %1417 = vmatpush.msra.mxu0 %v4628_v14  ;;  %1437 = vmatpush.msra.mxu1 %v4630_v15  ;;  %v6782_v14 = vld [vmem:[#allocation17_spill] sm:$0xff]  ;;  %v6783_v15 = vld [vmem:[#allocation18_spill] sm:$0xff] }
 0x10d   : > { %1457 = vmatpush.msra.mxu2 %v4635_v16  ;;  %1477 = vmatpush.msra.mxu3 %v4637_v17  ;;  %v6784_v16 = vld [vmem:[#allocation19_spill] sm:$0xff]  ;;  %v6785_v17 = vld [vmem:[#allocation20_spill] sm:$0xff] }
 0x10e   : > { %1418 = vmatpush.msra.mxu0 %v4644_v19  ;;  %1438 = vmatpush.msra.mxu1 %v4646_v20  ;;  %v6786_v19 = vld [vmem:[#allocation21_spill] sm:$0xff]  ;;  %v6787_v20 = vld [vmem:[#allocation22_spill] sm:$0xff] }
 0x10f   : > { %1458 = vmatpush.msra.mxu2 %v4652_v21  ;;  %1478 = vmatpush.msra.mxu3 %v4654_v22  ;;  %v6788_v21 = vld [vmem:[#allocation23_spill] sm:$0xff]  ;;  %v6789_v22 = vld [vmem:[#allocation24_spill] sm:$0xff] }
 0x110   : > { %1419 = vmatpush.msra.mxu0 %v4658_v23  ;;  %1439 = vmatpush.msra.mxu1 %v4660_v24  ;;  %v6790_v23 = vld [vmem:[#allocation25_spill] sm:$0xff]  ;;  %v6791_v24 = vld [vmem:[#allocation26_spill] sm:$0xff] }
 0x111   : > { %1459 = vmatpush.msra.mxu2 %v4664_v25  ;;  %1479 = vmatpush.msra.mxu3 %v4666_v26  ;;  %v6792_v25 = vld [vmem:[#allocation27_spill] sm:$0xff]  ;;  %v6793_v26 = vld [vmem:[#allocation28_spill] sm:$0xff] }
 0x112   : > { %1420 = vmatpush.msra.mxu0 %v4669_v27  ;;  %1440 = vmatpush.msra.mxu1 %v4671_v28  ;;  %v6794_v27 = vld [vmem:[#allocation29_spill] sm:$0xff]  ;;  %v6795_v28 = vld [vmem:[#allocation30_spill] sm:$0xff] }
 0x113   : > { %1460 = vmatpush.msra.mxu2 %v4676_v29  ;;  %1480 = vmatpush.msra.mxu3 %v4678_v30  ;;  %v6796_v29 = vld [vmem:[#allocation31_spill] sm:$0xff]  ;;  %v6797_v30 = vld [vmem:[#allocation32_spill] sm:$0xff] }
 0x114   : > { %1421 = vmatpush.msra.mxu0 %v4685_v32  ;;  %1441 = vmatpush.msra.mxu1 %v4687_v33  ;;  %v6798_v32 = vld [vmem:[#allocation33_spill] sm:$0xff]  ;;  %v6799_v33 = vld [vmem:[#allocation34_spill] sm:$0xff] }
 0x115   : > { %1461 = vmatpush.msra.mxu2 %v4693_v34  ;;  %1481 = vmatpush.msra.mxu3 %v4695_v35  ;;  %v6800_v34 = vld [vmem:[#allocation41_spill] sm:$0xff]  ;;  %v6801_v35 = vld [vmem:[#allocation35_spill] sm:$0xff] }
 0x116   : > { %1422 = vmatpush.msra.mxu0 %v4699_v36  ;;  %1442 = vmatpush.msra.mxu1 %v4701_v37  ;;  %v783_v36 = vadd.f32 %v6801_v35, %v6800_v34  ;;  %v6802_v37 = vld [vmem:[#allocation42_spill] sm:$0xff] }
 0x117   : > { %1462 = vmatpush.msra.mxu2 %v4705_v38  ;;  %1482 = vmatpush.msra.mxu3 %v4707_v39  ;;  %v6803_v38 = vld [vmem:[#allocation36_spill] sm:$0xff] }
 0x118   : > { %1423 = vmatpush.msra.mxu0 %v4710_v40  ;;  %1443 = vmatpush.msra.mxu1 %v4712_v41  ;;  %v824_v39 = vadd.f32 %v6803_v38, %v6802_v37 }
 0x119   : > { %1463 = vmatpush.msra.mxu2 %v4717_v42  ;;  %1483 = vmatpush.msra.mxu3 %v4719_v43 }
 0x11a   : > { %1424 = vmatpush.msra.mxu0 %v4726_v45  ;;  %1444 = vmatpush.msra.mxu1 %v4728_v46 }
 0x11b   : > { %1464 = vmatpush.msra.mxu2 %v6774_v6  ;;  %1484 = vmatpush.msra.mxu3 %v6775_v7 }
 0x11c   : > { %1425 = vmatpush.msra.mxu0 %v6776_v8  ;;  %1445 = vmatpush.msra.mxu1 %v6777_v9 }
 0x11d   : > { %1465 = vmatpush.msra.mxu2 %v6778_v10  ;;  %1485 = vmatpush.msra.mxu3 %v6779_v11 }
 0x11e   : > { %1426 = vmatpush.msra.mxu0 %v6780_v12  ;;  %1446 = vmatpush.msra.mxu1 %v6781_v13 }
 0x11f   : > { %1466 = vmatpush.msra.mxu2 %v6782_v14  ;;  %1486 = vmatpush.msra.mxu3 %v6783_v15 }
 0x120   : > { %1427 = vmatpush.msra.mxu0 %v6784_v16  ;;  %1447 = vmatpush.msra.mxu1 %v6785_v17 }
 0x121   : > { %1467 = vmatpush.msra.mxu2 %v6786_v19  ;;  %1487 = vmatpush.msra.mxu3 %v6787_v20 }
 0x122   : > { %1428 = vmatpush.msra.mxu0 %v6788_v21  ;;  %1448 = vmatpush.msra.mxu1 %v6789_v22 }
 0x123   : > { %1468 = vmatpush.msra.mxu2 %v6790_v23  ;;  %1488 = vmatpush.msra.mxu3 %v6791_v24 }
 0x124   : > { %1429 = vmatpush.msra.mxu0 %v6792_v25  ;;  %1449 = vmatpush.msra.mxu1 %v6793_v26 }
 0x125   : > { %1469 = vmatpush.msra.mxu2 %v6794_v27  ;;  %1489 = vmatpush.msra.mxu3 %v6795_v28 }
 0x126   : > { %1430 = vmatpush.msra.mxu0 %v6796_v29  ;;  %1450 = vmatpush.msra.mxu1 %v6797_v30 }
 0x127   : > { %1470 = vmatpush.msra.mxu2 %v6798_v32  ;;  %1490 = vmatpush.msra.mxu3 %v6799_v33 }
 0x183   : > { %v1130_v40 = vpop.f32.mrf.mxu0  ;;  %v1150_v41 = vpop.f32.mrf.mxu1 }
 0x184   : > { %v1193_v42 = vadd.f32 %v1130_v40, %v783_v36  ;;  %v1194_v43 = vadd.f32 %v1150_v41, %v824_v39 }
 0x186   : > { %v3888_v45 = vmul.f32 -1.442695, %v1193_v42  ;;  %v3889_v46 = vmul.f32 -1.442695, %v1194_v43 }
 0x188   : > { %4027 = vpow2.f32 %v3888_v45 }
 0x189   : > { %4029 = vpow2.f32 %v3889_v46 }
 0x18a   : > { %v1170_v50 = vpop.f32.mrf.mxu2  ;;  %v1190_v60 = vpop.f32.mrf.mxu3 }
 0x18b   : > { %v1195_v59 = vadd.f32 %v1170_v50, %v865_v49  ;;  %v1196_v58 = vadd.f32 %v1190_v60, %v906_v1  ;;  %v5158_v60 = vld [vmem:[#allocation3 + $0x1d0] sm:$0xff]  ;;  %v5167_v1 = vld [vmem:[#allocation3 + $0x1a8] sm:$0xff] }
 0x18d   : > { %v3890_v57 = vmul.f32 -1.442695, %v1195_v59 }
 0x18e   : > { %v4028_v55 = vpop.eup %4027 }
 0x18f   : > { %v4030_v53 = vpop.eup %4029  ;;  %v1206_v18 = vadd.f32 1.0, %v4028_v55  ;;  %4031 = vpow2.f32 %v3890_v57  ;;  %v5143_v57 = vld [vmem:[#allocation3 + $0x1e8] sm:$0xff]  ;;  %v5146_v55 = vld [vmem:[#allocation3 + $0x1f0] sm:$0xff] }
 0x190   : > { %v1207_v56 = vadd.f32 1.0, %v4030_v53  ;;  %v5149_v53 = vld [vmem:[#allocation3 + $0x1f8] sm:$0xff] }
 0x191   : > { %4033 = vrcp.f32 %v1206_v18  ;;  %v1220_v62 = vand.u32 2147483648, %v1206_v18  ;;  %v1218_v7 = vand.u32 2147483647, %v1206_v18  ;;  %vm1214_vm2 = vweird.f32 %v1206_v18 }
 0x192   : > { %4035 = vrcp.f32 %v1207_v56  ;;  %v1235_v44 = vand.u32 2147483648, %v1207_v56  ;;  %v1233_v9 = vand.u32 2147483647, %v1207_v56  ;;  %vm1229_vm3 = vweird.f32 %v1207_v56 }
 0x193   : > { %v1221_v13 = vor.u32 1.1754944e-38, %v1220_v62  ;;  %vm1219_vm6 = vcmp.eq.f32.partialorder %v1218_v7, 8.507059e+37  ;;  %v5194_v62 = vld [vmem:[#allocation3 + $0x170] sm:$0xff]  ;;  %v5203_v7 = vld [vmem:[#allocation3 + $0x148] sm:$0xff] }
 0x194   : > { %v1236_v15 = vor.u32 1.1754944e-38, %v1235_v44  ;;  %vm1234_vm7 = vcmp.eq.f32.partialorder %v1233_v9, 8.507059e+37  ;;  %v5197_v44 = vld [vmem:[#allocation3 + $0x178] sm:$0xff] }
 0x195   : > { %v4032_v52 = vpop.eup %4031  ;;  %v5209_v9 = vld [vmem:[#allocation3 + $0x158] sm:$0xff] }
 0x196   : > { %v1208_v2 = vadd.f32 1.0, %v4032_v52  ;;  %v5161_v52 = vld [vmem:[#allocation3 + $0x1d8] sm:$0xff] }
 0x197   : > { %v4034_v63 = vpop.eup %4033 }
 0x198   : > { %v4036_v5 = vpop.eup %4035  ;;  %v1210_v3 = vmul.f32 %v4034_v63, %v1206_v18  ;;  %4037 = vrcp.f32 %v1208_v2  ;;  %vm1215_vm14 = vweird.f32 %v4034_v63  ;;  %v1250_v43 = vand.u32 2147483648, %v1208_v2  ;;  %v5152_v18 = vld [vmem:[#allocation3 + $0x1c0] sm:$0xff] }
 0x199   : > { %v1225_v0 = vmul.f32 %v4036_v5, %v1207_v56  ;;  %4039 = vtanh.f32 %v1196_v58  ;;  %vm1230_vm15 = vweird.f32 %v4036_v5  ;;  %vm1216_vm4 = vmor %vm1214_vm2, %vm1215_vm14  ;;  %vm1244_vm9 = vweird.f32 %v1208_v2  ;;  %v5155_v56 = vld [vmem:[#allocation3 + $0x1c8] sm:$0xff]  ;;  %v5176_v58 = vld [vmem:[#allocation3 + $0x180] sm:$0xff] }
 0x19a   : > { %v1211_v61 = vsub.f32 1.0, %v1210_v3  ;;  %vm1231_vm5 = vmor %vm1229_vm3, %vm1230_vm15  ;;  %v1248_v45 = vand.u32 2147483647, %v1208_v2  ;;  %v1251_v48 = vor.u32 1.1754944e-38, %v1250_v43  ;;  %v5182_v3 = vld [vmem:[#allocation3 + $0x190] sm:$0xff]  ;;  %v5260_v43 = vld [vmem:[#allocation3 + $0xa0] sm:$0xff] }
 0x19b   : > { %v1226_v54 = vsub.f32 1.0, %v1225_v0  ;;  %v5185_v0 = vld [vmem:[#allocation3 + $0x198] sm:$0xff]  ;;  %6810 = vst [vmem:[#allocation11_spill] sm:$0xff] %v5260_v43 }
 0x19c   : > { %v1212_v6 = vmul.f32 %v4034_v63, %v1211_v61  ;;  %vm1249_vm11 = vcmp.eq.f32.partialorder %v1248_v45, 8.507059e+37  ;;  %v5188_v61 = vld [vmem:[#allocation3 + $0x160] sm:$0xff]  ;;  %v5263_v45 = vld [vmem:[#allocation3 + $0xa8] sm:$0xff] }
 0x19d   : > { %v1227_v8 = vmul.f32 %v4036_v5, %v1226_v54  ;;  %v5191_v54 = vld [vmem:[#allocation3 + $0x168] sm:$0xff]  ;;  %6811 = vst [vmem:[#allocation12_spill] sm:$0xff] %v5263_v45 }
 0x19e   : > { %v4038_v10 = vpop.eup %4037  ;;  %v1213_v11 = vadd.f32 %v4034_v63, %v1212_v6  ;;  %v5200_v6 = vld [vmem:[#allocation3 + $0x140] sm:$0xff] }
 0x19f   : > { %v1240_v12 = vmul.f32 %v4038_v10, %v1208_v2  ;;  %v1228_v14 = vadd.f32 %v4036_v5, %v1227_v8  ;;  %v4040_v17 = vpop.eup %4039  ;;  %vm1245_vm8 = vweird.f32 %v4038_v10  ;;  %v5170_v2 = vld [vmem:[#allocation3 + $0x1b0] sm:$0xff] }
 0x1a0   : > { %v1217_v16 = vsel %vm1216_vm4, %v4034_v63, %v1213_v11  ;;  %vm1246_vm10 = vmor %vm1244_vm9, %vm1245_vm8  ;;  %v5173_v63 = vld [vmem:[#allocation3 + $0x1b8] sm:$0xff]  ;;  %v5206_v8 = vld [vmem:[#allocation3 + $0x150] sm:$0xff] }
 0x1a1   : > { %v1241_v19 = vsub.f32 1.0, %v1240_v12  ;;  %v1222_v20 = vsel %vm1219_vm6, %v1221_v13, %v1217_v16  ;;  %v1232_v35 = vsel %vm1231_vm5, %v4036_v5, %v1228_v14  ;;  %v5179_v5 = vld [vmem:[#allocation3 + $0x188] sm:$0xff]  ;;  %v5218_v12 = vld [vmem:[#allocation3 + $0x130] sm:$0xff]  ;;  %v5221_v13 = vld [vmem:[#allocation3 + $0x138] sm:$0xff] }
 0x1a2   : > { %v1237_v36 = vsel %vm1234_vm7, %v1236_v15, %v1232_v35  ;;  %v1256_v38 = vmul.f32 %v4040_v17, %v1222_v20  ;;  %v5215_v11 = vld [vmem:[#allocation3 + $0x128] sm:$0xff]  ;;  %v5224_v14 = vld [vmem:[#allocation3 + $0x100] sm:$0xff]  ;;  %v5230_v16 = vld [vmem:[#allocation3 + $0x110] sm:$0xff] }
 0x1a3   : > { %v1255_v39 = vmul.f32 %v1237_v36, %v5061_v4  ;;  %v1242_v40 = vmul.f32 %v4038_v10, %v1241_v19  ;;  %v5140_v4 = vld [vmem:[#allocation3 + $0x1e0] sm:$0xff]  ;;  %v5227_v15 = vld [vmem:[#allocation3 + $0x108] sm:$0xff]  ;;  %v5233_v17 = vld [vmem:[#allocation3 + $0x118] sm:$0xff] }
 0x1a4   : > { %v5236_v19 = vld [vmem:[#allocation3 + $0xe0] sm:$0xff]  ;;  %v5239_v20 = vld [vmem:[#allocation3 + $0xe8] sm:$0xff]  ;;  %v5242_v35 = vld [vmem:[#allocation3 + $0xf0] sm:$0xff] }
 0x1a5   : > { %v5137_v41 = vadd.f32 %v1256_v38, %v1255_v39  ;;  %v1243_v42 = vadd.f32 %v4038_v10, %v1242_v40  ;;  %v5245_v36 = vld [vmem:[#allocation3 + $0xf8] sm:$0xff]  ;;  %v5248_v38 = vld [vmem:[#allocation3 + $0xc0] sm:$0xff]  ;;  %v5251_v39 = vld [vmem:[#allocation3 + $0xc8] sm:$0xff] }
 0x1a6   : > { %v5254_v40 = vld [vmem:[#allocation3 + $0xd0] sm:$0xff] }
 0x1a7   : > { %4041 = vtanh.f32 %v5137_v41  ;;  %v1247_v46 = vsel %vm1246_vm10, %v4038_v10, %v1243_v42  ;;  %v5212_v10 = vld [vmem:[#allocation3 + $0x120] sm:$0xff]  ;;  %6808 = vst [vmem:[#allocation9_spill] sm:$0xff] %v5254_v40  ;;  %v5257_v42 = vld [vmem:[#allocation3 + $0xd8] sm:$0xff] }
 0x1a8   : > { %v1252_v50 = vsel %vm1249_vm11, %v1251_v48, %v1247_v46  ;;  %6809 = vst [vmem:[#allocation10_spill] sm:$0xff] %v5257_v42  ;;  %v5266_v46 = vld [vmem:[#allocation3 + $0xb0] sm:$0xff]  ;;  %v5269_v48 = vld [vmem:[#allocation3 + $0xb8] sm:$0xff] }
 0x1a9   : > { %6812 = vst [vmem:[#allocation13_spill] sm:$0xff] %v5266_v46 }
 0x1aa   : > { %6813 = vst [vmem:[#allocation14_spill] sm:$0xff] %v5269_v48 }
 0x1ad   : > { %v4042_v49 = vpop.eup %4041 }
 0x1ae   : > { %v1259_v59 = vmul.f32 %v4042_v49, %v1252_v50  ;;  %v5272_v49 = vld [vmem:[#allocation3 + $0x80] sm:$0xff]  ;;  %v5275_v50 = vld [vmem:[#allocation3 + $0x88] sm:$0xff] }
 0x1af   : > { %6814 = vst [vmem:[#allocation15_spill] sm:$0xff] %v5272_v49 }
 0x1b0   : > { %1280 = vmatmul.f32.vlgmr.msrb.gmra.mxu0 %v1259_v59  ;;  %1300 = vmatmul.f32.vlgmr.msrb.gmra.mxu1 %v1259_v59  ;;  %6815 = vst [vmem:[#allocation16_spill] sm:$0xff] %v5275_v50 }
 0x1b1   : > { %1320 = vmatmul.f32.vlgmr.msrb.gmra.mxu2 %v1259_v59  ;;  %1340 = vmatmul.f32.vlgmr.msrb.gmra.mxu3 %v1259_v59  ;;  %v5278_v59 = vld [vmem:[#allocation3 + $0x90] sm:$0xff] }
 0x1b2   : > { %1566 = vmatpush.msrb.mxu0 %v5140_v4  ;;  %1586 = vmatpush.msrb.mxu1 %v5143_v57  ;;  %6816 = vst [vmem:[#allocation17_spill] sm:$0xff] %v5278_v59 }
 0x1b3   : > { %1606 = vmatpush.msrb.mxu2 %v5146_v55  ;;  %1626 = vmatpush.msrb.mxu3 %v5149_v53 }
 0x1b4   : > { %1567 = vmatpush.msrb.mxu0 %v5152_v18  ;;  %1587 = vmatpush.msrb.mxu1 %v5155_v56 }
 0x1b5   : > { %1607 = vmatpush.msrb.mxu2 %v5158_v60  ;;  %1627 = vmatpush.msrb.mxu3 %v5161_v52 }
 0x1b6   : > { %1568 = vmatpush.msrb.mxu0 %v5164_v31  ;;  %1588 = vmatpush.msrb.mxu1 %v5167_v1 }
 0x1b7   : > { %1608 = vmatpush.msrb.mxu2 %v5170_v2  ;;  %1628 = vmatpush.msrb.mxu3 %v5173_v63 }
 0x1b8   : > { %1569 = vmatpush.msrb.mxu0 %v5176_v58  ;;  %1589 = vmatpush.msrb.mxu1 %v5179_v5 }
 0x1b9   : > { %1609 = vmatpush.msrb.mxu2 %v5182_v3  ;;  %1629 = vmatpush.msrb.mxu3 %v5185_v0 }
 0x1ba   : > { %1570 = vmatpush.msrb.mxu0 %v5188_v61  ;;  %1590 = vmatpush.msrb.mxu1 %v5191_v54 }
 0x1bb   : > { %1610 = vmatpush.msrb.mxu2 %v5194_v62  ;;  %1630 = vmatpush.msrb.mxu3 %v5197_v44 }
 0x1bc   : > { %1571 = vmatpush.msrb.mxu0 %v5200_v6  ;;  %1591 = vmatpush.msrb.mxu1 %v5203_v7 }
 0x1bd   : > { %1611 = vmatpush.msrb.mxu2 %v5206_v8  ;;  %1631 = vmatpush.msrb.mxu3 %v5209_v9 }
 0x1be   : > { %1572 = vmatpush.msrb.mxu0 %v5212_v10  ;;  %1592 = vmatpush.msrb.mxu1 %v5215_v11 }
 0x1bf   : > { %1612 = vmatpush.msrb.mxu2 %v5218_v12  ;;  %1632 = vmatpush.msrb.mxu3 %v5221_v13 }
 0x1c0   : > { %1573 = vmatpush.msrb.mxu0 %v5224_v14  ;;  %1593 = vmatpush.msrb.mxu1 %v5227_v15 }
 0x1c1   : > { %1613 = vmatpush.msrb.mxu2 %v5230_v16  ;;  %1633 = vmatpush.msrb.mxu3 %v5233_v17 }
 0x1c2   : > { %1574 = vmatpush.msrb.mxu0 %v5236_v19  ;;  %1594 = vmatpush.msrb.mxu1 %v5239_v20 }
 0x1c3   : > { %1614 = vmatpush.msrb.mxu2 %v5242_v35  ;;  %1634 = vmatpush.msrb.mxu3 %v5245_v36 }
 0x1c4   : > { %1575 = vmatpush.msrb.mxu0 %v5248_v38  ;;  %1595 = vmatpush.msrb.mxu1 %v5251_v39 }
 0x1c5   : > { %1615 = vmatpush.msrb.mxu2 %v5254_v40  ;;  %1635 = vmatpush.msrb.mxu3 %v5257_v42 }
 0x1c6   : > { %1576 = vmatpush.msrb.mxu0 %v5260_v43  ;;  %1596 = vmatpush.msrb.mxu1 %v5263_v45  ;;  %v5281_v45 = vld [vmem:[#allocation3 + $0x98] sm:$0xff] }
 0x1c7   : > { %1616 = vmatpush.msrb.mxu2 %v5266_v46  ;;  %1636 = vmatpush.msrb.mxu3 %v5269_v48  ;;  %6817 = vst [vmem:[#allocation18_spill] sm:$0xff] %v5281_v45  ;;  %v5284_v46 = vld [vmem:[#allocation3 + $0x60] sm:$0xff]  ;;  %v5287_v48 = vld [vmem:[#allocation3 + $0x68] sm:$0xff] }
 0x1c8   : > { %1577 = vmatpush.msrb.mxu0 %v5272_v49  ;;  %1597 = vmatpush.msrb.mxu1 %v5275_v50  ;;  %6818 = vst [vmem:[#allocation19_spill] sm:$0xff] %v5284_v46  ;;  %v5290_v49 = vld [vmem:[#allocation3 + $0x70] sm:$0xff]  ;;  %v5293_v50 = vld [vmem:[#allocation3 + $0x78] sm:$0xff] }
 0x1c9   : > { %1617 = vmatpush.msrb.mxu2 %v5278_v59  ;;  %1637 = vmatpush.msrb.mxu3 %v5281_v45  ;;  %6819 = vst [vmem:[#allocation20_spill] sm:$0xff] %v5287_v48 }
 0x1ca   : > { %1578 = vmatpush.msrb.mxu0 %v5284_v46  ;;  %1598 = vmatpush.msrb.mxu1 %v5287_v48  ;;  %6820 = vst [vmem:[#allocation21_spill] sm:$0xff] %v5290_v49 }
 0x1cb   : > { %1618 = vmatpush.msrb.mxu2 %v5290_v49  ;;  %6821 = vst [vmem:[#allocation22_spill] sm:$0xff] %v5293_v50  ;;  %1638 = vmatpush.msrb.mxu3 %v5293_v50 }
 0x1cc   : > { %1579 = vmatpush.msrb.mxu0 %v6788_v21  ;;  %1599 = vmatpush.msrb.mxu1 %v6789_v22  ;;  %v6822_v21 = vld [vmem:[#allocation39_spill] sm:$0xff] }
 0x1cd   : > { %1619 = vmatpush.msrb.mxu2 %v6790_v23  ;;  %1639 = vmatpush.msrb.mxu3 %v6791_v24  ;;  %v786_v22 = vadd.f32 %v6822_v21, %v6800_v34  ;;  %v6823_v23 = vld [vmem:[#allocation40_spill] sm:$0xff] }
 0x1ce   : > { %1580 = vmatpush.msrb.mxu0 %v6792_v25  ;;  %1600 = vmatpush.msrb.mxu1 %v6793_v26  ;;  %v827_v24 = vadd.f32 %v6823_v23, %v6802_v37 }
 0x1cf   : > { %1620 = vmatpush.msrb.mxu2 %v6794_v27  ;;  %1640 = vmatpush.msrb.mxu3 %v6795_v28 }
 0x1d0   : > { %1581 = vmatpush.msrb.mxu0 %v6796_v29  ;;  %1601 = vmatpush.msrb.mxu1 %v6797_v30  ;;  %v6824_v29 = vld [vmem:[#allocation43_spill] sm:$0xff] }
 0x1d1   : > { %1621 = vmatpush.msrb.mxu2 %v6798_v32  ;;  %1641 = vmatpush.msrb.mxu3 %v6799_v33  ;;  %v868_v30 = vadd.f32 %v6824_v29, %v6804_v47 }
 0x22d   : > { %v1281_v25 = vpop.f32.mrf.mxu0  ;;  %v1301_v26 = vpop.f32.mrf.mxu1 }
 0x22e   : > { %v1344_v50 = vadd.f32 %v1281_v25, %v786_v22  ;;  %v1345_v27 = vadd.f32 %v1301_v26, %v827_v24 }
 0x230   : > { %v3891_v49 = vmul.f32 -1.442695, %v1344_v50  ;;  %v3892_v28 = vmul.f32 -1.442695, %v1345_v27  ;;  %v6825_v50 = vld [vmem:[#allocation44_spill] sm:$0xff] }
 0x231   : > { %v909_v23 = vadd.f32 %v6825_v50, %v6806_v51 }
 0x232   : > { %4043 = vpow2.f32 %v3891_v49 }
 0x233   : > { %4045 = vpow2.f32 %v3892_v28 }
 0x234   : > { %v1321_v32 = vpop.f32.mrf.mxu2  ;;  %v1341_v37 = vpop.f32.mrf.mxu3 }
 0x235   : > { %v1346_v48 = vadd.f32 %v1321_v32, %v868_v30  ;;  %v1347_v25 = vadd.f32 %v1341_v37, %v909_v23 }
 0x237   : > { %v3893_v33 = vmul.f32 -1.442695, %v1346_v48 }
 0x238   : > { %v4044_v46 = vpop.eup %4043 }
 0x239   : > { %v4046_v45 = vpop.eup %4045  ;;  %v1357_v34 = vadd.f32 1.0, %v4044_v46  ;;  %4047 = vpow2.f32 %v3893_v33 }
 0x23a   : > { %v1358_v21 = vadd.f32 1.0, %v4046_v45 }
 0x23b   : > { %4049 = vrcp.f32 %v1357_v34  ;;  %v1371_v29 = vand.u32 2147483648, %v1357_v34  ;;  %v1369_v30 = vand.u32 2147483647, %v1357_v34  ;;  %vm1365_vm14 = vweird.f32 %v1357_v34 }
 0x23c   : > { %4051 = vrcp.f32 %v1358_v21  ;;  %v1386_v46 = vand.u32 2147483648, %v1358_v21  ;;  %v1384_v33 = vand.u32 2147483647, %v1358_v21  ;;  %vm1380_vm15 = vweird.f32 %v1358_v21 }
 0x23d   : > { %vm1370_vm4 = vcmp.eq.f32.partialorder %v1369_v30, 8.507059e+37 }
 0x23e   : > { %v1387_v23 = vor.u32 1.1754944e-38, %v1386_v46  ;;  %vm1385_vm5 = vcmp.eq.f32.partialorder %v1384_v33, 8.507059e+37  ;;  %v6831_v33 = vld [vmem:[#allocation14_spill] sm:$0xff] }
 0x23f   : > { %v4048_v22 = vpop.eup %4047 }
 0x240   : > { %v1359_v49 = vadd.f32 1.0, %v4048_v22  ;;  %v1372_v22 = vor.u32 1.1754944e-38, %v1371_v29 }
 0x241   : > { %v4050_v24 = vpop.eup %4049 }
 0x242   : > { %v4052_v47 = vpop.eup %4051  ;;  %v1361_v26 = vmul.f32 %v4050_v24, %v1357_v34  ;;  %4053 = vrcp.f32 %v1359_v49  ;;  %vm1366_vm12 = vweird.f32 %v4050_v24  ;;  %v1401_v29 = vand.u32 2147483648, %v1359_v49 }
 0x243   : > { %v1376_v27 = vmul.f32 %v4052_v47, %v1358_v21  ;;  %4055 = vtanh.f32 %v1347_v25  ;;  %vm1381_vm13 = vweird.f32 %v4052_v47  ;;  %vm1367_vm2 = vmor %vm1365_vm14, %vm1366_vm12  ;;  %vm1395_vm7 = vweird.f32 %v1359_v49 }
 0x244   : > { %v1362_v48 = vsub.f32 1.0, %v1361_v26  ;;  %vm1382_vm3 = vmor %vm1380_vm15, %vm1381_vm13  ;;  %v1402_v30 = vor.u32 1.1754944e-38, %v1401_v29  ;;  %v5384_v29 = vld [vmem:[#allocation3 + $0x20] sm:$0xff] }
 0x245   : > { %v1377_v28 = vsub.f32 1.0, %v1376_v27  ;;  %6844 = vst [vmem:[#allocation27_spill] sm:$0xff] %v5384_v29 }
 0x246   : > { %v1363_v45 = vmul.f32 %v4050_v24, %v1362_v48 }
 0x247   : > { %v1378_v32 = vmul.f32 %v4052_v47, %v1377_v28 }
 0x248   : > { %v4054_v59 = vpop.eup %4053  ;;  %v1364_v51 = vadd.f32 %v4050_v24, %v1363_v45 }
 0x249   : > { %v1391_v37 = vmul.f32 %v4054_v59, %v1359_v49  ;;  %v1379_v50 = vadd.f32 %v4052_v47, %v1378_v32  ;;  %v4056_v25 = vpop.eup %4055  ;;  %vm1396_vm6 = vweird.f32 %v4054_v59 }
 0x24a   : > { %v1368_v26 = vsel %vm1367_vm2, %v4050_v24, %v1364_v51  ;;  %v1399_v24 = vand.u32 2147483647, %v1359_v49  ;;  %vm1397_vm8 = vmor %vm1395_vm7, %vm1396_vm6  ;;  %v6830_v49 = vld [vmem:[#allocation13_spill] sm:$0xff]  ;;  %v6832_v51 = vld [vmem:[#allocation15_spill] sm:$0xff] }
 0x24b   : > { %v1392_v27 = vsub.f32 1.0, %v1391_v37  ;;  %v1373_v48 = vsel %vm1370_vm4, %v1372_v22, %v1368_v26  ;;  %v1383_v43 = vsel %vm1382_vm3, %v4052_v47, %v1379_v50  ;;  %v6833_v37 = vld [vmem:[#allocation16_spill] sm:$0xff]  ;;  %v6834_v22 = vld [vmem:[#allocation17_spill] sm:$0xff]  ;;  %v6835_v50 = vld [vmem:[#allocation18_spill] sm:$0xff] }
 0x24c   : > { %v1388_v28 = vsel %vm1385_vm5, %v1387_v23, %v1383_v43  ;;  %v1407_v42 = vmul.f32 %v4056_v25, %v1373_v48  ;;  %vm1400_vm9 = vcmp.eq.f32.partialorder %v1399_v24, 8.507059e+37  ;;  %v6836_v23 = vld [vmem:[#allocation19_spill] sm:$0xff]  ;;  %v6837_v26 = vld [vmem:[#allocation20_spill] sm:$0xff]  ;;  %v6838_v25 = vld [vmem:[#allocation21_spill] sm:$0xff] }
 0x24d   : > { %v1406_v40 = vmul.f32 %v1388_v28, %v5137_v41  ;;  %v1393_v45 = vmul.f32 %v4054_v59, %v1392_v27  ;;  %v6826_v41 = vld [vmem:[#allocation9_spill] sm:$0xff]  ;;  %v6839_v27 = vld [vmem:[#allocation22_spill] sm:$0xff] }
 0x24e   : > { %v5372_v48 = vld [vmem:[#allocation3 + $0x40] sm:$0xff]  ;;  %v5375_v28 = vld [vmem:[#allocation3 + $0x48] sm:$0xff] }
 0x24f   : > { %v5317_v34 = vadd.f32 %v1407_v42, %v1406_v40  ;;  %v1394_v21 = vadd.f32 %v4054_v59, %v1393_v45  ;;  %v6827_v40 = vld [vmem:[#allocation10_spill] sm:$0xff]  ;;  %v6828_v42 = vld [vmem:[#allocation11_spill] sm:$0xff]  ;;  %6840 = vst [vmem:[#allocation23_spill] sm:$0xff] %v5372_v48 }
 0x250   : > { %6841 = vst [vmem:[#allocation24_spill] sm:$0xff] %v5375_v28  ;;  %v5378_v45 = vld [vmem:[#allocation3 + $0x50] sm:$0xff]  ;;  %v5387_v24 = vld [vmem:[#allocation3 + $0x28] sm:$0xff] }
 0x251   : > { %4057 = vtanh.f32 %v5317_v34  ;;  %v1398_v46 = vsel %vm1397_vm8, %v4054_v59, %v1394_v21  ;;  %v6829_v59 = vld [vmem:[#allocation12_spill] sm:$0xff]  ;;  %6842 = vst [vmem:[#allocation25_spill] sm:$0xff] %v5378_v45 }
 0x252   : > { %v1403_v32 = vsel %vm1400_vm9, %v1402_v30, %v1398_v46  ;;  %v5381_v21 = vld [vmem:[#allocation3 + $0x58] sm:$0xff]  ;;  %6845 = vst [vmem:[#allocation28_spill] sm:$0xff] %v5387_v24  ;;  %v5390_v46 = vld [vmem:[#allocation3 + $0x30] sm:$0xff] }
 0x253   : > { %6843 = vst [vmem:[#allocation26_spill] sm:$0xff] %v5381_v21  ;;  %v5393_v30 = vld [vmem:[#allocation3 + $0x38] sm:$0xff] }
 0x254   : > { %6846 = vst [vmem:[#allocation29_spill] sm:$0xff] %v5390_v46 }
 0x255   : > { %6847 = vst [vmem:[#allocation30_spill] sm:$0xff] %v5393_v30 }
 0x257   : > { %v4058_v47 = vpop.eup %4057 }
 0x258   : > { %v1410_v43 = vmul.f32 %v4058_v47, %v1403_v32  ;;  %v5396_v47 = vld [vmem:[#allocation3] sm:$0xff]  ;;  %v5399_v32 = vld [vmem:[#allocation3 + $0x8] sm:$0xff] }
 0x259   : > { %6848 = vst [vmem:[#allocation31_spill] sm:$0xff] %v5396_v47 }
 0x25a   : > { %1431 = vmatmul.f32.vlgmr.msra.gmra.mxu0 %v1410_v43  ;;  %1451 = vmatmul.f32.vlgmr.msra.gmra.mxu1 %v1410_v43  ;;  %6849 = vst [vmem:[#allocation32_spill] sm:$0xff] %v5399_v32 }
 0x25b   : > { %1471 = vmatmul.f32.vlgmr.msra.gmra.mxu2 %v1410_v43  ;;  %1491 = vmatmul.f32.vlgmr.msra.gmra.mxu3 %v1410_v43  ;;  %v5402_v43 = vld [vmem:[#allocation3 + $0x10] sm:$0xff] }
 0x25c   : > { %1717 = vmatpush.msra.mxu0 %v5140_v4  ;;  %1737 = vmatpush.msra.mxu1 %v5143_v57  ;;  %6850 = vst [vmem:[#allocation33_spill] sm:$0xff] %v5402_v43 }
 0x25d   : > { %1757 = vmatpush.msra.mxu2 %v5146_v55  ;;  %1777 = vmatpush.msra.mxu3 %v5149_v53 }
 0x25e   : > { %1718 = vmatpush.msra.mxu0 %v5152_v18  ;;  %1738 = vmatpush.msra.mxu1 %v5155_v56 }
 0x25f   : > { %1758 = vmatpush.msra.mxu2 %v5158_v60  ;;  %1778 = vmatpush.msra.mxu3 %v5161_v52 }
 0x260   : > { %1719 = vmatpush.msra.mxu0 %v5164_v31  ;;  %1739 = vmatpush.msra.mxu1 %v5167_v1 }
 0x261   : > { %1759 = vmatpush.msra.mxu2 %v5170_v2  ;;  %1779 = vmatpush.msra.mxu3 %v5173_v63 }
 0x262   : > { %1720 = vmatpush.msra.mxu0 %v5176_v58  ;;  %1740 = vmatpush.msra.mxu1 %v5179_v5 }
 0x263   : > { %1760 = vmatpush.msra.mxu2 %v5182_v3  ;;  %1780 = vmatpush.msra.mxu3 %v5185_v0 }
 0x264   : > { %1721 = vmatpush.msra.mxu0 %v5188_v61  ;;  %1741 = vmatpush.msra.mxu1 %v5191_v54 }
 0x265   : > { %1761 = vmatpush.msra.mxu2 %v5194_v62  ;;  %1781 = vmatpush.msra.mxu3 %v5197_v44 }
 0x266   : > { %1722 = vmatpush.msra.mxu0 %v5200_v6  ;;  %1742 = vmatpush.msra.mxu1 %v5203_v7 }
 0x267   : > { %1762 = vmatpush.msra.mxu2 %v5206_v8  ;;  %1782 = vmatpush.msra.mxu3 %v5209_v9 }
 0x268   : > { %1723 = vmatpush.msra.mxu0 %v5212_v10  ;;  %1743 = vmatpush.msra.mxu1 %v5215_v11 }
 0x269   : > { %1763 = vmatpush.msra.mxu2 %v5218_v12  ;;  %1783 = vmatpush.msra.mxu3 %v5221_v13 }
 0x26a   : > { %1724 = vmatpush.msra.mxu0 %v5224_v14  ;;  %1744 = vmatpush.msra.mxu1 %v5227_v15 }
 0x26b   : > { %1764 = vmatpush.msra.mxu2 %v5230_v16  ;;  %1784 = vmatpush.msra.mxu3 %v5233_v17 }
 0x26c   : > { %1725 = vmatpush.msra.mxu0 %v5236_v19  ;;  %1745 = vmatpush.msra.mxu1 %v5239_v20 }
 0x26d   : > { %1765 = vmatpush.msra.mxu2 %v5242_v35  ;;  %1785 = vmatpush.msra.mxu3 %v5245_v36 }
 0x26e   : > { %1726 = vmatpush.msra.mxu0 %v5248_v38  ;;  %1746 = vmatpush.msra.mxu1 %v5251_v39 }
 0x26f   : > { %1766 = vmatpush.msra.mxu2 %v6826_v41  ;;  %1786 = vmatpush.msra.mxu3 %v6827_v40 }
 0x270   : > { %1727 = vmatpush.msra.mxu0 %v6828_v42  ;;  %1747 = vmatpush.msra.mxu1 %v6829_v59 }
 0x271   : > { %1767 = vmatpush.msra.mxu2 %v6830_v49  ;;  %1787 = vmatpush.msra.mxu3 %v6831_v33 }
 0x272   : > { %1728 = vmatpush.msra.mxu0 %v6832_v51  ;;  %1748 = vmatpush.msra.mxu1 %v6833_v37 }
 0x273   : > { %1768 = vmatpush.msra.mxu2 %v6834_v22  ;;  %1788 = vmatpush.msra.mxu3 %v6835_v50 }
 0x274   : > { %1729 = vmatpush.msra.mxu0 %v6836_v23  ;;  %1749 = vmatpush.msra.mxu1 %v6837_v26 }
 0x275   : > { %1769 = vmatpush.msra.mxu2 %v6838_v25  ;;  %1789 = vmatpush.msra.mxu3 %v6839_v27 }
 0x276   : > { %1730 = vmatpush.msra.mxu0 %v5372_v48  ;;  %1750 = vmatpush.msra.mxu1 %v5375_v28 }
 0x277   : > { %1770 = vmatpush.msra.mxu2 %v5378_v45  ;;  %1790 = vmatpush.msra.mxu3 %v5381_v21  ;;  %v6852_v21 = vld [vmem:[#allocation45_spill] sm:$0xff]  ;;  %v6853_v45 = vld [vmem:[#allocation46_spill] sm:$0xff] }
 0x278   : > { %1731 = vmatpush.msra.mxu0 %v5384_v29  ;;  %1751 = vmatpush.msra.mxu1 %v5387_v24  ;;  %v5405_v24 = vld [vmem:[#allocation3 + $0x18] sm:$0xff] }
 0x279   : > { %1771 = vmatpush.msra.mxu2 %v5390_v46  ;;  %1791 = vmatpush.msra.mxu3 %v5393_v30  ;;  %6851 = vst [vmem:[#allocation34_spill] sm:$0xff] %v5405_v24 }
 0x27a   : > { %1732 = vmatpush.msra.mxu0 %v5396_v47  ;;  %1752 = vmatpush.msra.mxu1 %v5399_v32  ;;  %v6854_v32 = vld [vmem:[#allocation49_spill] sm:$0xff] }
 0x27b   : > { %1772 = vmatpush.msra.mxu2 %v5402_v43  ;;  %1792 = vmatpush.msra.mxu3 %v5405_v24 }
 0x2d7   : > { %v1432_v46 = vpop.f32.mrf.mxu0  ;;  %v1452_v29 = vpop.f32.mrf.mxu1 }
 0x2d8   : > { %v1495_v30 = vadd.f32 %v1432_v46, %v6852_v21  ;;  %v1496_v28 = vadd.f32 %v1452_v29, %v6853_v45  ;;  %v6855_v45 = vld [vmem:[#allocation50_spill] sm:$0xff] }
 0x2da   : > { %v3894_v48 = vmul.f32 -1.442695, %v1495_v30  ;;  %v3895_v47 = vmul.f32 -1.442695, %v1496_v28 }
 0x2dc   : > { %4059 = vpow2.f32 %v3894_v48 }
 0x2dd   : > { %4061 = vpow2.f32 %v3895_v47 }
 0x2de   : > { %v1472_v27 = vpop.f32.mrf.mxu2  ;;  %v1492_v24 = vpop.f32.mrf.mxu3 }
 0x2df   : > { %v1497_v25 = vadd.f32 %v1472_v27, %v6854_v32  ;;  %v1498_v29 = vadd.f32 %v1492_v24, %v6855_v45 }
 0x2e1   : > { %v3896_v26 = vmul.f32 -1.442695, %v1497_v25 }
 0x2e2   : > { %v4060_v23 = vpop.eup %4059 }
 0x2e3   : > { %v4062_v43 = vpop.eup %4061  ;;  %v1508_v50 = vadd.f32 1.0, %v4060_v23  ;;  %4063 = vpow2.f32 %v3896_v26 }
 0x2e4   : > { %v1509_v22 = vadd.f32 1.0, %v4062_v43 }
 0x2e5   : > { %4065 = vrcp.f32 %v1508_v50  ;;  %v1522_v25 = vand.u32 2147483648, %v1508_v50  ;;  %v1520_v26 = vand.u32 2147483647, %v1508_v50  ;;  %vm1516_vm12 = vweird.f32 %v1508_v50 }
 0x2e6   : > { %4067 = vrcp.f32 %v1509_v22  ;;  %v1537_v32 = vand.u32 2147483648, %v1509_v22  ;;  %v1535_v51 = vand.u32 2147483647, %v1509_v22  ;;  %vm1531_vm13 = vweird.f32 %v1509_v22 }
 0x2e7   : > { %v1523_v45 = vor.u32 1.1754944e-38, %v1522_v25  ;;  %vm1521_vm2 = vcmp.eq.f32.partialorder %v1520_v26, 8.507059e+37 }
 0x2e8   : > { %vm1536_vm3 = vcmp.eq.f32.partialorder %v1535_v51, 8.507059e+37 }
 0x2e9   : > { %v4064_v37 = vpop.eup %4063 }
 0x2ea   : > { %v1510_v21 = vadd.f32 1.0, %v4064_v37 }
 0x2eb   : > { %v4066_v46 = vpop.eup %4065 }
 0x2ec   : > { %v4068_v28 = vpop.eup %4067  ;;  %v1512_v48 = vmul.f32 %v4066_v46, %v1508_v50  ;;  %4069 = vrcp.f32 %v1510_v21  ;;  %vm1517_vm10 = vweird.f32 %v4066_v46  ;;  %v1552_v25 = vand.u32 2147483648, %v1510_v21 }
 0x2ed   : > { %v1527_v30 = vmul.f32 %v4068_v28, %v1509_v22  ;;  %4071 = vtanh.f32 %v1498_v29  ;;  %vm1532_vm11 = vweird.f32 %v4068_v28  ;;  %vm1518_vm14 = vmor %vm1516_vm12, %vm1517_vm10  ;;  %vm1546_vm5 = vweird.f32 %v1510_v21 }
 0x2ee   : > { %v1513_v47 = vsub.f32 1.0, %v1512_v48  ;;  %vm1533_vm15 = vmor %vm1531_vm13, %vm1532_vm11  ;;  %v1538_v48 = vor.u32 1.1754944e-38, %v1537_v32  ;;  %v1553_v26 = vor.u32 1.1754944e-38, %v1552_v25  ;;  %v6874_v25 = vld [vmem:[#allocation27_spill] sm:$0xff] }
 0x2ef   : > { %v1528_v27 = vsub.f32 1.0, %v1527_v30 }
 0x2f0   : > { %v1514_v23 = vmul.f32 %v4066_v46, %v1513_v47 }
 0x2f1   : > { %v1529_v43 = vmul.f32 %v4068_v28, %v1528_v27 }
 0x2f2   : > { %v4070_v33 = vpop.eup %4069  ;;  %v1515_v37 = vadd.f32 %v4066_v46, %v1514_v23 }
 0x2f3   : > { %v1542_v24 = vmul.f32 %v4070_v33, %v1510_v21  ;;  %v1530_v49 = vadd.f32 %v4068_v28, %v1529_v43  ;;  %v4072_v29 = vpop.eup %4071  ;;  %vm1547_vm4 = vweird.f32 %v4070_v33  ;;  %v6863_v43 = vld [vmem:[#allocation16_spill] sm:$0xff] }
 0x2f4   : > { %v1519_v30 = vsel %vm1518_vm14, %v4066_v46, %v1515_v37  ;;  %v1550_v46 = vand.u32 2147483647, %v1510_v21  ;;  %vm1548_vm6 = vmor %vm1546_vm5, %vm1547_vm4  ;;  %v6861_v21 = vld [vmem:[#allocation14_spill] sm:$0xff]  ;;  %v6864_v37 = vld [vmem:[#allocation17_spill] sm:$0xff] }
 0x2f5   : > { %v1543_v59 = vsub.f32 1.0, %v1542_v24  ;;  %v1524_v47 = vsel %vm1521_vm2, %v1523_v45, %v1519_v30  ;;  %v1534_v42 = vsel %vm1533_vm15, %v4068_v28, %v1530_v49  ;;  %v6862_v28 = vld [vmem:[#allocation15_spill] sm:$0xff]  ;;  %v6865_v24 = vld [vmem:[#allocation18_spill] sm:$0xff]  ;;  %v6868_v30 = vld [vmem:[#allocation21_spill] sm:$0xff] }
 0x2f6   : > { %v1539_v27 = vsel %vm1536_vm3, %v1538_v48, %v1534_v42  ;;  %v1558_v40 = vmul.f32 %v4072_v29, %v1524_v47  ;;  %vm1551_vm7 = vcmp.eq.f32.partialorder %v1550_v46, 8.507059e+37  ;;  %v6866_v45 = vld [vmem:[#allocation19_spill] sm:$0xff]  ;;  %v6867_v48 = vld [vmem:[#allocation20_spill] sm:$0xff]  ;;  %v6869_v29 = vld [vmem:[#allocation22_spill] sm:$0xff] }
 0x2f7   : > { %v1557_v41 = vmul.f32 %v1539_v27, %v5317_v34  ;;  %v1544_v23 = vmul.f32 %v4070_v33, %v1543_v59  ;;  %v6856_v34 = vld [vmem:[#allocation9_spill] sm:$0xff]  ;;  %v6859_v59 = vld [vmem:[#allocation12_spill] sm:$0xff]  ;;  %v6870_v47 = vld [vmem:[#allocation23_spill] sm:$0xff] }
 0x2f8   : > { %v6871_v27 = vld [vmem:[#allocation24_spill] sm:$0xff] }
 0x2f9   : > { %v5413_v50 = vadd.f32 %v1558_v40, %v1557_v41  ;;  %v1545_v22 = vadd.f32 %v4070_v33, %v1544_v23  ;;  %v6857_v41 = vld [vmem:[#allocation10_spill] sm:$0xff]  ;;  %v6858_v40 = vld [vmem:[#allocation11_spill] sm:$0xff]  ;;  %v6872_v23 = vld [vmem:[#allocation25_spill] sm:$0xff] }
 0x2fa   : > { %v6875_v46 = vld [vmem:[#allocation28_spill] sm:$0xff] }
 0x2fb   : > { %4073 = vtanh.f32 %v5413_v50  ;;  %v1549_v32 = vsel %vm1548_vm6, %v4070_v33, %v1545_v22  ;;  %v6860_v33 = vld [vmem:[#allocation13_spill] sm:$0xff]  ;;  %v6873_v22 = vld [vmem:[#allocation26_spill] sm:$0xff] }
 0x2fc   : > { %v1554_v51 = vsel %vm1551_vm7, %v1553_v26, %v1549_v32  ;;  %v6876_v32 = vld [vmem:[#allocation29_spill] sm:$0xff]  ;;  %v6877_v26 = vld [vmem:[#allocation30_spill] sm:$0xff] }
 0x301   : > { %v4074_v49 = vpop.eup %4073 }
 0x302   : > { %v1561_v42 = vmul.f32 %v4074_v49, %v1554_v51  ;;  %v6878_v49 = vld [vmem:[#allocation31_spill] sm:$0xff]  ;;  %v6879_v51 = vld [vmem:[#allocation32_spill] sm:$0xff] }
 0x304   : > { %1582 = vmatmul.f32.vlgmr.msrb.gmra.mxu0 %v1561_v42  ;;  %1602 = vmatmul.f32.vlgmr.msrb.gmra.mxu1 %v1561_v42 }
 0x305   : > { %1622 = vmatmul.f32.vlgmr.msrb.gmra.mxu2 %v1561_v42  ;;  %1642 = vmatmul.f32.vlgmr.msrb.gmra.mxu3 %v1561_v42  ;;  %v6880_v42 = vld [vmem:[#allocation33_spill] sm:$0xff] }
 0x306   : > { %1868 = vmatpush.msrb.mxu0 %v5140_v4  ;;  %1888 = vmatpush.msrb.mxu1 %v5143_v57 }
 0x307   : > { %1908 = vmatpush.msrb.mxu2 %v5146_v55  ;;  %1928 = vmatpush.msrb.mxu3 %v5149_v53 }
 0x308   : > { %1869 = vmatpush.msrb.mxu0 %v5152_v18  ;;  %1889 = vmatpush.msrb.mxu1 %v5155_v56 }
 0x309   : > { %1909 = vmatpush.msrb.mxu2 %v5158_v60  ;;  %1929 = vmatpush.msrb.mxu3 %v5161_v52 }
 0x30a   : > { %1870 = vmatpush.msrb.mxu0 %v5164_v31  ;;  %1890 = vmatpush.msrb.mxu1 %v5167_v1 }
 0x30b   : > { %1910 = vmatpush.msrb.mxu2 %v5170_v2  ;;  %1930 = vmatpush.msrb.mxu3 %v5173_v63 }
 0x30c   : > { %1871 = vmatpush.msrb.mxu0 %v5176_v58  ;;  %1891 = vmatpush.msrb.mxu1 %v5179_v5 }
 0x30d   : > { %1911 = vmatpush.msrb.mxu2 %v5182_v3  ;;  %1931 = vmatpush.msrb.mxu3 %v5185_v0 }
 0x30e   : > { %1872 = vmatpush.msrb.mxu0 %v5188_v61  ;;  %1892 = vmatpush.msrb.mxu1 %v5191_v54 }
 0x30f   : > { %1912 = vmatpush.msrb.mxu2 %v5194_v62  ;;  %1932 = vmatpush.msrb.mxu3 %v5197_v44 }
 0x310   : > { %1873 = vmatpush.msrb.mxu0 %v5200_v6  ;;  %1893 = vmatpush.msrb.mxu1 %v5203_v7 }
 0x311   : > { %1913 = vmatpush.msrb.mxu2 %v5206_v8  ;;  %1933 = vmatpush.msrb.mxu3 %v5209_v9 }
 0x312   : > { %1874 = vmatpush.msrb.mxu0 %v5212_v10  ;;  %1894 = vmatpush.msrb.mxu1 %v5215_v11 }
 0x313   : > { %1914 = vmatpush.msrb.mxu2 %v5218_v12  ;;  %1934 = vmatpush.msrb.mxu3 %v5221_v13 }
 0x314   : > { %1875 = vmatpush.msrb.mxu0 %v5224_v14  ;;  %1895 = vmatpush.msrb.mxu1 %v5227_v15 }
 0x315   : > { %1915 = vmatpush.msrb.mxu2 %v5230_v16  ;;  %1935 = vmatpush.msrb.mxu3 %v5233_v17 }
 0x316   : > { %1876 = vmatpush.msrb.mxu0 %v5236_v19  ;;  %1896 = vmatpush.msrb.mxu1 %v5239_v20 }
 0x317   : > { %1916 = vmatpush.msrb.mxu2 %v5242_v35  ;;  %1936 = vmatpush.msrb.mxu3 %v5245_v36 }
 0x318   : > { %1877 = vmatpush.msrb.mxu0 %v5248_v38  ;;  %1897 = vmatpush.msrb.mxu1 %v5251_v39 }
 0x319   : > { %1917 = vmatpush.msrb.mxu2 %v6856_v34  ;;  %1937 = vmatpush.msrb.mxu3 %v6857_v41 }
 0x31a   : > { %1878 = vmatpush.msrb.mxu0 %v6858_v40  ;;  %1898 = vmatpush.msrb.mxu1 %v6859_v59 }
 0x31b   : > { %1918 = vmatpush.msrb.mxu2 %v6860_v33  ;;  %1938 = vmatpush.msrb.mxu3 %v6861_v21 }
 0x31c   : > { %1879 = vmatpush.msrb.mxu0 %v6862_v28  ;;  %1899 = vmatpush.msrb.mxu1 %v6863_v43 }
 0x31d   : > { %1919 = vmatpush.msrb.mxu2 %v6864_v37  ;;  %1939 = vmatpush.msrb.mxu3 %v6865_v24 }
 0x31e   : > { %1880 = vmatpush.msrb.mxu0 %v6866_v45  ;;  %1900 = vmatpush.msrb.mxu1 %v6867_v48 }
 0x31f   : > { %1920 = vmatpush.msrb.mxu2 %v6868_v30  ;;  %1940 = vmatpush.msrb.mxu3 %v6869_v29  ;;  %v6882_v29 = vld [vmem:[#allocation51_spill] sm:$0xff]  ;;  %v6883_v30 = vld [vmem:[#allocation52_spill] sm:$0xff] }
 0x320   : > { %1881 = vmatpush.msrb.mxu0 %v6870_v47  ;;  %1901 = vmatpush.msrb.mxu1 %v6871_v27  ;;  %v6881_v47 = vld [vmem:[#allocation34_spill] sm:$0xff] }
 0x321   : > { %1921 = vmatpush.msrb.mxu2 %v6872_v23  ;;  %1941 = vmatpush.msrb.mxu3 %v6873_v22 }
 0x322   : > { %1882 = vmatpush.msrb.mxu0 %v6874_v25  ;;  %1902 = vmatpush.msrb.mxu1 %v6875_v46 }
 0x323   : > { %1922 = vmatpush.msrb.mxu2 %v6876_v32  ;;  %1942 = vmatpush.msrb.mxu3 %v6877_v26  ;;  %v6884_v26 = vld [vmem:[#allocation53_spill] sm:$0xff] }
 0x324   : > { %1883 = vmatpush.msrb.mxu0 %v6878_v49  ;;  %1903 = vmatpush.msrb.mxu1 %v6879_v51 }
 0x325   : > { %1923 = vmatpush.msrb.mxu2 %v6880_v42  ;;  %1943 = vmatpush.msrb.mxu3 %v6881_v47 }
 0x381   : > { %v1583_v27 = vpop.f32.mrf.mxu0  ;;  %v1603_v23 = vpop.f32.mrf.mxu1 }
 0x382   : > { %v1646_v22 = vadd.f32 %v1583_v27, %v6882_v29  ;;  %v1647_v25 = vadd.f32 %v1603_v23, %v6883_v30  ;;  %v6885_v30 = vld [vmem:[#allocation54_spill] sm:$0xff] }
 0x384   : > { %v3897_v48 = vmul.f32 -1.442695, %v1646_v22  ;;  %v3898_v46 = vmul.f32 -1.442695, %v1647_v25 }
 0x386   : > { %4075 = vpow2.f32 %v3897_v48 }
 0x387   : > { %4077 = vpow2.f32 %v3898_v46 }
 0x388   : > { %v1623_v32 = vpop.f32.mrf.mxu2  ;;  %v1643_v47 = vpop.f32.mrf.mxu3 }
 0x389   : > { %v1648_v45 = vadd.f32 %v1623_v32, %v6884_v26  ;;  %v1649_v23 = vadd.f32 %v1643_v47, %v6885_v30 }
 0x38b   : > { %v3899_v49 = vmul.f32 -1.442695, %v1648_v45 }
 0x38c   : > { %v4076_v24 = vpop.eup %4075 }
 0x38d   : > { %v4078_v51 = vpop.eup %4077  ;;  %v1659_v37 = vadd.f32 1.0, %v4076_v24  ;;  %4079 = vpow2.f32 %v3899_v49 }
 0x38e   : > { %v1660_v42 = vadd.f32 1.0, %v4078_v51 }
 0x38f   : > { %4081 = vrcp.f32 %v1659_v37  ;;  %v1673_v45 = vand.u32 2147483648, %v1659_v37  ;;  %v1671_v49 = vand.u32 2147483647, %v1659_v37  ;;  %vm1667_vm10 = vweird.f32 %v1659_v37 }
 0x390   : > { %4083 = vrcp.f32 %v1660_v42  ;;  %v1688_v26 = vand.u32 2147483648, %v1660_v42  ;;  %v1686_v28 = vand.u32 2147483647, %v1660_v42  ;;  %vm1682_vm11 = vweird.f32 %v1660_v42 }
 0x391   : > { %v1674_v30 = vor.u32 1.1754944e-38, %v1673_v45  ;;  %vm1672_vm14 = vcmp.eq.f32.partialorder %v1671_v49, 8.507059e+37 }
 0x392   : > { %vm1687_vm15 = vcmp.eq.f32.partialorder %v1686_v28, 8.507059e+37 }
 0x393   : > { %v4080_v43 = vpop.eup %4079 }
 0x394   : > { %v1661_v29 = vadd.f32 1.0, %v4080_v43 }
 0x395   : > { %v4082_v27 = vpop.eup %4081 }
 0x396   : > { %v4084_v22 = vpop.eup %4083  ;;  %v1663_v48 = vmul.f32 %v4082_v27, %v1659_v37  ;;  %4085 = vrcp.f32 %v1661_v29  ;;  %vm1668_vm8 = vweird.f32 %v4082_v27  ;;  %v1703_v45 = vand.u32 2147483648, %v1661_v29 }
 0x397   : > { %v1678_v25 = vmul.f32 %v4084_v22, %v1660_v42  ;;  %4087 = vtanh.f32 %v1649_v23  ;;  %vm1683_vm9 = vweird.f32 %v4084_v22  ;;  %vm1669_vm12 = vmor %vm1667_vm10, %vm1668_vm8  ;;  %vm1697_vm3 = vweird.f32 %v1661_v29 }
 0x398   : > { %v1664_v46 = vsub.f32 1.0, %v1663_v48  ;;  %vm1684_vm13 = vmor %vm1682_vm11, %vm1683_vm9  ;;  %v1689_v48 = vor.u32 1.1754944e-38, %v1688_v26  ;;  %v1704_v49 = vor.u32 1.1754944e-38, %v1703_v45 }
 0x399   : > { %v1679_v32 = vsub.f32 1.0, %v1678_v25 }
 0x39a   : > { %v1665_v24 = vmul.f32 %v4082_v27, %v1664_v46 }
 0x39b   : > { %v1680_v51 = vmul.f32 %v4084_v22, %v1679_v32 }
 0x39c   : > { %v4086_v21 = vpop.eup %4085  ;;  %v1666_v43 = vadd.f32 %v4082_v27, %v1665_v24 }
 0x39d   : > { %v1693_v47 = vmul.f32 %v4086_v21, %v1661_v29  ;;  %v1681_v33 = vadd.f32 %v4084_v22, %v1680_v51  ;;  %v4088_v23 = vpop.eup %4087  ;;  %vm1698_vm2 = vweird.f32 %v4086_v21 }
 0x39e   : > { %v1670_v25 = vsel %vm1669_vm12, %v4082_v27, %v1666_v43  ;;  %v1701_v27 = vand.u32 2147483647, %v1661_v29  ;;  %vm1699_vm4 = vmor %vm1697_vm3, %vm1698_vm2  ;;  %v6915_v43 = vld [vmem:[#allocation58_spill] sm:$0xff] }
 0x39f   : > { %v1694_v59 = vsub.f32 1.0, %v1693_v47  ;;  %v1675_v46 = vsel %vm1672_vm14, %v1674_v30, %v1670_v25  ;;  %v1685_v40 = vsel %vm1684_vm13, %v4084_v22, %v1681_v33 }
 0x3a0   : > { %v1690_v32 = vsel %vm1687_vm15, %v1689_v48, %v1685_v40  ;;  %v1709_v41 = vmul.f32 %v4088_v23, %v1675_v46  ;;  %vm1702_vm5 = vcmp.eq.f32.partialorder %v1701_v27, 8.507059e+37 }
 0x3a1   : > { %v1708_v34 = vmul.f32 %v1690_v32, %v5413_v50  ;;  %v1695_v24 = vmul.f32 %v4086_v21, %v1694_v59 }
 0x3a3   : > { %v5485_v37 = vadd.f32 %v1709_v41, %v1708_v34  ;;  %v1696_v42 = vadd.f32 %v4086_v21, %v1695_v24 }
 0x3a5   : > { %4089 = vtanh.f32 %v5485_v37  ;;  %v1700_v26 = vsel %vm1699_vm4, %v4086_v21, %v1696_v42 }
 0x3a6   : > { %v1705_v28 = vsel %vm1702_vm5, %v1704_v49, %v1700_v26 }
 0x3ab   : > { %v4090_v33 = vpop.eup %4089 }
 0x3ac   : > { %v1712_v40 = vmul.f32 %v4090_v33, %v1705_v28 }
 0x3ae   : > { %1733 = vmatmul.f32.vlgmr.msra.gmra.mxu0 %v1712_v40  ;;  %1753 = vmatmul.f32.vlgmr.msra.gmra.mxu1 %v1712_v40 }
 0x3af   : > { %1773 = vmatmul.f32.vlgmr.msra.gmra.mxu2 %v1712_v40  ;;  %1793 = vmatmul.f32.vlgmr.msra.gmra.mxu3 %v1712_v40 }
 0x3b0   : > { %2019 = vmatpush.msra.mxu0 %v5140_v4  ;;  %2039 = vmatpush.msra.mxu1 %v5143_v57  ;;  %v6886_v4 = vld [vmem:[#allocation9_spill] sm:$0xff]  ;;  %v6887_v57 = vld [vmem:[#allocation10_spill] sm:$0xff] }
 0x3b1   : > { %2059 = vmatpush.msra.mxu2 %v5146_v55  ;;  %2079 = vmatpush.msra.mxu3 %v5149_v53  ;;  %v6888_v55 = vld [vmem:[#allocation11_spill] sm:$0xff]  ;;  %v6889_v53 = vld [vmem:[#allocation12_spill] sm:$0xff] }
 0x3b2   : > { %2020 = vmatpush.msra.mxu0 %v5152_v18  ;;  %2040 = vmatpush.msra.mxu1 %v5155_v56  ;;  %v6890_v18 = vld [vmem:[#allocation13_spill] sm:$0xff]  ;;  %v6891_v56 = vld [vmem:[#allocation14_spill] sm:$0xff] }
 0x3b3   : > { %2060 = vmatpush.msra.mxu2 %v5158_v60  ;;  %2080 = vmatpush.msra.mxu3 %v5161_v52  ;;  %v6892_v60 = vld [vmem:[#allocation15_spill] sm:$0xff]  ;;  %v6893_v52 = vld [vmem:[#allocation16_spill] sm:$0xff] }
 0x3b4   : > { %2021 = vmatpush.msra.mxu0 %v5164_v31  ;;  %2041 = vmatpush.msra.mxu1 %v5167_v1  ;;  %v6894_v31 = vld [vmem:[#allocation17_spill] sm:$0xff]  ;;  %v6895_v1 = vld [vmem:[#allocation18_spill] sm:$0xff] }
 0x3b5   : > { %2061 = vmatpush.msra.mxu2 %v5170_v2  ;;  %2081 = vmatpush.msra.mxu3 %v5173_v63  ;;  %v6896_v2 = vld [vmem:[#allocation19_spill] sm:$0xff]  ;;  %v6897_v63 = vld [vmem:[#allocation20_spill] sm:$0xff] }
 0x3b6   : > { %2022 = vmatpush.msra.mxu0 %v5176_v58  ;;  %2042 = vmatpush.msra.mxu1 %v5179_v5  ;;  %v6898_v58 = vld [vmem:[#allocation21_spill] sm:$0xff]  ;;  %v6899_v5 = vld [vmem:[#allocation22_spill] sm:$0xff] }
 0x3b7   : > { %2062 = vmatpush.msra.mxu2 %v5182_v3  ;;  %2082 = vmatpush.msra.mxu3 %v5185_v0  ;;  %v6900_v3 = vld [vmem:[#allocation23_spill] sm:$0xff]  ;;  %v6901_v0 = vld [vmem:[#allocation24_spill] sm:$0xff] }
 0x3b8   : > { %2023 = vmatpush.msra.mxu0 %v5188_v61  ;;  %2043 = vmatpush.msra.mxu1 %v5191_v54  ;;  %v6902_v61 = vld [vmem:[#allocation25_spill] sm:$0xff]  ;;  %v6903_v54 = vld [vmem:[#allocation26_spill] sm:$0xff] }
 0x3b9   : > { %2063 = vmatpush.msra.mxu2 %v5194_v62  ;;  %2083 = vmatpush.msra.mxu3 %v5197_v44  ;;  %v6904_v62 = vld [vmem:[#allocation27_spill] sm:$0xff]  ;;  %v6905_v44 = vld [vmem:[#allocation28_spill] sm:$0xff] }
 0x3ba   : > { %2024 = vmatpush.msra.mxu0 %v5200_v6  ;;  %2044 = vmatpush.msra.mxu1 %v5203_v7  ;;  %v6906_v6 = vld [vmem:[#allocation29_spill] sm:$0xff]  ;;  %v6907_v7 = vld [vmem:[#allocation30_spill] sm:$0xff] }
 0x3bb   : > { %2064 = vmatpush.msra.mxu2 %v5206_v8  ;;  %2084 = vmatpush.msra.mxu3 %v5209_v9  ;;  %v6908_v8 = vld [vmem:[#allocation31_spill] sm:$0xff]  ;;  %v6909_v9 = vld [vmem:[#allocation32_spill] sm:$0xff] }
 0x3bc   : > { %2025 = vmatpush.msra.mxu0 %v5212_v10  ;;  %2045 = vmatpush.msra.mxu1 %v5215_v11  ;;  %v6910_v10 = vld [vmem:[#allocation33_spill] sm:$0xff]  ;;  %v6911_v11 = vld [vmem:[#allocation34_spill] sm:$0xff] }
 0x3bd   : > { %2065 = vmatpush.msra.mxu2 %v5218_v12  ;;  %2085 = vmatpush.msra.mxu3 %v5221_v13 }
 0x3be   : > { %2026 = vmatpush.msra.mxu0 %v5224_v14  ;;  %2046 = vmatpush.msra.mxu1 %v5227_v15  ;;  %v6912_v14 = vld [vmem:[#allocation55_spill] sm:$0xff] }
 0x3bf   : > { %2066 = vmatpush.msra.mxu2 %v5230_v16  ;;  %2086 = vmatpush.msra.mxu3 %v5233_v17  ;;  %v6913_v16 = vld [vmem:[#allocation56_spill] sm:$0xff] }
 0x3c0   : > { %2027 = vmatpush.msra.mxu0 %v5236_v19  ;;  %2047 = vmatpush.msra.mxu1 %v5239_v20 }
 0x3c1   : > { %2067 = vmatpush.msra.mxu2 %v5242_v35  ;;  %2087 = vmatpush.msra.mxu3 %v5245_v36  ;;  %v6914_v36 = vld [vmem:[#allocation57_spill] sm:$0xff] }
 0x3c2   : > { %2028 = vmatpush.msra.mxu0 %v5248_v38  ;;  %2048 = vmatpush.msra.mxu1 %v5251_v39 }
 0x3c3   : > { %2068 = vmatpush.msra.mxu2 %v6886_v4  ;;  %2088 = vmatpush.msra.mxu3 %v6887_v57 }
 0x3c4   : > { %2029 = vmatpush.msra.mxu0 %v6888_v55  ;;  %2049 = vmatpush.msra.mxu1 %v6889_v53 }
 0x3c5   : > { %2069 = vmatpush.msra.mxu2 %v6890_v18  ;;  %2089 = vmatpush.msra.mxu3 %v6891_v56 }
 0x3c6   : > { %2030 = vmatpush.msra.mxu0 %v6892_v60  ;;  %2050 = vmatpush.msra.mxu1 %v6893_v52 }
 0x3c7   : > { %2070 = vmatpush.msra.mxu2 %v6894_v31  ;;  %2090 = vmatpush.msra.mxu3 %v6895_v1 }
 0x3c8   : > { %2031 = vmatpush.msra.mxu0 %v6896_v2  ;;  %2051 = vmatpush.msra.mxu1 %v6897_v63 }
 0x3c9   : > { %2071 = vmatpush.msra.mxu2 %v6898_v58  ;;  %2091 = vmatpush.msra.mxu3 %v6899_v5 }
 0x3ca   : > { %2032 = vmatpush.msra.mxu0 %v6900_v3  ;;  %2052 = vmatpush.msra.mxu1 %v6901_v0 }
 0x3cb   : > { %2072 = vmatpush.msra.mxu2 %v6902_v61  ;;  %2092 = vmatpush.msra.mxu3 %v6903_v54 }
 0x3cc   : > { %2033 = vmatpush.msra.mxu0 %v6904_v62  ;;  %2053 = vmatpush.msra.mxu1 %v6905_v44 }
 0x3cd   : > { %2073 = vmatpush.msra.mxu2 %v6906_v6  ;;  %2093 = vmatpush.msra.mxu3 %v6907_v7  ;;  %v6916_v7 = vld [vmem:[#allocation59_spill] sm:$0xff] }
 0x3ce   : > { %2034 = vmatpush.msra.mxu0 %v6908_v8  ;;  %2054 = vmatpush.msra.mxu1 %v6909_v9  ;;  %v6917_v9 = vld [vmem:[#allocation60_spill] sm:$0xff] }
 0x3cf   : > { %2074 = vmatpush.msra.mxu2 %v6910_v10  ;;  %2094 = vmatpush.msra.mxu3 %v6911_v11 }
 0x42b   : > { %v1734_v12 = vpop.f32.mrf.mxu0  ;;  %v1754_v13 = vpop.f32.mrf.mxu1 }
 0x42c   : > { %v1797_v15 = vadd.f32 %v1734_v12, %v6912_v14  ;;  %v1798_v17 = vadd.f32 %v1754_v13, %v6913_v16  ;;  %v6918_v14 = vld [vmem:[#allocation61_spill] sm:$0xff] }
 0x42e   : > { %v3900_v19 = vmul.f32 -1.442695, %v1797_v15  ;;  %v3901_v20 = vmul.f32 -1.442695, %v1798_v17 }
 0x430   : > { %4091 = vpow2.f32 %v3900_v19 }
 0x431   : > { %4093 = vpow2.f32 %v3901_v20 }
 0x432   : > { %v1774_v35 = vpop.f32.mrf.mxu2  ;;  %v1794_v21 = vpop.f32.mrf.mxu3 }
 0x433   : > { %v1799_v38 = vadd.f32 %v1774_v35, %v6914_v36  ;;  %v1800_v47 = vadd.f32 %v1794_v21, %v6915_v43  ;;  %v5566_v36 = vld [vmem:[%s6500_s4] sm:$0x3] }
 0x435   : > { %v3902_v39 = vmul.f32 -1.442695, %v1799_v38 }
 0x436   : > { %v4092_v50 = vpop.eup %4091 }
 0x437   : > { %v4094_v34 = vpop.eup %4093  ;;  %v1810_v41 = vadd.f32 1.0, %v4092_v50  ;;  %4095 = vpow2.f32 %v3902_v39 }
 0x438   : > { %v1811_v59 = vadd.f32 1.0, %v4094_v34 }
 0x439   : > { %4097 = vrcp.f32 %v1810_v41  ;;  %v1824_v32 = vand.u32 2147483648, %v1810_v41  ;;  %v1822_v45 = vand.u32 2147483647, %v1810_v41  ;;  %vm1818_vm8 = vweird.f32 %v1810_v41 }
 0x43a   : > { %4099 = vrcp.f32 %v1811_v59  ;;  %v1839_v24 = vand.u32 2147483648, %v1811_v59  ;;  %v1837_v26 = vand.u32 2147483647, %v1811_v59  ;;  %vm1833_vm9 = vweird.f32 %v1811_v59 }
 0x43b   : > { %v1825_v40 = vor.u32 1.1754944e-38, %v1824_v32  ;;  %vm1823_vm12 = vcmp.eq.f32.partialorder %v1822_v45, 8.507059e+37 }
 0x43c   : > { %v1840_v57 = vor.u32 1.1754944e-38, %v1839_v24  ;;  %vm1838_vm13 = vcmp.eq.f32.partialorder %v1837_v26, 8.507059e+37 }
 0x43d   : > { %v4096_v29 = vpop.eup %4095 }
 0x43e   : > { %v1812_v22 = vadd.f32 1.0, %v4096_v29 }
 0x43f   : > { %v4098_v51 = vpop.eup %4097 }
 0x440   : > { %v4100_v30 = vpop.eup %4099  ;;  %v1814_v48 = vmul.f32 %v4098_v51, %v1810_v41  ;;  %4101 = vrcp.f32 %v1812_v22  ;;  %vm1819_vm6 = vweird.f32 %v4098_v51  ;;  %v1854_v5 = vand.u32 2147483648, %v1812_v22  ;;  %v6919_v41 = vld [vmem:[#allocation62_spill] sm:$0xff] }
 0x441   : > { %v1829_v25 = vmul.f32 %v4100_v30, %v1811_v59  ;;  %4103 = vtanh.f32 %v1800_v47  ;;  %vm1834_vm7 = vweird.f32 %v4100_v30  ;;  %vm1820_vm10 = vmor %vm1818_vm8, %vm1819_vm6  ;;  %vm1848_vm15 = vweird.f32 %v1812_v22 }
 0x442   : > { %v1815_v23 = vsub.f32 1.0, %v1814_v48  ;;  %vm1835_vm11 = vmor %vm1833_vm9, %vm1834_vm7  ;;  %v1852_v3 = vand.u32 2147483647, %v1812_v22  ;;  %v1855_v61 = vor.u32 1.1754944e-38, %v1854_v5 }
 0x443   : > { %v1830_v46 = vsub.f32 1.0, %v1829_v25 }
 0x444   : > { %v1816_v42 = vmul.f32 %v4098_v51, %v1815_v23  ;;  %vm1853_vm3 = vcmp.eq.f32.partialorder %v1852_v3, 8.507059e+37 }
 0x445   : > { %v1831_v27 = vmul.f32 %v4100_v30, %v1830_v46 }
 0x446   : > { %v4102_v49 = vpop.eup %4101  ;;  %v1817_v33 = vadd.f32 %v4098_v51, %v1816_v42 }
 0x447   : > { %v1844_v28 = vmul.f32 %v4102_v49, %v1812_v22  ;;  %v1832_v4 = vadd.f32 %v4100_v30, %v1831_v27  ;;  %v4104_v53 = vpop.eup %4103  ;;  %vm1849_vm14 = vweird.f32 %v4102_v49 }
 0x448   : > { %v1821_v55 = vsel %vm1820_vm10, %v4098_v51, %v1817_v33  ;;  %vm1850_vm2 = vmor %vm1848_vm15, %vm1849_vm14 }
 0x449   : > { %v1845_v18 = vsub.f32 1.0, %v1844_v28  ;;  %v1826_v56 = vsel %vm1823_vm12, %v1825_v40, %v1821_v55  ;;  %v1836_v60 = vsel %vm1835_vm11, %v4100_v30, %v1832_v4 }
 0x44a   : > { %v1841_v52 = vsel %vm1838_vm13, %v1840_v57, %v1836_v60  ;;  %v1860_v31 = vmul.f32 %v4104_v53, %v1826_v56 }
 0x44b   : > { %v1859_v1 = vmul.f32 %v1841_v52, %v5485_v37  ;;  %v1846_v2 = vmul.f32 %v4102_v49, %v1845_v18 }
 0x44d   : > { %v5557_v63 = vadd.f32 %v1860_v31, %v1859_v1  ;;  %v1847_v58 = vadd.f32 %v4102_v49, %v1846_v2 }
 0x44f   : > { %4105 = vtanh.f32 %v5557_v63  ;;  %v1851_v0 = vsel %vm1850_vm2, %v4102_v49, %v1847_v58 }
 0x450   : > { %v1856_v62 = vsel %vm1853_vm3, %v1855_v61, %v1851_v0  ;;  %v5580_v0 = vld [vmem:[#allocation5 + $0x1f0] sm:$0xff]  ;;  %v5586_v61 = vld [vmem:[%s6505_s9 + $0x20] sm:$0xff] }
 0x451   : > { %6921 = vst [vmem:[#allocation35_spill] sm:$0xff] %v5580_v0 }
 0x455   : > { %v4106_v54 = vpop.eup %4105 }
 0x456   : > { %v1863_v44 = vmul.f32 %v4106_v54, %v1856_v62  ;;  %v5591_v54 = vld [vmem:[%s6505_s9 + $0x38] sm:$0xff] }
 0x457   : > { %v5593_v62 = vld [vmem:[#allocation5 + $0x1d0] sm:$0xff] }
 0x458   : > { %1884 = vmatmul.f32.vlgmr.msrb.gmra.mxu0 %v1863_v44  ;;  %1904 = vmatmul.f32.vlgmr.msrb.gmra.mxu1 %v1863_v44  ;;  %6922 = vst [vmem:[#allocation42_spill] sm:$0xff] %v5593_v62 }
 0x459   : > { %1924 = vmatmul.f32.vlgmr.msrb.gmra.mxu2 %v1863_v44  ;;  %1944 = vmatmul.f32.vlgmr.msrb.gmra.mxu3 %v1863_v44  ;;  %v5601_v44 = vld [vmem:[%s6505_s9] sm:$0xff] }
 0x45a   : > { %3909 = vmatpush.msk.msrb.mxu0 %vm753_vm0, %v5566_v36  ;;  %2337 = vmatpush.msrb.mxu3 %v5580_v0 }
 0x45b   : > { %2231 = vmatpush.msrb.mxu1 %v5586_v61 }
 0x45c   : > { %2338 = vmatpush.msrb.mxu3 %v5593_v62 }
 0x45d   : > { %2232 = vmatpush.msrb.mxu1 %v5601_v44 }
 0x4d5   : > { %v1885_v37 = vpop.f32.mrf.mxu0  ;;  %v1905_v6 = vpop.f32.mrf.mxu1 }
 0x4d6   : > { %v1948_v8 = vadd.f32 %v1885_v37, %v6916_v7  ;;  %v1949_v10 = vadd.f32 %v1905_v6, %v6917_v9  ;;  %v5606_v37 = vld [vmem:[%s6505_s9 + $0x18] sm:$0xff]  ;;  %v5612_v7 = vld [vmem:[#allocation5 + $0x1e0] sm:$0xff] }
 0x4d7   : > { %v5608_v6 = vld [vmem:[#allocation5 + $0x1b0] sm:$0xff] }
 0x4d8   : > { %v3903_v11 = vmul.f32 -1.442695, %v1948_v8  ;;  %v3904_v12 = vmul.f32 -1.442695, %v1949_v10  ;;  %6923 = vst [vmem:[#allocation36_spill] sm:$0xff] %v5608_v6  ;;  %v5614_v8 = vld [vmem:[#allocation5 + $0x1f8] sm:$0xff]  ;;  %2339 = vmatpush.msrb.mxu3 %v5608_v6 }
 0x4d9   : > { %v5618_v9 = vld [vmem:[#allocation5 + $0x190] sm:$0xff]  ;;  %v5621_v10 = vld [vmem:[#allocation5 + $0x1c0] sm:$0xff] }
 0x4da   : > { %4107 = vpow2.f32 %v3903_v11  ;;  %6924 = vst [vmem:[#allocation47_spill] sm:$0xff] %v5618_v9  ;;  %v5623_v11 = vld [vmem:[#allocation5 + $0x1d8] sm:$0xff]  ;;  %2340 = vmatpush.msrb.mxu3 %v5618_v9 }
 0x4db   : > { %4109 = vpow2.f32 %v3904_v12  ;;  %v5627_v12 = vld [vmem:[#allocation5 + $0x170] sm:$0xff] }
 0x4dc   : > { %v1925_v13 = vpop.f32.mrf.mxu2  ;;  %v1945_v38 = vpop.f32.mrf.mxu3  ;;  %6925 = vst [vmem:[#allocation37_spill] sm:$0xff] %v5627_v12  ;;  %2341 = vmatpush.msrb.mxu3 %v5627_v12 }
 0x4dd   : > { %v1950_v15 = vadd.f32 %v1925_v13, %v6918_v14  ;;  %v1951_v59 = vadd.f32 %v1945_v38, %v6919_v41  ;;  %v5630_v13 = vld [vmem:[#allocation5 + $0x1a0] sm:$0xff]  ;;  %v5632_v14 = vld [vmem:[#allocation5 + $0x1b8] sm:$0xff]  ;;  %v5654_v38 = vld [vmem:[#allocation5 + $0x110] sm:$0xff] }
 0x4de   : > { %6928 = vst [vmem:[#allocation39_spill] sm:$0xff] %v5654_v38  ;;  %v5666_v41 = vld [vmem:[#allocation5 + $0x120] sm:$0xff] }
 0x4df   : > { %v3905_v16 = vmul.f32 -1.442695, %v1950_v15  ;;  %v5636_v15 = vld [vmem:[#allocation5 + $0x150] sm:$0xff] }
 0x4e0   : > { %v4108_v17 = vpop.eup %4107  ;;  %6926 = vst [vmem:[#allocation48_spill] sm:$0xff] %v5636_v15  ;;  %2342 = vmatpush.msrb.mxu3 %v5636_v15 }
 0x4e1   : > { %v4110_v19 = vpop.eup %4109  ;;  %v1961_v20 = vadd.f32 1.0, %v4108_v17  ;;  %4111 = vpow2.f32 %v3905_v16  ;;  %v5639_v16 = vld [vmem:[#allocation5 + $0x180] sm:$0xff]  ;;  %v5641_v17 = vld [vmem:[#allocation5 + $0x198] sm:$0xff] }
 0x4e2   : > { %v1962_v35 = vadd.f32 1.0, %v4110_v19  ;;  %v5645_v19 = vld [vmem:[#allocation5 + $0x130] sm:$0xff] }
 0x4e3   : > { %4113 = vrcp.f32 %v1961_v20  ;;  %v1975_v47 = vand.u32 2147483648, %v1961_v20  ;;  %v1973_v25 = vand.u32 2147483647, %v1961_v20  ;;  %vm1969_vm6 = vweird.f32 %v1961_v20  ;;  %6927 = vst [vmem:[#allocation38_spill] sm:$0xff] %v5645_v19  ;;  %2343 = vmatpush.msrb.mxu3 %v5645_v19 }
 0x4e4   : > { %4115 = vrcp.f32 %v1962_v35  ;;  %v1990_v30 = vand.u32 2147483648, %v1962_v35  ;;  %v1988_v46 = vand.u32 2147483647, %v1962_v35  ;;  %vm1984_vm7 = vweird.f32 %v1962_v35 }
 0x4e5   : > { %v1976_v45 = vor.u32 1.1754944e-38, %v1975_v47  ;;  %vm1974_vm10 = vcmp.eq.f32.partialorder %v1973_v25, 8.507059e+37  ;;  %2344 = vmatpush.msrb.mxu3 %v5654_v38  ;;  %v6931_v47 = vld [vmem:[#allocation63_spill] sm:$0xff] }
 0x4e6   : > { %v1991_v26 = vor.u32 1.1754944e-38, %v1990_v30  ;;  %vm1989_vm11 = vcmp.eq.f32.partialorder %v1988_v46, 8.507059e+37  ;;  %v5686_v46 = vld [vmem:[#allocation5 + $0xe0] sm:$0xff] }
 0x4e7   : > { %v4112_v39 = vpop.eup %4111 }
 0x4e8   : > { %v1963_v50 = vadd.f32 1.0, %v4112_v39  ;;  %v5657_v39 = vld [vmem:[#allocation5 + $0x140] sm:$0xff] }
 0x4e9   : > { %v4114_v34 = vpop.eup %4113 }
 0x4ea   : > { %v4116_v21 = vpop.eup %4115  ;;  %v1965_v29 = vmul.f32 %v4114_v34, %v1961_v20  ;;  %4117 = vrcp.f32 %v1963_v50  ;;  %vm1970_vm4 = vweird.f32 %v4114_v34  ;;  %v2005_v52 = vand.u32 2147483648, %v1963_v50  ;;  %v5648_v20 = vld [vmem:[#allocation5 + $0x160] sm:$0xff] }
 0x4eb   : > { %v1980_v22 = vmul.f32 %v4116_v21, %v1962_v35  ;;  %4119 = vtanh.f32 %v1951_v59  ;;  %vm1985_vm5 = vweird.f32 %v4116_v21  ;;  %vm1971_vm8 = vmor %vm1969_vm6, %vm1970_vm4  ;;  %vm1999_vm13 = vweird.f32 %v1963_v50  ;;  %v5650_v35 = vld [vmem:[#allocation5 + $0x178] sm:$0xff] }
 0x4ec   : > { %v1966_v51 = vsub.f32 1.0, %v1965_v29  ;;  %vm1986_vm9 = vmor %vm1984_vm7, %vm1985_vm5  ;;  %v2003_v31 = vand.u32 2147483647, %v1963_v50  ;;  %v2006_v2 = vor.u32 1.1754944e-38, %v2005_v52  ;;  %v5668_v59 = vld [vmem:[#allocation5 + $0x138] sm:$0xff]  ;;  %v5739_v52 = vld [vmem:[#allocation5 + $0x80] sm:$0xff] }
 0x4ed   : > { %v1981_v43 = vsub.f32 1.0, %v1980_v22 }
 0x4ee   : > { %v1967_v48 = vmul.f32 %v4114_v34, %v1966_v51  ;;  %vm2004_vm15 = vcmp.eq.f32.partialorder %v2003_v31, 8.507059e+37  ;;  %v5675_v51 = vld [vmem:[#allocation5 + $0x100] sm:$0xff] }
 0x4ef   : > { %v1982_v23 = vmul.f32 %v4116_v21, %v1981_v43  ;;  %v5677_v43 = vld [vmem:[#allocation5 + $0x118] sm:$0xff]  ;;  %v6941_v31 = vld [vmem:[#allocation65_spill] sm:$0xff] }
 0x4f0   : > { %v4118_v32 = vpop.eup %4117  ;;  %v1968_v24 = vadd.f32 %v4114_v34, %v1967_v48  ;;  %v6932_v48 = vld [vmem:[#allocation64_spill] sm:$0xff] }
 0x4f1   : > { %v1995_v42 = vmul.f32 %v4118_v32, %v1963_v50  ;;  %v1983_v27 = vadd.f32 %v4116_v21, %v1982_v23  ;;  %v4120_v33 = vpop.eup %4119  ;;  %vm2000_vm12 = vweird.f32 %v4118_v32  ;;  %v5659_v50 = vld [vmem:[#allocation5 + $0x158] sm:$0xff]  ;;  %v5683_v23 = vld [vmem:[#allocation5 + $0xb0] sm:$0xff] }
 0x4f2   : > { %v1972_v49 = vsel %vm1971_vm8, %v4114_v34, %v1968_v24  ;;  %vm2001_vm14 = vmor %vm1999_vm13, %vm2000_vm12  ;;  %v5663_v34 = vld [vmem:[#allocation5 + $0xf0] sm:$0xff]  ;;  %6933 = vst [vmem:[#allocation44_spill] sm:$0xff] %v5683_v23 }
 0x4f3   : > { %v1996_v28 = vsub.f32 1.0, %v1995_v42  ;;  %v1977_v40 = vsel %vm1974_vm10, %v1976_v45, %v1972_v49  ;;  %v1987_v4 = vsel %vm1986_vm9, %v4116_v21, %v1983_v27  ;;  %6929 = vst [vmem:[#allocation40_spill] sm:$0xff] %v5663_v34  ;;  %2345 = vmatpush.msrb.mxu3 %v5663_v34  ;;  %v5672_v21 = vld [vmem:[#allocation5 + $0xd0] sm:$0xff]  ;;  %v5693_v45 = vld [vmem:[%s6505_s9 + $0x28] sm:$0xff]  ;;  %v5703_v49 = vld [vmem:[#allocation5 + $0xd8] sm:$0xff] }
 0x4f4   : > { %v1992_v57 = vsel %vm1989_vm11, %v1991_v26, %v1987_v4  ;;  %v2011_v55 = vmul.f32 %v4120_v33, %v1977_v40  ;;  %6930 = vst [vmem:[#allocation43_spill] sm:$0xff] %v5672_v21  ;;  %v5697_v27 = vld [vmem:[#allocation5 + $0x90] sm:$0xff]  ;;  %2251 = vmatpush.msrb.mxu2 %v5693_v45  ;;  %v5701_v26 = vld [vmem:[#allocation5 + $0xc0] sm:$0xff]  ;;  %v5708_v33 = vld [vmem:[%s6501_s5] ss:$0 sm:$0xff] }
 0x4f5   : > { %v2010_v53 = vmul.f32 %v1992_v57, %v5557_v63  ;;  %v1997_v18 = vmul.f32 %v4118_v32, %v1996_v28  ;;  %v5576_v63 = vld [vmem:[%s4598_s19 + $0x38] sm:$0xff]  ;;  %2346 = vmatpush.msrb.mxu3 %v5672_v21  ;;  %6934 = vst [vmem:[#allocation45_spill] sm:$0xff] %v5697_v27  ;;  %v5715_v28 = vld [vmem:[%s6505_s9 + $0x8] sm:$0xff]  ;;  %v5724_v4 = vld [vmem:[%s6505_s9 + $0x30] sm:$0xff]  ;;  %s4478_s19 = smov 127  }
 0x4f6   : > { %6920 = vst [vmem:[#allocation41_spill] sm:$0xff] %v5576_v63  ;;  %v5717_v40 = vld [vmem:[#allocation5 + $0x70] sm:$0xff]  ;;  %2252 = vmatpush.msrb.mxu2 %v5715_v28  ;;  %v5726_v57 = vld [vmem:[#allocation5 + $0xa0] sm:$0xff] }
 0x4f7   : > { %v5572_v56 = vadd.f32 %v2011_v55, %v2010_v53  ;;  %v1998_v60 = vadd.f32 %v4118_v32, %v1997_v18  ;;  %2347 = vmatpush.msrb.mxu3 %v5683_v23  ;;  %6935 = vst [vmem:[#allocation46_spill] sm:$0xff] %v5708_v33  ;;  %v5728_v55 = vld [vmem:[#allocation5 + $0xb8] sm:$0xff]  ;;  %v5732_v18 = vld [vmem:[#allocation5 + $0x50] sm:$0xff] }
 0x4f8   : > { %6936 = vst [vmem:[#allocation49_spill] sm:$0xff] %v5717_v40 }
 0x4f9   : > { %4121 = vtanh.f32 %v5572_v56  ;;  %v2002_v1 = vsel %vm2001_vm14, %v4118_v32, %v1998_v60  ;;  %v5688_v32 = vld [vmem:[#allocation5 + $0xf8] sm:$0xff]  ;;  %2348 = vmatpush.msrb.mxu3 %v5697_v27  ;;  %6937 = vst [vmem:[#allocation50_spill] sm:$0xff] %v5724_v4  ;;  %v5737_v60 = vld [vmem:[%s6505_s9 + $0x10] sm:$0xff] }
 0x4fa   : > { %v2007_v5 = vsel %vm2004_vm15, %v2006_v2, %v2002_v1  ;;  %6938 = vst [vmem:[#allocation51_spill] sm:$0xff] %v5728_v55 }
 0x4fb   : > { %2349 = vmatpush.msrb.mxu3 %v5717_v40  ;;  %6939 = vst [vmem:[#allocation52_spill] sm:$0xff] %v5732_v18 }
 0x4fc   : > { %6940 = vst [vmem:[#allocation53_spill] sm:$0xff] %v5737_v60 }
 0x4fd   : > { %2350 = vmatpush.msrb.mxu3 %v5732_v18 }
 0x4ff   : > { %v4122_v58 = vpop.eup %4121 }
 0x500   : > { %v2014_v3 = vmul.f32 %v4122_v58, %v2007_v5  ;;  %v5744_v58 = vld [vmem:[#allocation5 + $0x98] sm:$0xff] }
 0x501   : > { %6942 = vst [vmem:[#allocation54_spill] sm:$0xff] %v5744_v58 }
 0x502   : > { %2035 = vmatmul.f32.vlgmr.msra.gmra.mxu0 %v2014_v3  ;;  %2055 = vmatmul.f32.vlgmr.msra.gmra.mxu1 %v2014_v3 }
 0x503   : > { %2075 = vmatmul.f32.vlgmr.msra.gmra.mxu2 %v2014_v3  ;;  %2095 = vmatmul.f32.vlgmr.msra.gmra.mxu3 %v2014_v3  ;;  %v5751_v3 = vld [vmem:[#allocation5 + $0x30] sm:$0xff] }
 0x504   : > { %2291 = vmatpush.msra.mxu0 %v5591_v54  ;;  %2297 = vmatpush.msra.mxu1 %v5612_v7  ;;  %6943 = vst [vmem:[#allocation9_spill] sm:$0xff] %v5751_v3 }
 0x505   : > { %2271 = vmatpush.msra.mxu2 %v5724_v4  ;;  %2351 = vmatpush.msrb.mxu3 %v5751_v3  ;;  %v6949_v3 = vld [vmem:[#allocation66_spill] sm:$0xff] }
 0x506   : > { %2292 = vmatpush.msra.mxu0 %v5606_v37  ;;  %2298 = vmatpush.msra.mxu1 %v5621_v10 }
 0x507   : > { %2272 = vmatpush.msra.mxu2 %v5737_v60 }
 0x508   : > { %2299 = vmatpush.msra.mxu1 %v5630_v13 }
 0x50a   : > { %3910 = vmatmul.msk.f32.vlgmr.msrb.gmra.mxu0 %vm728_vm1, %v5576_v63  ;;  %2300 = vmatpush.msra.mxu1 %v5639_v16 }
 0x50b   : > { %2357 = vmatpush.msrb.mxu0 %v5614_v8 }
 0x50c   : > { %2301 = vmatpush.msra.mxu1 %v5648_v20 }
 0x50d   : > { %2358 = vmatpush.msrb.mxu0 %v5623_v11 }
 0x50e   : > { %2302 = vmatpush.msra.mxu1 %v5657_v39 }
 0x50f   : > { %2359 = vmatpush.msrb.mxu0 %v5632_v14 }
 0x510   : > { %2303 = vmatpush.msra.mxu1 %v5666_v41 }
 0x511   : > { %2360 = vmatpush.msrb.mxu0 %v5641_v17 }
 0x512   : > { %2304 = vmatpush.msra.mxu1 %v5675_v51 }
 0x513   : > { %2361 = vmatpush.msrb.mxu0 %v5650_v35 }
 0x514   : > { %2305 = vmatpush.msra.mxu1 %v5686_v46 }
 0x515   : > { %2362 = vmatpush.msrb.mxu0 %v5659_v50 }
 0x516   : > { %2306 = vmatpush.msra.mxu1 %v5701_v26 }
 0x517   : > { %2363 = vmatpush.msrb.mxu0 %v5668_v59 }
 0x518   : > { %2307 = vmatpush.msra.mxu1 %v5726_v57 }
 0x519   : > { %2364 = vmatpush.msrb.mxu0 %v5677_v43 }
 0x51a   : > { %2308 = vmatpush.msra.mxu1 %v5739_v52 }
 0x51b   : > { %2365 = vmatpush.msrb.mxu0 %v5688_v32 }
 0x51d   : > { %2366 = vmatpush.msrb.mxu0 %v5703_v49 }
 0x51f   : > { %2367 = vmatpush.msrb.mxu0 %v5728_v55 }
 0x521   : > { %2368 = vmatpush.msrb.mxu0 %v5744_v58 }
 0x57f   : > { %v2036_v29 = vpop.f32.mrf.mxu0  ;;  %v2056_v22 = vpop.f32.mrf.mxu1 }
 0x580   : > { %v2099_v30 = vadd.f32 %v2036_v29, %v6931_v47  ;;  %v2100_v25 = vadd.f32 %v2056_v22, %v6932_v48  ;;  %v5755_v22 = vld [vmem:[#allocation5 + $0x60] sm:$0xff]  ;;  %v5757_v47 = vld [vmem:[#allocation5 + $0x78] sm:$0xff] }
 0x581   : > { %6944 = vst [vmem:[#allocation10_spill] sm:$0xff] %v5757_v47  ;;  %2309 = vmatpush.msra.mxu1 %v5755_v22  ;;  %2369 = vmatpush.msrb.mxu0 %v5757_v47 }
 0x582   : > { %v3906_v24 = vmul.f32 -1.442695, %v2099_v30  ;;  %v3907_v42 = vmul.f32 -1.442695, %v2100_v25  ;;  %v5761_v25 = vld [vmem:[#allocation5 + $0x10] sm:$0xff] }
 0x583   : > { %6945 = vst [vmem:[#allocation11_spill] sm:$0xff] %v5761_v25  ;;  %2352 = vmatpush.msrb.mxu3 %v5761_v25 }
 0x584   : > { %4123 = vpow2.f32 %v3906_v24 }
 0x585   : > { %4125 = vpow2.f32 %v3907_v42  ;;  %2545 = vmatpush.msra.mxu3 %v5586_v61 }
 0x586   : > { %v2076_v53 = vpop.f32.mrf.mxu2 }
 0x587   : > { %v2101_v1 = vadd.f32 %v2076_v53, %v6941_v31  ;;  %v2190_v2 = vpop.f32.mrf.mxu0  ;;  %v5765_v53 = vld [vmem:[#allocation5 + $0x40] sm:$0xff]  ;;  %2546 = vmatpush.msra.mxu3 %v5601_v44 }
 0x588   : > { %v5747_v5 = vadd.f32 %v5708_v33, %v2190_v2  ;;  %2310 = vmatpush.msra.mxu1 %v5765_v53  ;;  %v5772_v2 = vld [vmem:[#allocation5 + $0x20] sm:$0xff] }
 0x589   : > { %v3908_v29 = vmul.f32 -1.442695, %v2101_v1  ;;  %v5768_v1 = vld [vmem:[#allocation5 + $0x58] sm:$0xff] }
 0x58a   : > { %v4124_v30 = vpop.eup %4123  ;;  %v3911_v48 = vmul.f32 -1.442695, %v5747_v5  ;;  %6946 = vst [vmem:[#allocation12_spill] sm:$0xff] %v5768_v1  ;;  %2370 = vmatpush.msrb.mxu0 %v5768_v1  ;;  %2311 = vmatpush.msra.mxu1 %v5772_v2 }
 0x58b   : > { %v4126_v24 = vpop.eup %4125  ;;  %v2112_v42 = vadd.f32 1.0, %v4124_v30  ;;  %4127 = vpow2.f32 %v3908_v29  ;;  %v5774_v29 = vld [vmem:[#allocation5 + $0x38] sm:$0xff]  ;;  %v5779_v30 = vld [vmem:[#allocation5] sm:$0xff] }
 0x58c   : > { %v2113_v31 = vadd.f32 1.0, %v4126_v24  ;;  %4129 = vpow2.f32 %v3911_v48  ;;  %6947 = vst [vmem:[#allocation13_spill] sm:$0xff] %v5774_v29  ;;  %2371 = vmatpush.msrb.mxu0 %v5774_v29  ;;  %v5781_v48 = vld [vmem:[#allocation5 + $0x18] sm:$0xff]  ;;  %v2096_v24 = vpop.f32.mrf.mxu3  ;;  %2312 = vmatpush.msra.mxu1 %v5779_v30 }
 0x58d   : > { %4131 = vrcp.f32 %v2112_v42  ;;  %6948 = vst [vmem:[#allocation14_spill] sm:$0xff] %v5781_v48  ;;  %v2102_v18 = vadd.f32 %v2096_v24, %v6949_v3  ;;  %v2126_v38 = vand.u32 2147483648, %v2112_v42  ;;  %v2124_v12 = vand.u32 2147483647, %v2112_v42 }
 0x58e   : > { %4133 = vrcp.f32 %v2113_v31  ;;  %2372 = vmatpush.msrb.mxu0 %v5781_v48  ;;  %v2141_v19 = vand.u32 2147483648, %v2113_v31  ;;  %v2139_v9 = vand.u32 2147483647, %v2113_v31  ;;  %vm2120_vm4 = vweird.f32 %v2112_v42 }
 0x58f   : > { %vm2135_vm5 = vweird.f32 %v2113_v31  ;;  %v2127_v62 = vor.u32 1.1754944e-38, %v2126_v38  ;;  %vm2125_vm8 = vcmp.eq.f32.partialorder %v2124_v12, 8.507059e+37 }
 0x590   : > { %vm2140_vm9 = vcmp.eq.f32.partialorder %v2139_v9, 8.507059e+37 }
 0x591   : > { %v4128_v33 = vpop.eup %4127 }
 0x592   : > { %v4130_v63 = vpop.eup %4129  ;;  %v5786_v25 = vadd.f32 1.0, %v4128_v33 }
 0x593   : > { %v4132_v61 = vpop.eup %4131  ;;  %v2196_v40 = vadd.f32 1.0, %v4130_v63 }
 0x594   : > { %v4134_v27 = vpop.eup %4133  ;;  %v2116_v23 = vmul.f32 %v4132_v61, %v2112_v42  ;;  %4135 = vrcp.f32 %v5786_v25  ;;  %vm2121_vm2 = vweird.f32 %v4132_v61  ;;  %vm2150_vm15 = vweird.f32 %v5786_v25 }
 0x595   : > { %v2131_v21 = vmul.f32 %v4134_v27, %v2113_v31  ;;  %4137 = vrcp.f32 %v2196_v40  ;;  %vm2136_vm3 = vweird.f32 %v4134_v27  ;;  %vm2122_vm6 = vmor %vm2120_vm4, %vm2121_vm2  ;;  %v2208_v47 = vand.u32 2147483648, %v2196_v40 }
 0x596   : > { %v2117_v34 = vsub.f32 1.0, %v2116_v23  ;;  %4139 = vtanh.f32 %v2102_v18  ;;  %vm2137_vm7 = vmor %vm2135_vm5, %vm2136_vm3  ;;  %v2206_v38 = vand.u32 2147483647, %v2196_v40  ;;  %vm2202_vm11 = vweird.f32 %v2196_v40 }
 0x597   : > { %v2132_v44 = vsub.f32 1.0, %v2131_v21  ;;  %v2142_v21 = vor.u32 1.1754944e-38, %v2141_v19  ;;  %vm2213_vm2 = vcmask 130048  }
 0x598   : > { %v2118_v15 = vmul.f32 %v4132_v61, %v2117_v34  ;;  %vm2207_vm14 = vcmp.eq.f32.partialorder %v2206_v38, 8.507059e+37 }
 0x599   : > { %v2133_v33 = vmul.f32 %v4134_v27, %v2132_v44 }
 0x59a   : > { %v4136_v6 = vpop.eup %4135  ;;  %v2119_v3 = vadd.f32 %v4132_v61, %v2118_v15 }
 0x59b   : > { %v4138_v63 = vpop.eup %4137  ;;  %v2146_v24 = vmul.f32 %v4136_v6, %v5786_v25  ;;  %v2134_v23 = vadd.f32 %v4134_v27, %v2133_v33  ;;  %vm2151_vm12 = vweird.f32 %v4136_v6 }
 0x59c   : > { %v2123_v18 = vsel %vm2122_vm6, %v4132_v61, %v2119_v3  ;;  %v2198_v34 = vmul.f32 %v4138_v63, %v2196_v40  ;;  %v4140_v0 = vpop.eup %4139  ;;  %vm2203_vm10 = vweird.f32 %v4138_v63  ;;  %vm2152_vm3 = vmor %vm2150_vm15, %vm2151_vm12  ;;  %v5799_v40 = vld [vmem:[#allocation5 + $0x1e8] sm:$0xff] }
 0x59d   : > { %v2147_v48 = vsub.f32 1.0, %v2146_v24  ;;  %v2128_v44 = vsel %vm2125_vm8, %v2127_v62, %v2123_v18  ;;  %v2138_v29 = vsel %vm2137_vm7, %v4134_v27, %v2134_v23  ;;  %vm2204_vm13 = vmor %vm2202_vm11, %vm2203_vm10  ;;  %v2209_v62 = vor.u32 1.1754944e-38, %v2208_v47  ;;  %v5803_v47 = vld [vmem:[#allocation5 + $0x1c8] sm:$0xff] }
 0x59e   : > { %v2143_v1 = vsel %vm2140_vm9, %v2142_v21, %v2138_v29  ;;  %v2162_v15 = vmul.f32 %v4140_v0, %v2128_v44  ;;  %v2199_v42 = vsub.f32 1.0, %v2198_v34  ;;  %v2156_v0 = vand.u32 2147483648, %v5786_v25  ;;  %v5807_v61 = vld [vmem:[#allocation5 + $0x1a8] sm:$0xff]  ;;  %v5887_v34 = vld [vmem:[%s6508_s12 + $0x78] sm:$0xff] }
 0x59f   : > { %v2161_v31 = vmul.f32 %v2143_v1, %v5572_v56  ;;  %v2148_v58 = vmul.f32 %v4136_v6, %v2147_v48  ;;  %v2154_v56 = vand.u32 2147483647, %v5786_v25  ;;  %v5821_v3 = vld [vmem:[#allocation5 + $0x148] sm:$0xff] }
 0x5a0   : > { %v2200_v55 = vmul.f32 %v4138_v63, %v2199_v42  ;;  %v2157_v1 = vor.u32 1.1754944e-38, %v2156_v0  ;;  %6950 = vst [vmem:[#allocation15_spill] sm:$0xff] %v5821_v3  ;;  %v5828_v24 = vld [vmem:[#allocation5 + $0x108] sm:$0xff]  ;;  %v5915_v0 = vld [vmem:[%s6508_s12 + $0x58] sm:$0xff] }
 0x5a1   : > { %v5792_v33 = vadd.f32 %v2162_v15, %v2161_v31  ;;  %v2149_v12 = vadd.f32 %v4136_v6, %v2148_v58  ;;  %vm2155_vm4 = vcmp.eq.f32.partialorder %v2154_v56, 8.507059e+37  ;;  %6952 = vst [vmem:[#allocation17_spill] sm:$0xff] %v5828_v24  ;;  %v5832_v23 = vld [vmem:[#allocation5 + $0xe8] sm:$0xff]  ;;  %v5899_v31 = vld [vmem:[%s6508_s12 + $0x68] sm:$0xff] }
 0x5a2   : > { %v2201_v19 = vadd.f32 %v4138_v63, %v2200_v55  ;;  %6953 = vst [vmem:[#allocation18_spill] sm:$0xff] %v5832_v23  ;;  %v5836_v21 = vld [vmem:[#allocation5 + $0xc8] sm:$0xff] }
 0x5a3   : > { %4141 = vtanh.f32 %v5792_v33  ;;  %v2153_v58 = vsel %vm2152_vm3, %v4136_v6, %v2149_v12  ;;  %v5811_v6 = vld [vmem:[#allocation5 + $0x188] sm:$0xff]  ;;  %6954 = vst [vmem:[#allocation19_spill] sm:$0xff] %v5836_v21 }
 0x5a4   : > { %v2205_v9 = vsel %vm2204_vm13, %v4138_v63, %v2201_v19  ;;  %v2158_v25 = vsel %vm2155_vm4, %v2157_v1, %v2153_v58  ;;  %v5824_v63 = vld [vmem:[#allocation5 + $0x128] sm:$0xff]  ;;  %v5929_v58 = vld [vmem:[%s6508_s12 + $0x48] sm:$0xff] }
 0x5a5   : > { %v2210_v27 = vsel %vm2207_vm14, %v2209_v62, %v2205_v9  ;;  %6951 = vst [vmem:[#allocation16_spill] sm:$0xff] %v5824_v63  ;;  %v5893_v15 = vld [vmem:[%s6508_s12 + $0x70] sm:$0xff]  ;;  %v5909_v62 = vld [vmem:[%s6508_s12 + $0x60] sm:$0xff] }
 0x5a6   : > { %v2212_v55 = vmul.f32 %v2210_v27, %v5747_v5  ;;  %v5816_v5 = vld [vmem:[#allocation5 + $0x168] sm:$0xff] }
 0x5a7   : > { %v5923_v27 = vld [vmem:[%s6508_s12 + $0x50] sm:$0xff] }
 0x5a8   : > { %3912 = vmatmul.msk.f32.vlgmr.msrb.gmra.mxu1 %vm2213_vm2, %v2212_v55  ;;  %3913 = vmatmul.msk.f32.vlgmr.msrb.gmra.mxu2 %vm2213_vm2, %v2212_v55 }
 0x5a9   : > { %v4142_v29 = vpop.eup %4141  ;;  %3915 = vmatmul.msk.f32.vlgmr.msra.gmra.mxu0 %vm2213_vm2, %v2212_v55  ;;  %2317 = vmatpush.msrb.mxu2 %v5799_v40 }
 0x5aa   : > { %v2165_v48 = vmul.f32 %v4142_v29, %v2158_v25  ;;  %2565 = vmatpush.msra.mxu0 %v5693_v45  ;;  %2464 = vmatpush.msrb.mxu1 %v5887_v34  ;;  %v5935_v29 = vld [vmem:[%s6508_s12 + $0x40] sm:$0xff]  ;;  %v5940_v25 = vld [vmem:[%s6508_s12 + $0x38] sm:$0xff] }
 0x5ab   : > { %2318 = vmatpush.msrb.mxu2 %v5803_v47 }
 0x5ac   : > { %2353 = vmatmul.f32.vlgmr.msrb.gmra.mxu3 %v2165_v48  ;;  %2566 = vmatpush.msra.mxu0 %v5715_v28 }
 0x5ad   : > { %2319 = vmatpush.msrb.mxu2 %v5807_v61  ;;  %2605 = vmatpush.msrb.mxu3 %v5591_v54 }
 0x5ae   : > { %2465 = vmatpush.msrb.mxu1 %v5893_v15 }
 0x5af   : > { %2320 = vmatpush.msrb.mxu2 %v5811_v6  ;;  %2606 = vmatpush.msrb.mxu3 %v5606_v37 }
 0x5b0   : > { %3914 = vmatmul.msk.f32.vlgmr.msra.gmra.mxu2 %vm2213_vm2, %v2212_v55  ;;  %2313 = vmatmul.f32.vlgmr.msra.gmra.mxu1 %v2165_v48 }
 0x5b1   : > { %2321 = vmatpush.msrb.mxu2 %v5816_v5  ;;  %2373 = vmatmul.f32.vlgmr.msrb.gmra.mxu0 %v2165_v48 }
 0x5b2   : > { %2611 = vmatpush.msrb.mxu0 %v5612_v7  ;;  %v5840_v7 = vld [vmem:[#allocation5 + $0xa8] sm:$0xff]  ;;  %2466 = vmatpush.msrb.mxu1 %v5899_v31 }
 0x5b3   : > { %2322 = vmatpush.msrb.mxu2 %v5821_v3  ;;  %6955 = vst [vmem:[#allocation20_spill] sm:$0xff] %v5840_v7 }
 0x5b4   : > { %2612 = vmatpush.msrb.mxu0 %v5621_v10  ;;  %v5844_v10 = vld [vmem:[#allocation5 + $0x88] sm:$0xff]  ;;  %2467 = vmatpush.msrb.mxu1 %v5909_v62 }
 0x5b5   : > { %2323 = vmatpush.msrb.mxu2 %v5824_v63  ;;  %6956 = vst [vmem:[#allocation21_spill] sm:$0xff] %v5844_v10 }
 0x5b6   : > { %2613 = vmatpush.msrb.mxu0 %v5630_v13  ;;  %v5848_v13 = vld [vmem:[#allocation5 + $0x68] sm:$0xff]  ;;  %2468 = vmatpush.msrb.mxu1 %v5915_v0 }
 0x5b7   : > { %2324 = vmatpush.msrb.mxu2 %v5828_v24  ;;  %6957 = vst [vmem:[#allocation22_spill] sm:$0xff] %v5848_v13 }
 0x5b8   : > { %2614 = vmatpush.msrb.mxu0 %v5639_v16  ;;  %v5852_v16 = vld [vmem:[#allocation5 + $0x48] sm:$0xff]  ;;  %2469 = vmatpush.msrb.mxu1 %v5923_v27 }
 0x5b9   : > { %2325 = vmatpush.msrb.mxu2 %v5832_v23  ;;  %6958 = vst [vmem:[#allocation23_spill] sm:$0xff] %v5852_v16 }
 0x5ba   : > { %2615 = vmatpush.msrb.mxu0 %v5648_v20  ;;  %v5856_v20 = vld [vmem:[#allocation5 + $0x28] sm:$0xff]  ;;  %2470 = vmatpush.msrb.mxu1 %v5929_v58 }
 0x5bb   : > { %2326 = vmatpush.msrb.mxu2 %v5836_v21  ;;  %6959 = vst [vmem:[#allocation24_spill] sm:$0xff] %v5856_v20 }
 0x5bc   : > { %2616 = vmatpush.msrb.mxu0 %v5657_v39  ;;  %v5860_v39 = vld [vmem:[#allocation5 + $0x8] sm:$0xff]  ;;  %2471 = vmatpush.msrb.mxu1 %v5935_v29 }
 0x5bd   : > { %2327 = vmatpush.msrb.mxu2 %v5840_v7  ;;  %6960 = vst [vmem:[#allocation25_spill] sm:$0xff] %v5860_v39 }
 0x5be   : > { %2617 = vmatpush.msrb.mxu0 %v5666_v41  ;;  %2472 = vmatpush.msrb.mxu1 %v5940_v25 }
 0x5bf   : > { %2328 = vmatpush.msrb.mxu2 %v5844_v10 }
 0x5c0   : > { %2618 = vmatpush.msrb.mxu0 %v5675_v51  ;;  %v689_v51 = vld [vmem:[%s6507_s11] sm:$0xf] }
 0x5c1   : > { %2329 = vmatpush.msrb.mxu2 %v5848_v13  ;;  %v5881_v18 = vperm.slane %v689_v51, 2  ;;  %v5901_v38 = vperm.slane %v689_v51, 1 }
 0x5c2   : > { %2619 = vmatpush.msrb.mxu0 %v5686_v46  ;;  %v5878_v46 = vperm.slane %v689_v51, 0 }
 0x5c3   : > { %2330 = vmatpush.msrb.mxu2 %v5852_v16  ;;  %6962 = vst [vmem:[#allocation27_spill] sm:$0xff] %v5881_v18 }
 0x5c4   : > { %2620 = vmatpush.msrb.mxu0 %v5701_v26  ;;  %6961 = vst [vmem:[#allocation26_spill] sm:$0xff] %v5878_v46 }
 0x5c5   : > { %2331 = vmatpush.msrb.mxu2 %v5856_v20  ;;  %6963 = vst [vmem:[#allocation28_spill] sm:$0xff] %v5901_v38 }
 0x5c6   : > { %2621 = vmatpush.msrb.mxu0 %v5726_v57 }
 0x5c7   : > { %2332 = vmatpush.msrb.mxu2 %v5860_v39 }
 0x5c8   : > { %2333 = vmatmul.f32.vlgmr.msrb.gmra.mxu2 %v2165_v48  ;;  %2622 = vmatpush.msrb.mxu0 %v5739_v52 }
 0x5c9   : > { %3920 = vmatpush.msk.msra.mxu2 %vm753_vm0, %v5566_v36 }
 0x5ca   : > { %2623 = vmatpush.msrb.mxu0 %v5755_v22 }
 0x5cb   : > { %2585 = vmatpush.msrb.mxu2 %v5724_v4 }
 0x5cc   : > { %2624 = vmatpush.msrb.mxu0 %v5765_v53 }
 0x5cd   : > { %2586 = vmatpush.msrb.mxu2 %v5737_v60 }
 0x5ce   : > { %2625 = vmatpush.msrb.mxu0 %v5772_v2 }
 0x5d0   : > { %2626 = vmatpush.msrb.mxu0 %v5779_v30 }
 0x625   : > { %v2234_v41 = vpop.f32.mrf.mxu1 }
 0x626   : > { %v2235_v57 = vadd.f32 %v2234_v41, %v5878_v46 }
 0x62b   : > { %v2254_v36 = vpop.f32.mrf.mxu2 }
 0x62c   : > { %v2255_v9 = vadd.f32 %v2254_v36, %v5901_v38  ;;  %v5946_v36 = vld [vmem:[%s6508_s12 + $0x30] sm:$0xff] }
 0x62d   : > { %v2314_v26 = vpop.f32.mrf.mxu1  ;;  %2473 = vmatpush.msrb.mxu1 %v5946_v36 }
 0x62e   : > { %v2377_v52 = vadd.f32 %v2314_v26, %v2235_v57  ;;  %v2294_v26 = vpop.f32.mrf.mxu0  ;;  %v5952_v57 = vld [vmem:[%s6508_s12 + $0x28] sm:$0xff] }
 0x62f   : > { %v2354_v30 = vpop.f32.mrf.mxu3  ;;  %2474 = vmatpush.msrb.mxu1 %v5952_v57 }
 0x630   : > { %v3916_v22 = vmul.f32 -1.442695, %v2377_v52 }
 0x632   : > { %4143 = vpow2.f32 %v3916_v22 }
 0x633   : > { %v2274_v53 = vpop.f32.mrf.mxu2 }
 0x634   : > { %v2275_v2 = vadd.f32 %v2274_v53, %v5881_v18  ;;  %v5961_v53 = vld [vmem:[%s6508_s12 + $0x20] sm:$0xff] }
 0x635   : > { %2475 = vmatpush.msrb.mxu1 %v5961_v53 }
 0x636   : > { %v2379_v44 = vadd.f32 %v2354_v30, %v2275_v2 }
 0x638   : > { %v4144_v42 = vpop.eup %4143  ;;  %v3918_v19 = vmul.f32 -1.442695, %v2379_v44  ;;  %v5967_v44 = vld [vmem:[%s6508_s12 + $0x18] sm:$0xff] }
 0x639   : > { %v5904_v12 = vadd.f32 1.0, %v4144_v42  ;;  %2476 = vmatpush.msrb.mxu1 %v5967_v44 }
 0x63a   : > { %4145 = vpow2.f32 %v3918_v19  ;;  %v5971_v19 = vperm.slane %v689_v51, 3 }
 0x63b   : > { %4147 = vrcp.f32 %v5904_v12  ;;  %vm2398_vm6 = vweird.f32 %v5904_v12 }
 0x63c   : > { %6964 = vst [vmem:[#allocation29_spill] sm:$0xff] %v5971_v19  ;;  %v2295_v51 = vadd.f32 %v2294_v26, %v5971_v19  ;;  %v2402_v26 = vand.u32 2147483647, %v5904_v12 }
 0x63e   : > { %vm2403_vm9 = vcmp.eq.f32.partialorder %v2402_v26, 8.507059e+37  ;;  %v6970_v26 = vld [vmem:[#allocation54_spill] sm:$0xff] }
 0x640   : > { %v4146_v48 = vpop.eup %4145 }
 0x641   : > { %v4148_v41 = vpop.eup %4147  ;;  %v5955_v22 = vadd.f32 1.0, %v4146_v48  ;;  %v5989_v48 = vld [vmem:[%s6508_s12] sm:$0xff] }
 0x642   : > { %v2394_v52 = vmul.f32 %v4148_v41, %v5904_v12  ;;  %6967 = vst [vmem:[#allocation32_spill] sm:$0xff] %v5989_v48  ;;  %vm2399_vm5 = vweird.f32 %v4148_v41 }
 0x643   : > { %vm2400_vm7 = vmor %vm2398_vm6, %vm2399_vm5  ;;  %vm2428_vm14 = vweird.f32 %v5955_v22 }
 0x644   : > { %v2395_v42 = vsub.f32 1.0, %v2394_v52 }
 0x64b   : > { %v2334_v56 = vpop.f32.mrf.mxu2 }
 0x64c   : > { %v2378_v55 = vadd.f32 %v2334_v56, %v2255_v9  ;;  %v5976_v9 = vld [vmem:[%s6508_s12 + $0x10] sm:$0xff]  ;;  %v5982_v56 = vld [vmem:[%s6508_s12 + $0x8] sm:$0xff] }
 0x64d   : > { %6965 = vst [vmem:[#allocation30_spill] sm:$0xff] %v5976_v9  ;;  %2477 = vmatpush.msrb.mxu1 %v5976_v9 }
 0x64e   : > { %v3917_v1 = vmul.f32 -1.442695, %v2378_v55  ;;  %6966 = vst [vmem:[#allocation31_spill] sm:$0xff] %v5982_v56  ;;  %v2374_v55 = vpop.f32.mrf.mxu0 }
 0x64f   : > { %2478 = vmatpush.msrb.mxu1 %v5982_v56  ;;  %v2380_v18 = vadd.f32 %v2374_v55, %v2295_v51 }
 0x650   : > { %4149 = vpow2.f32 %v3917_v1  ;;  %v2396_v1 = vmul.f32 %v4148_v41, %v2395_v42  ;;  %v2404_v42 = vand.u32 2147483648, %v5904_v12 }
 0x651   : > { %4151 = vrcp.f32 %v5955_v22  ;;  %2479 = vmatpush.msrb.mxu1 %v5989_v48 }
 0x652   : > { %v2397_v38 = vadd.f32 %v4148_v41, %v2396_v1  ;;  %v2405_v48 = vor.u32 1.1754944e-38, %v2404_v42 }
 0x653   : > { %2671 = vmatpush.msra.mxu1 %v5614_v8 }
 0x654   : > { %v2401_v55 = vsel %vm2400_vm7, %v4148_v41, %v2397_v38 }
 0x655   : > { %2672 = vmatpush.msra.mxu1 %v5623_v11  ;;  %v2406_v9 = vsel %vm2403_vm9, %v2405_v48, %v2401_v55  ;;  %v6971_v55 = vld [vmem:[#allocation10_spill] sm:$0xff] }
 0x656   : > { %v4150_v2 = vpop.eup %4149 }
 0x657   : > { %v2391_v30 = vadd.f32 1.0, %v4150_v2  ;;  %v4152_v52 = vpop.eup %4151  ;;  %2673 = vmatpush.msra.mxu1 %v5632_v14 }
 0x658   : > { %v2424_v60 = vmul.f32 %v4152_v52, %v5955_v22  ;;  %vm2429_vm13 = vweird.f32 %v4152_v52 }
 0x659   : > { %4153 = vrcp.f32 %v2391_v30  ;;  %v2419_v4 = vand.u32 2147483648, %v2391_v30  ;;  %v2417_v51 = vand.u32 2147483647, %v2391_v30  ;;  %vm2413_vm10 = vweird.f32 %v2391_v30  ;;  %2674 = vmatpush.msra.mxu1 %v5641_v17  ;;  %vm2430_vm15 = vmor %vm2428_vm14, %vm2429_vm13 }
 0x65a   : > { %4155 = vtanh.f32 %v2380_v18  ;;  %v2425_v56 = vsub.f32 1.0, %v2424_v60 }
 0x65b   : > { %v2420_v12 = vor.u32 1.1754944e-38, %v2419_v4  ;;  %vm2418_vm12 = vcmp.eq.f32.partialorder %v2417_v51, 8.507059e+37  ;;  %2675 = vmatpush.msra.mxu1 %v5650_v35  ;;  %v2434_v4 = vand.u32 2147483648, %v5955_v22 }
 0x65c   : > { %v2426_v11 = vmul.f32 %v4152_v52, %v2425_v56 }
 0x65d   : > { %2676 = vmatpush.msra.mxu1 %v5659_v50 }
 0x65f   : > { %v4154_v2 = vpop.eup %4153  ;;  %2677 = vmatpush.msra.mxu1 %v5668_v59 }
 0x660   : > { %v2409_v46 = vmul.f32 %v4154_v2, %v2391_v30  ;;  %vm2414_vm8 = vweird.f32 %v4154_v2  ;;  %v4156_v18 = vpop.eup %4155  ;;  %v2427_v30 = vadd.f32 %v4152_v52, %v2426_v11 }
 0x661   : > { %vm2415_vm11 = vmor %vm2413_vm10, %vm2414_vm8  ;;  %v2440_v41 = vmul.f32 %v4156_v18, %v2406_v9  ;;  %2678 = vmatpush.msra.mxu1 %v5677_v43  ;;  %v2435_v9 = vor.u32 1.1754944e-38, %v2434_v4 }
 0x662   : > { %v2410_v19 = vsub.f32 1.0, %v2409_v46 }
 0x663   : > { %2679 = vmatpush.msra.mxu1 %v5688_v32 }
 0x664   : > { %v2411_v1 = vmul.f32 %v4154_v2, %v2410_v19  ;;  %v2432_v19 = vand.u32 2147483647, %v5955_v22 }
 0x665   : > { %2680 = vmatpush.msra.mxu1 %v5703_v49 }
 0x666   : > { %v2412_v8 = vadd.f32 %v4154_v2, %v2411_v1  ;;  %vm2433_vm3 = vcmp.eq.f32.partialorder %v2432_v19, 8.507059e+37  ;;  %v6973_v1 = vld [vmem:[#allocation13_spill] sm:$0xff] }
 0x668   : > { %v2416_v46 = vsel %vm2415_vm11, %v4154_v2, %v2412_v8  ;;  %v6969_v2 = vld [vmem:[#allocation51_spill] sm:$0xff]  ;;  %v6974_v8 = vld [vmem:[#allocation14_spill] sm:$0xff] }
 0x669   : > { %v2421_v38 = vsel %vm2418_vm12, %v2420_v12, %v2416_v46  ;;  %2681 = vmatpush.msra.mxu1 %v6969_v2 }
 0x66a   : > { %v2439_v60 = vmul.f32 %v2421_v38, %v5792_v33  ;;  %v2431_v33 = vsel %vm2430_vm15, %v4152_v52, %v2427_v30  ;;  %v6972_v52 = vld [vmem:[#allocation12_spill] sm:$0xff] }
 0x66b   : > { %v2436_v48 = vsel %vm2433_vm3, %v2435_v9, %v2431_v33  ;;  %2682 = vmatpush.msra.mxu1 %v6970_v26 }
 0x66c   : > { %v6004_v14 = vadd.f32 %v2440_v41, %v2439_v60 }
 0x66d   : > { %2683 = vmatpush.msra.mxu1 %v6971_v55 }
 0x66e   : > { %6968 = vst [vmem:[#allocation33_spill] sm:$0xff] %v6004_v14  ;;  %4157 = vtanh.f32 %v6004_v14 }
 0x66f   : > { %2684 = vmatpush.msra.mxu1 %v6972_v52 }
 0x671   : > { %2685 = vmatpush.msra.mxu1 %v6973_v1 }
 0x673   : > { %2686 = vmatpush.msra.mxu1 %v6974_v8  ;;  %v6993_v8 = vld [vmem:[#allocation41_spill] sm:$0xff] }
 0x674   : > { %v4158_v56 = vpop.eup %4157 }
 0x675   : > { %v6015_v42 = vmul.f32 %v4158_v56, %v2436_v48  ;;  %v6975_v56 = vld [vmem:[#allocation35_spill] sm:$0xff]  ;;  %v6976_v48 = vld [vmem:[#allocation42_spill] sm:$0xff] }
 0x677   : > { %v3919_v22 = vmul.f32 -1.442695, %v6015_v42 }
 0x679   : > { %4159 = vpow2.f32 %v3919_v22  ;;  %v6977_v22 = vld [vmem:[#allocation36_spill] sm:$0xff] }
 0x67f   : > { %v4160_v51 = vpop.eup %4159 }
 0x680   : > { %v2447_v12 = vadd.f32 1.0, %v4160_v51  ;;  %v6978_v51 = vld [vmem:[#allocation47_spill] sm:$0xff] }
 0x682   : > { %4161 = vrcp.f32 %v2447_v12  ;;  %v2459_v38 = vand.u32 2147483648, %v2447_v12  ;;  %v2457_v60 = vand.u32 2147483647, %v2447_v12  ;;  %vm2453_vm5 = vweird.f32 %v2447_v12 }
 0x684   : > { %v2460_v4 = vor.u32 1.1754944e-38, %v2459_v38  ;;  %vm2458_vm7 = vcmp.eq.f32.partialorder %v2457_v60, 8.507059e+37  ;;  %v6985_v38 = vld [vmem:[#allocation44_spill] sm:$0xff]  ;;  %v6987_v60 = vld [vmem:[#allocation49_spill] sm:$0xff] }
 0x688   : > { %v4162_v46 = vpop.eup %4161 }
 0x689   : > { %v2449_v18 = vmul.f32 %v4162_v46, %v2447_v12  ;;  %vm2454_vm4 = vweird.f32 %v4162_v46  ;;  %v6979_v12 = vld [vmem:[#allocation37_spill] sm:$0xff] }
 0x68a   : > { %vm2455_vm6 = vmor %vm2453_vm5, %vm2454_vm4 }
 0x68b   : > { %v2450_v11 = vsub.f32 1.0, %v2449_v18  ;;  %v6981_v18 = vld [vmem:[#allocation38_spill] sm:$0xff] }
 0x68d   : > { %v2451_v41 = vmul.f32 %v4162_v46, %v2450_v11  ;;  %v6982_v11 = vld [vmem:[#allocation39_spill] sm:$0xff] }
 0x68f   : > { %v2452_v30 = vadd.f32 %v4162_v46, %v2451_v41  ;;  %v6986_v41 = vld [vmem:[#allocation45_spill] sm:$0xff] }
 0x691   : > { %v2456_v19 = vsel %vm2455_vm6, %v4162_v46, %v2452_v30  ;;  %v6980_v46 = vld [vmem:[#allocation48_spill] sm:$0xff] }
 0x692   : > { %v2461_v33 = vsel %vm2458_vm7, %v2460_v4, %v2456_v19  ;;  %v6988_v30 = vld [vmem:[#allocation52_spill] sm:$0xff]  ;;  %v6989_v4 = vld [vmem:[#allocation9_spill] sm:$0xff]  ;;  %v6990_v19 = vld [vmem:[#allocation11_spill] sm:$0xff] }
 0x693   : > { %v2463_v9 = vmul.f32 %v2461_v33, %v6015_v42  ;;  %v6046_v33 = vld [vmem:[%s6509_s13] ss:$0 sm:$0xff] }
 0x694   : > { %6991 = vst [vmem:[#allocation34_spill] sm:$0xff] %v6046_v33 }
 0x695   : > { %2480 = vmatmul.f32.vlgmr.msrb.gmra.mxu1 %v2463_v9 }
 0x696   : > { %2919 = vmatpush.msrb.mxu1 %v5591_v54  ;;  %v6983_v54 = vld [vmem:[#allocation40_spill] sm:$0xff] }
 0x698   : > { %2920 = vmatpush.msrb.mxu1 %v5606_v37  ;;  %v6984_v37 = vld [vmem:[#allocation43_spill] sm:$0xff] }
 0x69d   : > { %2687 = vmatmul.f32.vlgmr.msra.gmra.mxu1 %v6015_v42 }
 0x69e   : > { %2965 = vmatpush.msra.mxu1 %v6975_v56 }
 0x6a0   : > { %2966 = vmatpush.msra.mxu1 %v6976_v48 }
 0x6a2   : > { %2967 = vmatpush.msra.mxu1 %v6977_v22 }
 0x6a4   : > { %2968 = vmatpush.msra.mxu1 %v6978_v51 }
 0x6a6   : > { %2969 = vmatpush.msra.mxu1 %v6979_v12 }
 0x6a8   : > { %2970 = vmatpush.msra.mxu1 %v6980_v46 }
 0x6aa   : > { %2971 = vmatpush.msra.mxu1 %v6981_v18 }
 0x6ac   : > { %2972 = vmatpush.msra.mxu1 %v6982_v11 }
 0x6ae   : > { %2973 = vmatpush.msra.mxu1 %v6983_v54 }
 0x6b0   : > { %2974 = vmatpush.msra.mxu1 %v6984_v37 }
 0x6b2   : > { %2975 = vmatpush.msra.mxu1 %v6985_v38 }
 0x6b4   : > { %2976 = vmatpush.msra.mxu1 %v6986_v41 }
 0x6b6   : > { %2977 = vmatpush.msra.mxu1 %v6987_v60 }
 0x6b8   : > { %2978 = vmatpush.msra.mxu1 %v6988_v30 }
 0x6ba   : > { %2979 = vmatpush.msra.mxu1 %v6989_v4 }
 0x6bc   : > { %2980 = vmatpush.msra.mxu1 %v6990_v19 }
 0x712   : > { %v2481_v9 = vpop.f32.mrf.mxu1 }
 0x713   : > { %v6049_v14 = vadd.f32 %v6046_v33, %v2481_v9  ;;  %v6995_v9 = vld [vmem:[#allocation46_spill] sm:$0xff] }
 0x715   : > { %6992 = vst [vmem:[#allocation55_spill] sm:$0xff] %v6049_v14  ;;  %v6053_v1 = vadd.f32 %v6049_v14, %v6993_v8  ;;  %3445 = vrot.lane.b32.xlu0 %v6049_v14, %s4477_s22 }
 0x717   : > { %6994 = vst [vmem:[#allocation56_spill] sm:$0xff] %v6053_v1  ;;  %3921 = vmatmul.msk.f32.vlgmr.msra.gmra.mxu2 %vm728_vm1, %v6053_v1 }
 0x718   : > { %2631 = vmatpush.msra.mxu2 %v5799_v40 }
 0x71a   : > { %2632 = vmatpush.msra.mxu2 %v5803_v47 }
 0x71c   : > { %2633 = vmatpush.msra.mxu2 %v5807_v61 }
 0x71e   : > { %2634 = vmatpush.msra.mxu2 %v5811_v6 }
 0x720   : > { %2635 = vmatpush.msra.mxu2 %v5816_v5 }
 0x722   : > { %2636 = vmatpush.msra.mxu2 %v5821_v3 }
 0x724   : > { %2637 = vmatpush.msra.mxu2 %v5824_v63 }
 0x726   : > { %2638 = vmatpush.msra.mxu2 %v5828_v24 }
 0x728   : > { %2639 = vmatpush.msra.mxu2 %v5832_v23 }
 0x72a   : > { %2640 = vmatpush.msra.mxu2 %v5836_v21 }
 0x72c   : > { %2641 = vmatpush.msra.mxu2 %v5840_v7 }
 0x72e   : > { %2642 = vmatpush.msra.mxu2 %v5844_v10 }
 0x730   : > { %2643 = vmatpush.msra.mxu2 %v5848_v13 }
 0x732   : > { %2644 = vmatpush.msra.mxu2 %v5852_v16 }
 0x734   : > { %2645 = vmatpush.msra.mxu2 %v5856_v20 }
 0x736   : > { %2646 = vmatpush.msra.mxu2 %v5860_v39 }
 0x79a   : > { %v2505_v8 = vpop.f32.mrf.mxu2 }
 0x79b   : > { %v2506_v14 = vadd.f32 %v6995_v9, %v2505_v8 }
 0x79d   : > { %v3922_v1 = vmul.f32 -1.442695, %v2506_v14 }
 0x79f   : > { %4163 = vpow2.f32 %v3922_v1 }
 0x7a5   : > { %v4164_v33 = vpop.eup %4163 }
 0x7a6   : > { %v2511_v23 = vadd.f32 1.0, %v4164_v33 }
 0x7a8   : > { %4165 = vrcp.f32 %v2511_v23  ;;  %v2523_v10 = vand.u32 2147483648, %v2511_v23  ;;  %v2521_v13 = vand.u32 2147483647, %v2511_v23  ;;  %vm2517_vm9 = vweird.f32 %v2511_v23 }
 0x7aa   : > { %v2524_v20 = vor.u32 1.1754944e-38, %v2523_v10  ;;  %vm2522_vm11 = vcmp.eq.f32.partialorder %v2521_v13, 8.507059e+37  ;;  %v6140_v10 = vld [vmem:[#allocation5 + $0x1d8] sm:$0xff]  ;;  %v7000_v13 = vld [vmem:[#allocation53_spill] sm:$0xff] }
 0x7ae   : > { %v4166_v21 = vpop.eup %4165 }
 0x7af   : > { %v2513_v7 = vmul.f32 %v4166_v21, %v2511_v23  ;;  %vm2518_vm8 = vweird.f32 %v4166_v21  ;;  %v6130_v23 = vld [vmem:[#allocation5 + $0x1f8] sm:$0xff] }
 0x7b0   : > { %vm2519_vm10 = vmor %vm2517_vm9, %vm2518_vm8 }
 0x7b1   : > { %v2514_v24 = vsub.f32 1.0, %v2513_v7  ;;  %v6999_v7 = vld [vmem:[#allocation50_spill] sm:$0xff] }
 0x7b3   : > { %v2515_v63 = vmul.f32 %v4166_v21, %v2514_v24  ;;  %v6998_v24 = vld [vmem:[#allocation32_spill] sm:$0xff] }
 0x7b5   : > { %v2516_v16 = vadd.f32 %v4166_v21, %v2515_v63  ;;  %v6084_v63 = vld [vmem:[%s6500_s4] sm:$0x3] }
 0x7b7   : > { %v2520_v39 = vsel %vm2519_vm10, %v4166_v21, %v2516_v16  ;;  %v6136_v21 = vld [vmem:[%s6505_s9] sm:$0xff] }
 0x7b8   : > { %v2525_v3 = vsel %vm2522_vm11, %v2524_v20, %v2520_v39  ;;  %v6144_v16 = vld [vmem:[#allocation5 + $0x1b8] sm:$0xff]  ;;  %v7003_v20 = vld [vmem:[#allocation26_spill] sm:$0xff] }
 0x7b9   : > { %v2527_v8 = vmul.f32 %v2525_v3, %v2506_v14  ;;  %v6126_v3 = vld [vmem:[%s6505_s9 + $0x20] sm:$0xff] }
 0x7bb   : > { %3923 = vmatmul.msk.f32.vlgmr.msra.gmra.mxu3 %vm2213_vm2, %v2527_v8  ;;  %3924 = vmatmul.msk.f32.vlgmr.msra.gmra.mxu0 %vm2213_vm2, %v2527_v8 }
 0x7bc   : > { %3925 = vmatmul.msk.f32.vlgmr.msrb.gmra.mxu2 %vm2213_vm2, %v2527_v8  ;;  %2651 = vmatpush.msra.mxu3 %v6975_v56 }
 0x7bd   : > { %2778 = vmatpush.msra.mxu0 %v5887_v34  ;;  %3931 = vmatpush.msk.msrb.mxu2 %vm753_vm0, %v6084_v63 }
 0x7be   : > { %2652 = vmatpush.msra.mxu3 %v6976_v48 }
 0x7bf   : > { %2779 = vmatpush.msra.mxu0 %v5893_v15 }
 0x7c0   : > { %2653 = vmatpush.msra.mxu3 %v6977_v22 }
 0x7c1   : > { %2780 = vmatpush.msra.mxu0 %v5899_v31 }
 0x7c2   : > { %2654 = vmatpush.msra.mxu3 %v6978_v51 }
 0x7c3   : > { %3926 = vmatmul.msk.f32.vlgmr.msrb.gmra.mxu3 %vm2213_vm2, %v2527_v8  ;;  %2627 = vmatmul.f32.vlgmr.msrb.gmra.mxu0 %v6015_v42 }
 0x7c4   : > { %2647 = vmatmul.f32.vlgmr.msra.gmra.mxu2 %v6015_v42  ;;  %2655 = vmatpush.msra.mxu3 %v6979_v12 }
 0x7c5   : > { %2781 = vmatpush.msra.mxu0 %v5909_v62  ;;  %2879 = vmatpush.msra.mxu2 %v5693_v45  ;;  %v6996_v45 = vld [vmem:[#allocation30_spill] sm:$0xff] }
 0x7c6   : > { %2656 = vmatpush.msra.mxu3 %v6980_v46 }
 0x7c7   : > { %2782 = vmatpush.msra.mxu0 %v5915_v0  ;;  %2880 = vmatpush.msra.mxu2 %v5715_v28  ;;  %v6997_v28 = vld [vmem:[#allocation31_spill] sm:$0xff] }
 0x7c8   : > { %2657 = vmatpush.msra.mxu3 %v6981_v18 }
 0x7c9   : > { %2783 = vmatpush.msra.mxu0 %v5923_v27 }
 0x7ca   : > { %2658 = vmatpush.msra.mxu3 %v6982_v11 }
 0x7cb   : > { %2784 = vmatpush.msra.mxu0 %v5929_v58 }
 0x7cc   : > { %2659 = vmatpush.msra.mxu3 %v6983_v54  ;;  %v7005_v54 = vld [vmem:[#allocation27_spill] sm:$0xff] }
 0x7cd   : > { %2785 = vmatpush.msra.mxu0 %v5935_v29 }
 0x7ce   : > { %2660 = vmatpush.msra.mxu3 %v6984_v37 }
 0x7cf   : > { %2786 = vmatpush.msra.mxu0 %v5940_v25 }
 0x7d0   : > { %2661 = vmatpush.msra.mxu3 %v6985_v38 }
 0x7d1   : > { %2787 = vmatpush.msra.mxu0 %v5946_v36 }
 0x7d2   : > { %2662 = vmatpush.msra.mxu3 %v6986_v41 }
 0x7d3   : > { %2788 = vmatpush.msra.mxu0 %v5952_v57 }
 0x7d4   : > { %2663 = vmatpush.msra.mxu3 %v6987_v60 }
 0x7d5   : > { %2789 = vmatpush.msra.mxu0 %v5961_v53 }
 0x7d6   : > { %2664 = vmatpush.msra.mxu3 %v6988_v30 }
 0x7d7   : > { %2790 = vmatpush.msra.mxu0 %v5967_v44 }
 0x7d8   : > { %2665 = vmatpush.msra.mxu3 %v6989_v4 }
 0x7d9   : > { %2791 = vmatpush.msra.mxu0 %v6996_v45 }
 0x7da   : > { %2666 = vmatpush.msra.mxu3 %v6990_v19  ;;  %v7006_v19 = vld [vmem:[#allocation29_spill] sm:$0xff] }
 0x7db   : > { %2667 = vmatmul.f32.vlgmr.msra.gmra.mxu3 %v6015_v42  ;;  %2792 = vmatpush.msra.mxu0 %v6997_v28 }
 0x7dc   : > { %2859 = vmatpush.msrb.mxu3 %v6126_v3 }
 0x7dd   : > { %2793 = vmatpush.msra.mxu0 %v6998_v24 }
 0x7de   : > { %2860 = vmatpush.msrb.mxu3 %v6136_v21 }
 0x7df   : > { %2985 = vmatpush.msrb.mxu0 %v6130_v23 }
 0x7e0   : > { %2899 = vmatpush.msra.mxu3 %v6999_v7  ;;  %v2688_v7 = vpop.f32.mrf.mxu1 }
 0x7e1   : > { %2986 = vmatpush.msrb.mxu0 %v6140_v10 }
 0x7e2   : > { %2900 = vmatpush.msra.mxu3 %v7000_v13 }
 0x7e3   : > { %2987 = vmatpush.msrb.mxu0 %v6144_v16 }
 0x7e5   : > { %2988 = vmatpush.msrb.mxu0 %v5641_v17  ;;  %v7001_v17 = vld [vmem:[#allocation13_spill] sm:$0xff] }
 0x7e7   : > { %2989 = vmatpush.msrb.mxu0 %v5650_v35  ;;  %v7002_v35 = vld [vmem:[#allocation14_spill] sm:$0xff] }
 0x7e9   : > { %2990 = vmatpush.msrb.mxu0 %v5659_v50 }
 0x7eb   : > { %2991 = vmatpush.msrb.mxu0 %v5668_v59 }
 0x7ed   : > { %2992 = vmatpush.msrb.mxu0 %v5677_v43 }
 0x7ef   : > { %2993 = vmatpush.msrb.mxu0 %v5688_v32 }
 0x7f1   : > { %2994 = vmatpush.msrb.mxu0 %v5703_v49 }
 0x7f3   : > { %2995 = vmatpush.msrb.mxu0 %v6969_v2  ;;  %v7004_v2 = vld [vmem:[#allocation28_spill] sm:$0xff] }
 0x7f5   : > { %2996 = vmatpush.msrb.mxu0 %v6970_v26 }
 0x7f7   : > { %2997 = vmatpush.msrb.mxu0 %v6971_v55 }
 0x7f9   : > { %2998 = vmatpush.msrb.mxu0 %v6972_v52 }
 0x7fb   : > { %2999 = vmatpush.msrb.mxu0 %v7001_v17 }
 0x7fd   : > { %3000 = vmatpush.msrb.mxu0 %v7002_v35 }
 0x838   : > { %v2568_v50 = vpop.f32.mrf.mxu0 }
 0x839   : > { %v2569_v42 = vadd.f32 %v2568_v50, %v7004_v2 }
 0x83e   : > { %v2548_v59 = vpop.f32.mrf.mxu3 }
 0x83f   : > { %v2549_v43 = vadd.f32 %v2548_v59, %v7003_v20  ;;  %v2588_v39 = vpop.f32.mrf.mxu2 }
 0x840   : > { %v2628_v32 = vpop.f32.mrf.mxu0  ;;  %v2589_v37 = vadd.f32 %v2588_v39, %v7005_v54 }
 0x841   : > { %v2691_v14 = vadd.f32 %v2628_v32, %v2549_v43 }
 0x843   : > { %v3927_v49 = vmul.f32 -1.442695, %v2691_v14 }
 0x845   : > { %4167 = vpow2.f32 %v3927_v49 }
 0x846   : > { %v2608_v51 = vpop.f32.mrf.mxu3 }
 0x847   : > { %v2648_v26 = vpop.f32.mrf.mxu2  ;;  %v2609_v33 = vadd.f32 %v2608_v51, %v7006_v19 }
 0x848   : > { %v2692_v1 = vadd.f32 %v2648_v26, %v2569_v42 }
 0x849   : > { %v2694_v17 = vadd.f32 %v2688_v7, %v2609_v33 }
 0x84a   : > { %v3928_v55 = vmul.f32 -1.442695, %v2692_v1 }
 0x84b   : > { %v4168_v56 = vpop.eup %4167 }
 0x84c   : > { %4169 = vpow2.f32 %v3928_v55  ;;  %v2704_v52 = vadd.f32 1.0, %v4168_v56 }
 0x84e   : > { %4171 = vrcp.f32 %v2704_v52  ;;  %v2718_v43 = vand.u32 2147483648, %v2704_v52  ;;  %vm2712_vm3 = vweird.f32 %v2704_v52  ;;  %v2716_v39 = vand.u32 2147483647, %v2704_v52 }
 0x850   : > { %v2719_v1 = vor.u32 1.1754944e-38, %v2718_v43  ;;  %vm2717_vm6 = vcmp.eq.f32.partialorder %v2716_v39, 8.507059e+37 }
 0x852   : > { %v4170_v48 = vpop.eup %4169 }
 0x853   : > { %v2705_v22 = vadd.f32 1.0, %v4170_v48  ;;  %v7007_v48 = vld [vmem:[#allocation33_spill] sm:$0xff] }
 0x854   : > { %v4172_v12 = vpop.eup %4171 }
 0x855   : > { %4173 = vrcp.f32 %v2705_v22  ;;  %v2708_v46 = vmul.f32 %v4172_v12, %v2704_v52  ;;  %v2733_v35 = vand.u32 2147483648, %v2705_v22  ;;  %vm2713_vm13 = vweird.f32 %v4172_v12 }
 0x856   : > { %vm2727_vm14 = vweird.f32 %v2705_v22  ;;  %v2731_v59 = vand.u32 2147483647, %v2705_v22  ;;  %vm2714_vm4 = vmor %vm2712_vm3, %vm2713_vm13 }
 0x857   : > { %v2709_v38 = vsub.f32 1.0, %v2708_v46  ;;  %v2734_v49 = vor.u32 1.1754944e-38, %v2733_v35 }
 0x858   : > { %vm2732_vm5 = vcmp.eq.f32.partialorder %v2731_v59, 8.507059e+37 }
 0x859   : > { %v2710_v8 = vmul.f32 %v4172_v12, %v2709_v38 }
 0x85b   : > { %v4174_v18 = vpop.eup %4173  ;;  %v2711_v50 = vadd.f32 %v4172_v12, %v2710_v8 }
 0x85c   : > { %v2723_v11 = vmul.f32 %v4174_v18, %v2705_v22  ;;  %vm2728_vm12 = vweird.f32 %v4174_v18 }
 0x85d   : > { %vm2729_vm15 = vmor %vm2727_vm14, %vm2728_vm12  ;;  %v2715_v42 = vsel %vm2714_vm4, %v4172_v12, %v2711_v50 }
 0x85e   : > { %v2724_v41 = vsub.f32 1.0, %v2723_v11  ;;  %v2668_v60 = vpop.f32.mrf.mxu3  ;;  %v2720_v56 = vsel %vm2717_vm6, %v2719_v1, %v2715_v42 }
 0x85f   : > { %v2693_v30 = vadd.f32 %v2668_v60, %v2589_v37 }
 0x860   : > { %v2725_v4 = vmul.f32 %v4174_v18, %v2724_v41 }
 0x861   : > { %v3929_v9 = vmul.f32 -1.442695, %v2693_v30 }
 0x862   : > { %v2726_v13 = vadd.f32 %v4174_v18, %v2725_v4 }
 0x863   : > { %4175 = vpow2.f32 %v3929_v9 }
 0x864   : > { %v2730_v32 = vsel %vm2729_vm15, %v4174_v18, %v2726_v13  ;;  %4177 = vtanh.f32 %v2694_v17 }
 0x865   : > { %v2735_v55 = vsel %vm2732_vm5, %v2734_v49, %v2730_v32 }
 0x866   : > { %v2753_v51 = vmul.f32 %v2735_v55, %v7007_v48  ;;  %v4323_v55 = vld [vmem:[%s6505_s9 + $0x30] sm:$0xff]  ;;  %v7008_v48 = vld [vmem:[#allocation15_spill] sm:$0xff] }
 0x869   : > { %v4176_v14 = vpop.eup %4175 }
 0x86a   : > { %v2706_v26 = vadd.f32 1.0, %v4176_v14  ;;  %v4178_v22 = vpop.eup %4177 }
 0x86b   : > { %v2754_v46 = vmul.f32 %v4178_v22, %v2720_v56  ;;  %v4324_v56 = vld [vmem:[%s6505_s9 + $0x10] sm:$0xff]  ;;  %v7010_v22 = vld [vmem:[#allocation17_spill] sm:$0xff] }
 0x86c   : > { %4179 = vrcp.f32 %v2706_v26  ;;  %v2748_v38 = vand.u32 2147483648, %v2706_v26  ;;  %v2746_v41 = vand.u32 2147483647, %v2706_v26  ;;  %vm2742_vm8 = vweird.f32 %v2706_v26 }
 0x86d   : > { %v6165_v37 = vadd.f32 %v2754_v46, %v2753_v51  ;;  %v7009_v51 = vld [vmem:[#allocation16_spill] sm:$0xff]  ;;  %v7011_v46 = vld [vmem:[#allocation18_spill] sm:$0xff] }
 0x86e   : > { %v2749_v30 = vor.u32 1.1754944e-38, %v2748_v38  ;;  %vm2747_vm10 = vcmp.eq.f32.partialorder %v2746_v41, 8.507059e+37 }
 0x86f   : > { %4181 = vtanh.f32 %v6165_v37 }
 0x872   : > { %v4180_v11 = vpop.eup %4179 }
 0x873   : > { %v2738_v52 = vmul.f32 %v4180_v11, %v2706_v26  ;;  %vm2743_vm7 = vweird.f32 %v4180_v11 }
 0x874   : > { %vm2744_vm9 = vmor %vm2742_vm8, %vm2743_vm7 }
 0x875   : > { %v2739_v18 = vsub.f32 1.0, %v2738_v52  ;;  %v4182_v33 = vpop.eup %4181  ;;  %v7013_v52 = vld [vmem:[#allocation20_spill] sm:$0xff] }
 0x877   : > { %v2740_v12 = vmul.f32 %v4180_v11, %v2739_v18  ;;  %v7018_v18 = vld [vmem:[#allocation25_spill] sm:$0xff] }
 0x879   : > { %v2741_v60 = vadd.f32 %v4180_v11, %v2740_v12  ;;  %v7019_v12 = vld [vmem:[#allocation34_spill] sm:$0xff] }
 0x87b   : > { %v2745_v4 = vsel %vm2744_vm9, %v4180_v11, %v2741_v60  ;;  %v7012_v11 = vld [vmem:[#allocation19_spill] sm:$0xff]  ;;  %v7021_v60 = vld [vmem:[#allocation56_spill] sm:$0xff] }
 0x87c   : > { %v2750_v9 = vsel %vm2747_vm10, %v2749_v30, %v2745_v4  ;;  %v6208_v4 = vld [vmem:[#allocation5 + $0x1e0] sm:$0xff] }
 0x87d   : > { %v6168_v8 = vmul.f32 %v4182_v33, %v2750_v9  ;;  %v6211_v33 = vld [vmem:[#allocation5 + $0x1c0] sm:$0xff] }
 0x87e   : > { %v6214_v9 = vld [vmem:[#allocation5 + $0x1a0] sm:$0xff] }
 0x87f   : > { %v3930_v7 = vmul.f32 -1.442695, %v6168_v8 }
 0x881   : > { %4183 = vpow2.f32 %v3930_v7  ;;  %v6217_v7 = vld [vmem:[#allocation5 + $0x180] sm:$0xff] }
 0x887   : > { %v4184_v13 = vpop.eup %4183 }
 0x888   : > { %v2761_v17 = vadd.f32 1.0, %v4184_v13  ;;  %v6220_v13 = vld [vmem:[#allocation5 + $0x160] sm:$0xff] }
 0x88a   : > { %4185 = vrcp.f32 %v2761_v17  ;;  %v2773_v43 = vand.u32 2147483648, %v2761_v17  ;;  %v2771_v32 = vand.u32 2147483647, %v2761_v17  ;;  %vm2767_vm12 = vweird.f32 %v2761_v17 }
 0x88c   : > { %v2774_v49 = vor.u32 1.1754944e-38, %v2773_v43  ;;  %vm2772_vm14 = vcmp.eq.f32.partialorder %v2771_v32, 8.507059e+37  ;;  %v6235_v43 = vld [vmem:[#allocation5 + $0xc0] sm:$0xff] }
 0x88d   : > { %7025 = vst [vmem:[#allocation61_spill] sm:$0xff] %v6235_v43  ;;  %v6241_v32 = vld [vmem:[#allocation5 + $0x80] sm:$0xff] }
 0x88e   : > { %7027 = vst [vmem:[#allocation63_spill] sm:$0xff] %v6241_v32 }
 0x890   : > { %v4186_v35 = vpop.eup %4185 }
 0x891   : > { %v2763_v50 = vmul.f32 %v4186_v35, %v2761_v17  ;;  %vm2768_vm11 = vweird.f32 %v4186_v35  ;;  %v6223_v17 = vld [vmem:[#allocation5 + $0x140] sm:$0xff] }
 0x892   : > { %vm2769_vm13 = vmor %vm2767_vm12, %vm2768_vm11 }
 0x893   : > { %v2764_v59 = vsub.f32 1.0, %v2763_v50  ;;  %v6229_v50 = vld [vmem:[#allocation5 + $0x100] sm:$0xff] }
 0x894   : > { %7023 = vst [vmem:[#allocation59_spill] sm:$0xff] %v6229_v50 }
 0x895   : > { %v2765_v39 = vmul.f32 %v4186_v35, %v2764_v59  ;;  %v6232_v59 = vld [vmem:[#allocation5 + $0xe0] sm:$0xff] }
 0x896   : > { %7024 = vst [vmem:[#allocation60_spill] sm:$0xff] %v6232_v59 }
 0x897   : > { %v2766_v14 = vadd.f32 %v4186_v35, %v2765_v39  ;;  %v6238_v39 = vld [vmem:[#allocation5 + $0xa0] sm:$0xff] }
 0x898   : > { %7026 = vst [vmem:[#allocation62_spill] sm:$0xff] %v6238_v39 }
 0x899   : > { %v2770_v42 = vsel %vm2769_vm13, %v4186_v35, %v2766_v14  ;;  %v6226_v35 = vld [vmem:[#allocation5 + $0x120] sm:$0xff] }
 0x89a   : > { %v2775_v26 = vsel %vm2772_vm14, %v2774_v49, %v2770_v42  ;;  %7022 = vst [vmem:[#allocation58_spill] sm:$0xff] %v6226_v35  ;;  %v6244_v14 = vld [vmem:[#allocation5 + $0x60] sm:$0xff] }
 0x89b   : > { %v2777_v1 = vmul.f32 %v2775_v26, %v6168_v8  ;;  %7028 = vst [vmem:[#allocation64_spill] sm:$0xff] %v6244_v14  ;;  %v6247_v49 = vld [vmem:[#allocation5 + $0x40] sm:$0xff] }
 0x89c   : > { %7029 = vst [vmem:[#allocation65_spill] sm:$0xff] %v6247_v49  ;;  %v6250_v42 = vld [vmem:[#allocation5 + $0x20] sm:$0xff] }
 0x89d   : > { %2794 = vmatmul.f32.vlgmr.msra.gmra.mxu0 %v2777_v1  ;;  %7030 = vst [vmem:[#allocation66_spill] sm:$0xff] %v6250_v42  ;;  %v6253_v26 = vld [vmem:[#allocation5] sm:$0xff] }
 0x89e   : > { %3213 = vmatpush.msra.mxu0 %v4323_v55  ;;  %7031 = vst [vmem:[#allocation51_spill] sm:$0xff] %v6253_v26  ;;  %v6259_v55 = vld [vmem:[%s6501_s5] ss:$0 sm:$0xff] }
 0x8a0   : > { %3214 = vmatpush.msra.mxu0 %v4324_v56 }
 0x8a5   : > { %3001 = vmatmul.f32.vlgmr.msrb.gmra.mxu0 %v6168_v8 }
 0x8a6   : > { %3259 = vmatpush.msrb.mxu0 %v5799_v40  ;;  %v7014_v40 = vld [vmem:[#allocation21_spill] sm:$0xff] }
 0x8a8   : > { %3260 = vmatpush.msrb.mxu0 %v5803_v47  ;;  %v7015_v47 = vld [vmem:[#allocation22_spill] sm:$0xff] }
 0x8aa   : > { %3261 = vmatpush.msrb.mxu0 %v5807_v61  ;;  %v7016_v61 = vld [vmem:[#allocation23_spill] sm:$0xff] }
 0x8ac   : > { %3262 = vmatpush.msrb.mxu0 %v5811_v6  ;;  %v7017_v6 = vld [vmem:[#allocation24_spill] sm:$0xff] }
 0x8ae   : > { %3263 = vmatpush.msrb.mxu0 %v5816_v5 }
 0x8b0   : > { %3264 = vmatpush.msrb.mxu0 %v7008_v48 }
 0x8b2   : > { %3265 = vmatpush.msrb.mxu0 %v7009_v51 }
 0x8b4   : > { %3266 = vmatpush.msrb.mxu0 %v7010_v22 }
 0x8b6   : > { %3267 = vmatpush.msrb.mxu0 %v7011_v46 }
 0x8b8   : > { %3268 = vmatpush.msrb.mxu0 %v7012_v11 }
 0x8ba   : > { %3269 = vmatpush.msrb.mxu0 %v7013_v52 }
 0x8bc   : > { %3270 = vmatpush.msrb.mxu0 %v7014_v40 }
 0x8be   : > { %3271 = vmatpush.msrb.mxu0 %v7015_v47 }
 0x8c0   : > { %3272 = vmatpush.msrb.mxu0 %v7016_v61 }
 0x8c2   : > { %3273 = vmatpush.msrb.mxu0 %v7017_v6 }
 0x8c4   : > { %3274 = vmatpush.msrb.mxu0 %v7018_v18 }
 0x91a   : > { %v2795_v38 = vpop.f32.mrf.mxu0 }
 0x91b   : > { %v6196_v41 = vadd.f32 %v7019_v12, %v2795_v38 }
 0x91d   : > { %7020 = vst [vmem:[#allocation57_spill] sm:$0xff] %v6196_v41  ;;  %v6200_v30 = vadd.f32 %v6196_v41, %v7021_v60  ;;  %3433 = vrot.lane.b32.xlu2 %v6196_v41, %s4478_s19  ;;  %3448 = vrot.lane.b32.xlu0 %v6196_v41, %s4479_s20 }
 0x91f   : > { %3932 = vmatmul.msk.f32.vlgmr.msrb.gmra.mxu2 %vm728_vm1, %v6200_v30 }
 0x920   : > { %2925 = vmatpush.msrb.mxu2 %v6208_v4 }
 0x922   : > { %2926 = vmatpush.msrb.mxu2 %v6211_v33 }
 0x924   : > { %2927 = vmatpush.msrb.mxu2 %v6214_v9 }
 0x926   : > { %2928 = vmatpush.msrb.mxu2 %v6217_v7 }
 0x928   : > { %2929 = vmatpush.msrb.mxu2 %v6220_v13 }
 0x92a   : > { %2930 = vmatpush.msrb.mxu2 %v6223_v17 }
 0x92c   : > { %2931 = vmatpush.msrb.mxu2 %v6226_v35 }
 0x92e   : > { %2932 = vmatpush.msrb.mxu2 %v6229_v50 }
 0x930   : > { %2933 = vmatpush.msrb.mxu2 %v6232_v59 }
 0x932   : > { %2934 = vmatpush.msrb.mxu2 %v6235_v43 }
 0x934   : > { %2935 = vmatpush.msrb.mxu2 %v6238_v39 }
 0x936   : > { %2936 = vmatpush.msrb.mxu2 %v6241_v32 }
 0x938   : > { %2937 = vmatpush.msrb.mxu2 %v6244_v14 }
 0x93a   : > { %2938 = vmatpush.msrb.mxu2 %v6247_v49 }
 0x93c   : > { %2939 = vmatpush.msrb.mxu2 %v6250_v42 }
 0x93e   : > { %2940 = vmatpush.msrb.mxu2 %v6253_v26 }
 0x9a2   : > { %v2819_v1 = vpop.f32.mrf.mxu2 }
 0x9a3   : > { %v2820_v56 = vadd.f32 %v6259_v55, %v2819_v1 }
 0x9a5   : > { %v3933_v38 = vmul.f32 -1.442695, %v2820_v56 }
 0x9a7   : > { %4187 = vpow2.f32 %v3933_v38 }
 0x9ad   : > { %v4188_v41 = vpop.eup %4187 }
 0x9ae   : > { %v2825_v60 = vadd.f32 1.0, %v4188_v41  ;;  %v4342_v41 = vld [vmem:[#allocation5 + $0x1e8] sm:$0xff] }
 0x9b0   : > { %4189 = vrcp.f32 %v2825_v60  ;;  %v2837_v32 = vand.u32 2147483648, %v2825_v60  ;;  %v2835_v26 = vand.u32 2147483647, %v2825_v60  ;;  %vm2831_vm3 = vweird.f32 %v2825_v60 }
 0x9b2   : > { %v2838_v59 = vor.u32 1.1754944e-38, %v2837_v32  ;;  %vm2836_vm5 = vcmp.eq.f32.partialorder %v2835_v26, 8.507059e+37 }
 0x9b6   : > { %v4190_v49 = vpop.eup %4189 }
 0x9b7   : > { %v2827_v14 = vmul.f32 %v4190_v49, %v2825_v60  ;;  %vm2832_vm15 = vweird.f32 %v4190_v49  ;;  %v4344_v60 = vld [vmem:[#allocation5 + $0x1a8] sm:$0xff] }
 0x9b8   : > { %vm2833_vm4 = vmor %vm2831_vm3, %vm2832_vm15 }
 0x9b9   : > { %v2828_v42 = vsub.f32 1.0, %v2827_v14 }
 0x9bb   : > { %v2829_v39 = vmul.f32 %v4190_v49, %v2828_v42 }
 0x9bd   : > { %v2830_v43 = vadd.f32 %v4190_v49, %v2829_v39  ;;  %v4343_v39 = vld [vmem:[#allocation5 + $0x1c8] sm:$0xff] }
 0x9bf   : > { %v2834_v50 = vsel %vm2833_vm4, %v4190_v49, %v2830_v43 }
 0x9c0   : > { %v2839_v35 = vsel %vm2836_vm5, %v2838_v59, %v2834_v50 }
 0x9c1   : > { %v2841_v1 = vmul.f32 %v2839_v35, %v2820_v56  ;;  %v4345_v35 = vld [vmem:[#allocation5 + $0x188] sm:$0xff] }
 0x9c3   : > { %3934 = vmatmul.msk.f32.vlgmr.msrb.gmra.mxu3 %vm2213_vm2, %v2841_v1  ;;  %3935 = vmatmul.msk.f32.vlgmr.msra.gmra.mxu2 %vm2213_vm2, %v2841_v1 }
 0x9c4   : > { %3937 = vmatmul.msk.f32.vlgmr.msrb.gmra.mxu1 %vm2213_vm2, %v2841_v1  ;;  %2945 = vmatpush.msrb.mxu3 %v4342_v41 }
 0x9c5   : > { %3092 = vmatpush.msra.mxu2 %v5887_v34  ;;  %3173 = vmatpush.msrb.mxu1 %v6126_v3  ;;  %v4346_v34 = vld [vmem:[%s6505_s9 + $0x38] sm:$0xff] }
 0x9c6   : > { %2946 = vmatpush.msrb.mxu3 %v4343_v39 }
 0x9c7   : > { %3093 = vmatpush.msra.mxu2 %v5893_v15  ;;  %3174 = vmatpush.msrb.mxu1 %v6136_v21  ;;  %v4347_v15 = vld [vmem:[%s6505_s9 + $0x18] sm:$0xff] }
 0x9c8   : > { %2947 = vmatpush.msrb.mxu3 %v4344_v60 }
 0x9c9   : > { %3094 = vmatpush.msra.mxu2 %v5899_v31  ;;  %v4349_v31 = vld [vmem:[%s6505_s9 + $0x8] sm:$0xff] }
 0x9ca   : > { %2948 = vmatpush.msrb.mxu3 %v4345_v35 }
 0x9cb   : > { %3936 = vmatmul.msk.f32.vlgmr.msra.gmra.mxu3 %vm2213_vm2, %v2841_v1  ;;  %2941 = vmatmul.f32.vlgmr.msrb.gmra.mxu2 %v6168_v8  ;;  %v3002_v1 = vpop.f32.mrf.mxu0 }
 0x9cc   : > { %2949 = vmatpush.msrb.mxu3 %v5816_v5  ;;  %2981 = vmatmul.f32.vlgmr.msra.gmra.mxu1 %v6168_v8  ;;  %v4348_v5 = vld [vmem:[%s6505_s9 + $0x28] sm:$0xff] }
 0x9cd   : > { %3095 = vmatpush.msra.mxu2 %v5909_v62  ;;  %3233 = vmatpush.msra.mxu1 %v4346_v34  ;;  %v4350_v62 = vld [vmem:[#allocation5 + $0x198] sm:$0xff] }
 0x9ce   : > { %2950 = vmatpush.msrb.mxu3 %v7008_v48 }
 0x9cf   : > { %3096 = vmatpush.msra.mxu2 %v5915_v0  ;;  %3234 = vmatpush.msra.mxu1 %v4347_v15  ;;  %v4351_v0 = vld [vmem:[#allocation5 + $0x178] sm:$0xff] }
 0x9d0   : > { %2951 = vmatpush.msrb.mxu3 %v7009_v51 }
 0x9d1   : > { %3097 = vmatpush.msra.mxu2 %v5923_v27  ;;  %v4352_v27 = vld [vmem:[#allocation5 + $0x158] sm:$0xff] }
 0x9d2   : > { %2952 = vmatpush.msrb.mxu3 %v7010_v22 }
 0x9d3   : > { %3098 = vmatpush.msra.mxu2 %v5929_v58  ;;  %v4353_v58 = vld [vmem:[#allocation5 + $0x138] sm:$0xff] }
 0x9d4   : > { %2953 = vmatpush.msrb.mxu3 %v7011_v46 }
 0x9d5   : > { %3099 = vmatpush.msra.mxu2 %v5935_v29  ;;  %v4354_v29 = vld [vmem:[#allocation5 + $0x118] sm:$0xff] }
 0x9d6   : > { %2954 = vmatpush.msrb.mxu3 %v7012_v11 }
 0x9d7   : > { %3100 = vmatpush.msra.mxu2 %v5940_v25  ;;  %v4355_v25 = vld [vmem:[#allocation5 + $0xf8] sm:$0xff] }
 0x9d8   : > { %2955 = vmatpush.msrb.mxu3 %v7013_v52 }
 0x9d9   : > { %3101 = vmatpush.msra.mxu2 %v5946_v36  ;;  %v4356_v36 = vld [vmem:[#allocation5 + $0xd8] sm:$0xff] }
 0x9da   : > { %2956 = vmatpush.msrb.mxu3 %v7014_v40 }
 0x9db   : > { %3102 = vmatpush.msra.mxu2 %v5952_v57  ;;  %v4357_v57 = vld [vmem:[#allocation5 + $0xb8] sm:$0xff] }
 0x9dc   : > { %2957 = vmatpush.msrb.mxu3 %v7015_v47 }
 0x9dd   : > { %3103 = vmatpush.msra.mxu2 %v5961_v53  ;;  %v4358_v53 = vld [vmem:[#allocation5 + $0x98] sm:$0xff] }
 0x9de   : > { %2958 = vmatpush.msrb.mxu3 %v7016_v61 }
 0x9df   : > { %3104 = vmatpush.msra.mxu2 %v5967_v44  ;;  %v4359_v44 = vld [vmem:[#allocation5 + $0x78] sm:$0xff] }
 0x9e0   : > { %2959 = vmatpush.msrb.mxu3 %v7017_v6 }
 0x9e1   : > { %3105 = vmatpush.msra.mxu2 %v6996_v45  ;;  %v4361_v45 = vld [vmem:[#allocation5 + $0x38] sm:$0xff] }
 0x9e2   : > { %2960 = vmatpush.msrb.mxu3 %v7018_v18 }
 0x9e3   : > { %2961 = vmatmul.f32.vlgmr.msrb.gmra.mxu3 %v6168_v8  ;;  %3106 = vmatpush.msra.mxu2 %v6997_v28  ;;  %v4362_v28 = vld [vmem:[#allocation5 + $0x18] sm:$0xff] }
 0x9e4   : > { %3942 = vmatpush.msk.msra.mxu3 %vm753_vm0, %v6084_v63  ;;  %v4360_v63 = vld [vmem:[#allocation5 + $0x58] sm:$0xff] }
 0x9e5   : > { %3107 = vmatpush.msra.mxu2 %v6998_v24 }
 0x9e6   : > { %3193 = vmatpush.msrb.mxu3 %v4348_v5 }
 0x9e7   : > { %3299 = vmatpush.msrb.mxu2 %v6130_v23 }
 0x9e8   : > { %3194 = vmatpush.msrb.mxu3 %v4349_v31 }
 0x9e9   : > { %3300 = vmatpush.msrb.mxu2 %v6140_v10 }
 0x9eb   : > { %3301 = vmatpush.msrb.mxu2 %v6144_v16 }
 0x9ed   : > { %3302 = vmatpush.msrb.mxu2 %v4350_v62 }
 0x9ef   : > { %3303 = vmatpush.msrb.mxu2 %v4351_v0 }
 0x9f1   : > { %3304 = vmatpush.msrb.mxu2 %v4352_v27 }
 0x9f3   : > { %3305 = vmatpush.msrb.mxu2 %v4353_v58 }
 0x9f5   : > { %3306 = vmatpush.msrb.mxu2 %v4354_v29 }
 0x9f7   : > { %3307 = vmatpush.msrb.mxu2 %v4355_v25 }
 0x9f9   : > { %3308 = vmatpush.msrb.mxu2 %v4356_v36 }
 0x9fb   : > { %3309 = vmatpush.msrb.mxu2 %v4357_v57 }
 0x9fd   : > { %3310 = vmatpush.msrb.mxu2 %v4358_v53 }
 0x9ff   : > { %3311 = vmatpush.msrb.mxu2 %v4359_v44 }
 0xa01   : > { %3312 = vmatpush.msrb.mxu2 %v4360_v63 }
 0xa03   : > { %3313 = vmatpush.msrb.mxu2 %v4361_v45 }
 0xa05   : > { %3314 = vmatpush.msrb.mxu2 %v4362_v28 }
 0xa41   : > { %v2922_v16 = vpop.f32.mrf.mxu1 }
 0xa42   : > { %v2923_v26 = vadd.f32 %v2922_v16, %v7006_v19 }
 0xa44   : > { %v3008_v39 = vadd.f32 %v3002_v1, %v2923_v26  ;;  %v7034_v1 = vld [vmem:[#allocation59_spill] sm:$0xff] }
 0xa46   : > { %v2882_v3 = vpop.f32.mrf.mxu2  ;;  %v2862_v24 = vpop.f32.mrf.mxu3 }
 0xa47   : > { %v2863_v21 = vadd.f32 %v2862_v24, %v7003_v20  ;;  %v2883_v47 = vadd.f32 %v2882_v3, %v7004_v2 }
 0xa49   : > { %v2982_v22 = vpop.f32.mrf.mxu1 }
 0xa4e   : > { %v2942_v23 = vpop.f32.mrf.mxu2  ;;  %v2902_v48 = vpop.f32.mrf.mxu3 }
 0xa4f   : > { %v3005_v10 = vadd.f32 %v2942_v23, %v2863_v21  ;;  %v2903_v51 = vadd.f32 %v2902_v48, %v7005_v54 }
 0xa51   : > { %v3938_v8 = vmul.f32 -1.442695, %v3005_v10  ;;  %v3007_v46 = vadd.f32 %v2982_v22, %v2903_v51 }
 0xa53   : > { %4191 = vpow2.f32 %v3938_v8  ;;  %v3940_v52 = vmul.f32 -1.442695, %v3007_v46 }
 0xa55   : > { %4193 = vpow2.f32 %v3940_v52 }
 0xa59   : > { %v4192_v11 = vpop.eup %4191 }
 0xa5a   : > { %v3018_v40 = vadd.f32 1.0, %v4192_v11 }
 0xa5b   : > { %v4194_v50 = vpop.eup %4193 }
 0xa5c   : > { %4195 = vrcp.f32 %v3018_v40  ;;  %v3020_v43 = vadd.f32 1.0, %v4194_v50  ;;  %v3032_v15 = vand.u32 2147483648, %v3018_v40  ;;  %vm3026_vm6 = vweird.f32 %v3018_v40 }
 0xa5d   : > { %v3030_v5 = vand.u32 2147483647, %v3018_v40 }
 0xa5e   : > { %v3033_v25 = vor.u32 1.1754944e-38, %v3032_v15  ;;  %v3062_v10 = vand.u32 2147483648, %v3020_v43  ;;  %vm3056_vm14 = vweird.f32 %v3020_v43  ;;  %v3060_v16 = vand.u32 2147483647, %v3020_v43 }
 0xa5f   : > { %vm3031_vm9 = vcmp.eq.f32.partialorder %v3030_v5, 8.507059e+37 }
 0xa60   : > { %v3063_v48 = vor.u32 1.1754944e-38, %v3062_v10  ;;  %vm3061_vm3 = vcmp.eq.f32.partialorder %v3060_v16, 8.507059e+37  ;;  %v4370_v10 = vld [vmem:[#allocation5 + $0x170] sm:$0xff]  ;;  %v4371_v16 = vld [vmem:[%s6508_s12 + $0x60] sm:$0xff] }
 0xa62   : > { %v4196_v59 = vpop.eup %4195 }
 0xa63   : > { %v3022_v32 = vmul.f32 %v4196_v59, %v3018_v40  ;;  %vm3027_vm0 = vweird.f32 %v4196_v59 }
 0xa64   : > { %vm3028_vm7 = vmor %vm3026_vm6, %vm3027_vm0 }
 0xa65   : > { %v3023_v42 = vsub.f32 1.0, %v3022_v32 }
 0xa66   : > { %v2962_v61 = vpop.f32.mrf.mxu3 }
 0xa67   : > { %v3006_v6 = vadd.f32 %v2962_v61, %v2883_v47  ;;  %v3024_v56 = vmul.f32 %v4196_v59, %v3023_v42 }
 0xa69   : > { %v3939_v18 = vmul.f32 -1.442695, %v3006_v6  ;;  %v3025_v60 = vadd.f32 %v4196_v59, %v3024_v56 }
 0xa6b   : > { %4197 = vpow2.f32 %v3939_v18  ;;  %v3029_v0 = vsel %vm3028_vm7, %v4196_v59, %v3025_v60  ;;  %v7040_v60 = vld [vmem:[#allocation65_spill] sm:$0xff] }
 0xa6c   : > { %4199 = vrcp.f32 %v3020_v43  ;;  %v3034_v57 = vsel %vm3031_vm9, %v3033_v25, %v3029_v0 }
 0xa71   : > { %v4198_v14 = vpop.eup %4197 }
 0xa72   : > { %v3019_v49 = vadd.f32 1.0, %v4198_v14  ;;  %v4200_v38 = vpop.eup %4199 }
 0xa73   : > { %v3052_v34 = vmul.f32 %v4200_v38, %v3020_v43  ;;  %vm3057_vm13 = vweird.f32 %v4200_v38 }
 0xa74   : > { %4201 = vrcp.f32 %v3019_v49  ;;  %v3047_v62 = vand.u32 2147483648, %v3019_v49  ;;  %v3045_v58 = vand.u32 2147483647, %v3019_v49  ;;  %vm3041_vm10 = vweird.f32 %v3019_v49  ;;  %vm3058_vm15 = vmor %vm3056_vm14, %vm3057_vm13 }
 0xa75   : > { %4203 = vtanh.f32 %v3008_v39  ;;  %v3053_v29 = vsub.f32 1.0, %v3052_v34  ;;  %v7039_v39 = vld [vmem:[#allocation64_spill] sm:$0xff] }
 0xa76   : > { %v3048_v53 = vor.u32 1.1754944e-38, %v3047_v62  ;;  %vm3046_vm12 = vcmp.eq.f32.partialorder %v3045_v58, 8.507059e+37 }
 0xa77   : > { %v3054_v45 = vmul.f32 %v4200_v38, %v3053_v29 }
 0xa79   : > { %v3055_v21 = vadd.f32 %v4200_v38, %v3054_v45  ;;  %v4365_v45 = vld [vmem:[#allocation5 + $0x1d0] sm:$0xff] }
 0xa7a   : > { %v4202_v41 = vpop.eup %4201 }
 0xa7b   : > { %v3037_v35 = vmul.f32 %v4202_v41, %v3019_v49  ;;  %vm3042_vm8 = vweird.f32 %v4202_v41  ;;  %v4204_v63 = vpop.eup %4203  ;;  %v3059_v8 = vsel %vm3058_vm15, %v4200_v38, %v3055_v21  ;;  %v7032_v38 = vld [vmem:[#allocation55_spill] sm:$0xff] }
 0xa7c   : > { %vm3043_vm11 = vmor %vm3041_vm10, %vm3042_vm8  ;;  %v3068_v3 = vmul.f32 %v4204_v63, %v3034_v57  ;;  %v3064_v22 = vsel %vm3061_vm3, %v3063_v48, %v3059_v8  ;;  %v4364_v63 = vld [vmem:[%s6508_s12 + $0x78] sm:$0xff] }
 0xa7d   : > { %v3038_v31 = vsub.f32 1.0, %v3037_v35  ;;  %v4369_v21 = vld [vmem:[#allocation5 + $0x190] sm:$0xff] }
 0xa7e   : > { %v4372_v8 = vld [vmem:[#allocation5 + $0x150] sm:$0xff] }
 0xa7f   : > { %v3039_v27 = vmul.f32 %v4202_v41, %v3038_v31  ;;  %v4373_v48 = vld [vmem:[%s6508_s12 + $0x58] sm:$0xff] }
 0xa81   : > { %v3040_v36 = vadd.f32 %v4202_v41, %v3039_v27 }
 0xa83   : > { %v3044_v44 = vsel %vm3043_vm11, %v4202_v41, %v3040_v36  ;;  %v7035_v41 = vld [vmem:[#allocation60_spill] sm:$0xff] }
 0xa84   : > { %v3049_v28 = vsel %vm3046_vm12, %v3048_v53, %v3044_v44  ;;  %v4363_v44 = vld [vmem:[#allocation5 + $0x1f0] sm:$0xff] }
 0xa85   : > { %v3067_v24 = vmul.f32 %v3049_v28, %v6165_v37  ;;  %v4366_v28 = vld [vmem:[%s6508_s12 + $0x70] sm:$0xff] }
 0xa87   : > { %v6321_v23 = vadd.f32 %v3068_v3, %v3067_v24  ;;  %v4367_v3 = vld [vmem:[#allocation5 + $0x1b0] sm:$0xff]  ;;  %v4368_v24 = vld [vmem:[%s6508_s12 + $0x68] sm:$0xff] }
 0xa89   : > { %4205 = vtanh.f32 %v6321_v23 }
 0xa8f   : > { %v4206_v51 = vpop.eup %4205 }
 0xa90   : > { %v6324_v46 = vmul.f32 %v4206_v51, %v3064_v22  ;;  %v4374_v51 = vld [vmem:[#allocation5 + $0x130] sm:$0xff]  ;;  %v4375_v22 = vld [vmem:[%s6508_s12 + $0x50] sm:$0xff] }
 0xa92   : > { %v3941_v11 = vmul.f32 -1.442695, %v6324_v46 }
 0xa94   : > { %4207 = vpow2.f32 %v3941_v11  ;;  %v4376_v11 = vld [vmem:[#allocation5 + $0x110] sm:$0xff] }
 0xa9a   : > { %v4208_v37 = vpop.eup %4207 }
 0xa9b   : > { %v3075_v52 = vadd.f32 1.0, %v4208_v37  ;;  %v4377_v37 = vld [vmem:[%s6508_s12 + $0x48] sm:$0xff] }
 0xa9d   : > { %4209 = vrcp.f32 %v3075_v52  ;;  %v3087_v6 = vand.u32 2147483648, %v3075_v52  ;;  %v3085_v50 = vand.u32 2147483647, %v3075_v52  ;;  %vm3081_vm5 = vweird.f32 %v3075_v52 }
 0xa9f   : > { %v3088_v43 = vor.u32 1.1754944e-38, %v3087_v6  ;;  %vm3086_vm6 = vcmp.eq.f32.partialorder %v3085_v50, 8.507059e+37  ;;  %v4382_v6 = vld [vmem:[#allocation5 + $0xb0] sm:$0xff] }
 0xaa0   : > { %v4384_v50 = vld [vmem:[#allocation5 + $0x90] sm:$0xff] }
 0xaa3   : > { %v4210_v40 = vpop.eup %4209 }
 0xaa4   : > { %v3077_v47 = vmul.f32 %v4210_v40, %v3075_v52  ;;  %vm3082_vm4 = vweird.f32 %v4210_v40  ;;  %v4378_v52 = vld [vmem:[#allocation5 + $0xf0] sm:$0xff] }
 0xaa5   : > { %vm3083_vm0 = vmor %vm3081_vm5, %vm3082_vm4 }
 0xaa6   : > { %v3078_v61 = vsub.f32 1.0, %v3077_v47  ;;  %v4380_v47 = vld [vmem:[#allocation5 + $0xd0] sm:$0xff] }
 0xaa8   : > { %v3079_v18 = vmul.f32 %v4210_v40, %v3078_v61  ;;  %v4381_v61 = vld [vmem:[%s6508_s12 + $0x38] sm:$0xff] }
 0xaaa   : > { %v3080_v59 = vadd.f32 %v4210_v40, %v3079_v18  ;;  %v4383_v18 = vld [vmem:[%s6508_s12 + $0x30] sm:$0xff] }
 0xaac   : > { %v3084_v32 = vsel %vm3083_vm0, %v4210_v40, %v3080_v59  ;;  %v4379_v40 = vld [vmem:[%s6508_s12 + $0x40] sm:$0xff]  ;;  %v4385_v59 = vld [vmem:[%s6508_s12 + $0x28] sm:$0xff] }
 0xaad   : > { %v3089_v14 = vsel %vm3086_vm6, %v3088_v43, %v3084_v32  ;;  %v4386_v43 = vld [vmem:[#allocation5 + $0x70] sm:$0xff]  ;;  %v4387_v32 = vld [vmem:[%s6508_s12 + $0x20] sm:$0xff] }
 0xaae   : > { %v3091_v49 = vmul.f32 %v3089_v14, %v6324_v46  ;;  %v4388_v14 = vld [vmem:[#allocation5 + $0x50] sm:$0xff] }
 0xab0   : > { %3108 = vmatmul.f32.vlgmr.msra.gmra.mxu2 %v3091_v49  ;;  %v4389_v49 = vld [vmem:[%s6508_s12 + $0x18] sm:$0xff] }
 0xab8   : > { %3315 = vmatmul.f32.vlgmr.msrb.gmra.mxu2 %v6324_v46 }
 0xb33   : > { %v3109_v42 = vpop.f32.mrf.mxu2 }
 0xb34   : > { %v6330_v26 = vadd.f32 %v7019_v12, %v3109_v42  ;;  %v7033_v12 = vld [vmem:[#allocation58_spill] sm:$0xff]  ;;  %v4390_v42 = vld [vmem:[#allocation5 + $0x30] sm:$0xff] }
 0xb36   : > { %v6334_v56 = vadd.f32 %v6330_v26, %v6200_v30  ;;  %3452 = vrot.lane.b32.xlu1 %v6330_v26, %s4478_s19 }
 0xb38   : > { %3943 = vmatmul.msk.f32.vlgmr.msra.gmra.mxu3 %vm728_vm1, %v6334_v56 }
 0xb39   : > { %3239 = vmatpush.msra.mxu3 %v6208_v4  ;;  %v7036_v4 = vld [vmem:[#allocation61_spill] sm:$0xff] }
 0xb3b   : > { %3240 = vmatpush.msra.mxu3 %v6211_v33  ;;  %v7037_v33 = vld [vmem:[#allocation62_spill] sm:$0xff] }
 0xb3d   : > { %3241 = vmatpush.msra.mxu3 %v6214_v9  ;;  %v7038_v9 = vld [vmem:[#allocation63_spill] sm:$0xff] }
 0xb3e   : > { %3429 = vrot.lane.b32.xlu1 %v7032_v38, %s4479_s20 }
 0xb3f   : > { %3242 = vmatpush.msra.mxu3 %v6217_v7  ;;  %v7041_v7 = vld [vmem:[#allocation66_spill] sm:$0xff] }
 0xb41   : > { %3243 = vmatpush.msra.mxu3 %v6220_v13  ;;  %v7042_v13 = vld [vmem:[#allocation51_spill] sm:$0xff] }
 0xb43   : > { %3244 = vmatpush.msra.mxu3 %v6223_v17 }
 0xb45   : > { %3245 = vmatpush.msra.mxu3 %v7033_v12  ;;  %v4391_v12 = vld [vmem:[%s6508_s12 + $0x10] sm:$0xff] }
 0xb47   : > { %3246 = vmatpush.msra.mxu3 %v7034_v1  ;;  %v4392_v1 = vld [vmem:[#allocation5 + $0x10] sm:$0xff] }
 0xb49   : > { %3247 = vmatpush.msra.mxu3 %v7035_v41  ;;  %v4393_v41 = vld [vmem:[%s6508_s12 + $0x8] sm:$0xff] }
 0xb4b   : > { %3248 = vmatpush.msra.mxu3 %v7036_v4  ;;  %v4394_v4 = vld [vmem:[%s6508_s12] sm:$0xff] }
 0xb4d   : > { %3249 = vmatpush.msra.mxu3 %v7037_v33 }
 0xb4f   : > { %3250 = vmatpush.msra.mxu3 %v7038_v9 }
 0xb51   : > { %3251 = vmatpush.msra.mxu3 %v7039_v39 }
 0xb53   : > { %3252 = vmatpush.msra.mxu3 %v7040_v60 }
 0xb55   : > { %3253 = vmatpush.msra.mxu3 %v7041_v7 }
 0xb57   : > { %3254 = vmatpush.msra.mxu3 %v7042_v13 }
 0xbbb   : > { %v3133_v17 = vpop.f32.mrf.mxu3 }
 0xbbc   : > { %v3134_v35 = vadd.f32 %v6259_v55, %v3133_v17 }
 0xbbe   : > { %v3944_v34 = vmul.f32 -1.442695, %v3134_v35 }
 0xbc0   : > { %4211 = vpow2.f32 %v3944_v34 }
 0xbc6   : > { %v4212_v15 = vpop.eup %4211 }
 0xbc7   : > { %v3139_v5 = vadd.f32 1.0, %v4212_v15 }
 0xbc9   : > { %4213 = vrcp.f32 %v3139_v5  ;;  %v3151_v27 = vand.u32 2147483648, %v3139_v5  ;;  %v3149_v29 = vand.u32 2147483647, %v3139_v5  ;;  %vm3145_vm8 = vweird.f32 %v3139_v5 }
 0xbcb   : > { %v3152_v36 = vor.u32 1.1754944e-38, %v3151_v27  ;;  %vm3150_vm10 = vcmp.eq.f32.partialorder %v3149_v29, 8.507059e+37 }
 0xbcf   : > { %v4214_v31 = vpop.eup %4213 }
 0xbd0   : > { %v3141_v62 = vmul.f32 %v4214_v31, %v3139_v5  ;;  %vm3146_vm7 = vweird.f32 %v4214_v31 }
 0xbd1   : > { %vm3147_vm9 = vmor %vm3145_vm8, %vm3146_vm7 }
 0xbd2   : > { %v3142_v0 = vsub.f32 1.0, %v3141_v62 }
 0xbd4   : > { %v3143_v58 = vmul.f32 %v4214_v31, %v3142_v0 }
 0xbd6   : > { %v3144_v25 = vadd.f32 %v4214_v31, %v3143_v58 }
 0xbd8   : > { %v3148_v57 = vsel %vm3147_vm9, %v4214_v31, %v3144_v25 }
 0xbd9   : > { %v3153_v53 = vsel %vm3150_vm10, %v3152_v36, %v3148_v57 }
 0xbda   : > { %v3155_v55 = vmul.f32 %v3153_v53, %v3134_v35 }
 0xbdc   : > { %3945 = vmatmul.msk.f32.vlgmr.msrb.gmra.mxu1 %vm2213_vm2, %v3155_v55  ;;  %3946 = vmatmul.msk.f32.vlgmr.msrb.gmra.mxu3 %vm2213_vm2, %v3155_v55 }
 0xbdd   : > { %3947 = vmatmul.msk.f32.vlgmr.msra.gmra.mxu0 %vm2213_vm2, %v3155_v55  ;;  %3279 = vmatpush.msrb.mxu1 %v4363_v44 }
 0xbde   : > { %3406 = vmatpush.msrb.mxu3 %v4364_v63  ;;  %v3316_v63 = vpop.f32.mrf.mxu2 }
 0xbdf   : > { %3280 = vmatpush.msrb.mxu1 %v4365_v45 }
 0xbe0   : > { %3407 = vmatpush.msrb.mxu3 %v4366_v28 }
 0xbe1   : > { %3281 = vmatpush.msrb.mxu1 %v4367_v3 }
 0xbe2   : > { %3408 = vmatpush.msrb.mxu3 %v4368_v24 }
 0xbe3   : > { %3282 = vmatpush.msrb.mxu1 %v4369_v21 }
 0xbe4   : > { %3948 = vmatmul.msk.f32.vlgmr.msra.gmra.mxu1 %vm2213_vm2, %v3155_v55  ;;  %3255 = vmatmul.f32.vlgmr.msra.gmra.mxu3 %v6324_v46 }
 0xbe5   : > { %3275 = vmatmul.f32.vlgmr.msrb.gmra.mxu0 %v6324_v46  ;;  %3283 = vmatpush.msrb.mxu1 %v4370_v10 }
 0xbe6   : > { %3409 = vmatpush.msrb.mxu3 %v4371_v16 }
 0xbe7   : > { %3284 = vmatpush.msrb.mxu1 %v4372_v8 }
 0xbe8   : > { %3410 = vmatpush.msrb.mxu3 %v4373_v48 }
 0xbe9   : > { %3285 = vmatpush.msrb.mxu1 %v4374_v51 }
 0xbea   : > { %3411 = vmatpush.msrb.mxu3 %v4375_v22 }
 0xbeb   : > { %3286 = vmatpush.msrb.mxu1 %v4376_v11 }
 0xbec   : > { %3412 = vmatpush.msrb.mxu3 %v4377_v37 }
 0xbed   : > { %3287 = vmatpush.msrb.mxu1 %v4378_v52 }
 0xbee   : > { %3413 = vmatpush.msrb.mxu3 %v4379_v40 }
 0xbef   : > { %3288 = vmatpush.msrb.mxu1 %v4380_v47 }
 0xbf0   : > { %3414 = vmatpush.msrb.mxu3 %v4381_v61 }
 0xbf1   : > { %3289 = vmatpush.msrb.mxu1 %v4382_v6 }
 0xbf2   : > { %3415 = vmatpush.msrb.mxu3 %v4383_v18 }
 0xbf3   : > { %3290 = vmatpush.msrb.mxu1 %v4384_v50 }
 0xbf4   : > { %3416 = vmatpush.msrb.mxu3 %v4385_v59 }
 0xbf5   : > { %3291 = vmatpush.msrb.mxu1 %v4386_v43 }
 0xbf6   : > { %3417 = vmatpush.msrb.mxu3 %v4387_v32 }
 0xbf7   : > { %3292 = vmatpush.msrb.mxu1 %v4388_v14 }
 0xbf8   : > { %3418 = vmatpush.msrb.mxu3 %v4389_v49 }
 0xbf9   : > { %3293 = vmatpush.msrb.mxu1 %v4390_v42 }
 0xbfa   : > { %3419 = vmatpush.msrb.mxu3 %v4391_v12 }
 0xbfb   : > { %3294 = vmatpush.msrb.mxu1 %v4392_v1 }
 0xbfc   : > { %3295 = vmatmul.f32.vlgmr.msrb.gmra.mxu1 %v6324_v46  ;;  %3420 = vmatpush.msrb.mxu3 %v4393_v41 }
 0xbfe   : > { %3421 = vmatpush.msrb.mxu3 %v4394_v4 }
 0xc59   : > { %v3176_v7 = vpop.f32.mrf.mxu1 }
 0xc5a   : > { %v3216_v33 = vpop.f32.mrf.mxu0  ;;  %v3177_v46 = vadd.f32 %v3176_v7, %v7003_v20 }
 0xc5b   : > { %v3217_v29 = vadd.f32 %v3216_v33, %v7005_v54 }
 0xc5f   : > { %v3196_v9 = vpop.f32.mrf.mxu3 }
 0xc60   : > { %v3197_v39 = vadd.f32 %v3196_v9, %v7004_v2 }
 0xc61   : > { %v3236_v62 = vpop.f32.mrf.mxu1 }
 0xc62   : > { %v3276_v60 = vpop.f32.mrf.mxu0  ;;  %v3237_v20 = vadd.f32 %v3236_v62, %v7006_v19 }
 0xc63   : > { %v3320_v13 = vadd.f32 %v3276_v60, %v3197_v39 }
 0xc64   : > { %v3322_v28 = vadd.f32 %v3316_v63, %v3237_v20  ;;  %v4395_v20 = vld [vmem:[%s6509_s13] ss:$0 sm:$0xff] }
 0xc65   : > { %v3950_v17 = vmul.f32 -1.442695, %v3320_v13  ;;  %v6438_v63 = vld [vmem:[%s524_s28] sm:$0xff] }
 0xc67   : > { %4215 = vpow2.f32 %v3950_v17  ;;  %v3256_v35 = vpop.f32.mrf.mxu3 }
 0xc68   : > { %v3319_v34 = vadd.f32 %v3256_v35, %v3177_v46 }
 0xc6a   : > { %v3949_v15 = vmul.f32 -1.442695, %v3319_v34 }
 0xc6c   : > { %4217 = vpow2.f32 %v3949_v15 }
 0xc6d   : > { %v4216_v5 = vpop.eup %4215 }
 0xc6e   : > { %v3333_v31 = vadd.f32 1.0, %v4216_v5 }
 0xc70   : > { %4219 = vrcp.f32 %v3333_v31  ;;  %v3361_v54 = vand.u32 2147483648, %v3333_v31  ;;  %vm3355_vm13 = vweird.f32 %v3333_v31  ;;  %v3359_v19 = vand.u32 2147483647, %v3333_v31 }
 0xc72   : > { %v4218_v0 = vpop.eup %4217  ;;  %v3362_v52 = vor.u32 1.1754944e-38, %v3361_v54  ;;  %vm3360_vm4 = vcmp.eq.f32.partialorder %v3359_v19, 8.507059e+37 }
 0xc73   : > { %v3332_v27 = vadd.f32 1.0, %v4218_v0 }
 0xc75   : > { %4221 = vrcp.f32 %v3332_v27  ;;  %v3346_v21 = vand.u32 2147483648, %v3332_v27  ;;  %v3344_v16 = vand.u32 2147483647, %v3332_v27  ;;  %vm3340_vm12 = vweird.f32 %v3332_v27 }
 0xc76   : > { %v4220_v58 = vpop.eup %4219 }
 0xc77   : > { %v3351_v2 = vmul.f32 %v4220_v58, %v3333_v31  ;;  %vm3356_vm11 = vweird.f32 %v4220_v58  ;;  %v3347_v22 = vor.u32 1.1754944e-38, %v3346_v21  ;;  %vm3345_vm3 = vcmp.eq.f32.partialorder %v3344_v16, 8.507059e+37 }
 0xc78   : > { %vm3357_vm15 = vmor %vm3355_vm13, %vm3356_vm11  ;;  %vm3440_vm11 = vcmask 7168   ;;  %vm3509_vm13 = vcmask 1043456  }
 0xc79   : > { %v3352_v25 = vsub.f32 1.0, %v3351_v2  ;;  %v3296_v36 = vpop.f32.mrf.mxu1 }
 0xc7a   : > { %v3321_v57 = vadd.f32 %v3296_v36, %v3217_v29  ;;  %v3453_v29 = vpop.permute.xlu1 %3452 }
 0xc7b   : > { %v4222_v53 = vpop.eup %4221  ;;  %v3353_v45 = vmul.f32 %v4220_v58, %v3352_v25 }
 0xc7c   : > { %v3336_v55 = vmul.f32 %v4222_v53, %v3332_v27  ;;  %v3951_v44 = vmul.f32 -1.442695, %v3321_v57  ;;  %vm3341_vm2 = vweird.f32 %v4222_v53  ;;  %v4480_v27 = vmov 1  }
 0xc7d   : > { %v3354_v10 = vadd.f32 %v4220_v58, %v3353_v45  ;;  %vm3342_vm14 = vmor %vm3340_vm12, %vm3341_vm2  ;;  %4006 = vset.pattern.permute.xlu2 %v4480_v27  ;;  %vm3443_vm12 = vcmask 23552   ;;  %v3427_v45 = vld [vmem:[%s6499_s3] sm:$0xf] }
 0xc7e   : > { %v3337_v3 = vsub.f32 1.0, %v3336_v55  ;;  %4223 = vpow2.f32 %v3951_v44  ;;  %v7043_v44 = vld [vmem:[#allocation56_spill] sm:$0xff]  ;;  %3953 = vmatpush.msk.msra.mxu0 %vm3509_vm13, %v3427_v45  ;;  %3955 = vmatpush.msk.msra.mxu1 %vm3509_vm13, %v3427_v45 }
 0xc7f   : > { %4225 = vtanh.f32 %v3322_v28  ;;  %v3358_v11 = vsel %vm3357_vm15, %v4220_v58, %v3354_v10  ;;  %v3446_v58 = vpop.permute.xlu0 %3445  ;;  %v3434_v28 = vpop.permute.xlu2 %3433 }
 0xc80   : > { %v3338_v24 = vmul.f32 %v4222_v53, %v3337_v3  ;;  %v3363_v61 = vsel %vm3360_vm4, %v3362_v52, %v3358_v11  ;;  %3959 = vmatpush.msk.msrb.mxu1 %vm3509_vm13, %v3427_v45  ;;  %3957 = vmatpush.msk.msrb.mxu0 %vm3509_vm13, %v3427_v45 }
 0xc81   : > { %v3381_v18 = vmul.f32 %v3363_v61, %v6321_v23 }
 0xc82   : > { %v3339_v8 = vadd.f32 %v4222_v53, %v3338_v24  ;;  %v3430_v3 = vpop.permute.xlu1 %3429 }
 0xc83   : > { %v3441_v24 = vsel %vm3440_vm11, %v3430_v3, %v3434_v28 }
 0xc84   : > { %v4224_v48 = vpop.eup %4223  ;;  %v3343_v51 = vsel %vm3342_vm14, %v4222_v53, %v3339_v8  ;;  %vm3502_vm14 = vcmask 31744  }
 0xc85   : > { %v3334_v37 = vadd.f32 1.0, %v4224_v48  ;;  %v3348_v40 = vsel %vm3345_vm3, %v3347_v22, %v3343_v51  ;;  %v4226_v47 = vpop.eup %4225 }
 0xc86   : > { %v3382_v6 = vmul.f32 %v4226_v47, %v3348_v40 }
 0xc87   : > { %4227 = vrcp.f32 %v3334_v37  ;;  %v3376_v14 = vand.u32 2147483648, %v3334_v37  ;;  %v3374_v42 = vand.u32 2147483647, %v3334_v37  ;;  %vm3370_vm0 = vweird.f32 %v3334_v37  ;;  %v3449_v2 = vpop.permute.xlu0 %3448 }
 0xc88   : > { %v3383_v59 = vadd.f32 %v3382_v6, %v3381_v18  ;;  %v3455_v36 = vsel %vm3440_vm11, %v3446_v58, %v3449_v2 }
 0xc89   : > { %v3377_v1 = vor.u32 1.1754944e-38, %v3376_v14  ;;  %vm3375_vm7 = vcmp.eq.f32.partialorder %v3374_v42, 8.507059e+37  ;;  %v3456_v53 = vsel %vm728_vm1, %v3455_v36, %v3453_v29 }
 0xc8a   : > { %4229 = vtanh.f32 %v3383_v59 }
 0xc8d   : > { %v4228_v50 = vpop.eup %4227 }
 0xc8e   : > { %v3366_v43 = vmul.f32 %v4228_v50, %v3334_v37  ;;  %vm3371_vm5 = vweird.f32 %v4228_v50 }
 0xc8f   : > { %vm3372_vm6 = vmor %vm3370_vm0, %vm3371_vm5 }
 0xc90   : > { %v3367_v32 = vsub.f32 1.0, %v3366_v43  ;;  %v4230_v4 = vpop.eup %4229 }
 0xc92   : > { %v3368_v49 = vmul.f32 %v4228_v50, %v3367_v32 }
 0xc94   : > { %v3369_v12 = vadd.f32 %v4228_v50, %v3368_v49 }
 0xc96   : > { %v3373_v41 = vsel %vm3372_vm6, %v4228_v50, %v3369_v12 }
 0xc97   : > { %v3378_v33 = vsel %vm3375_vm7, %v3377_v1, %v3373_v41 }
 0xc98   : > { %v3385_v9 = vmul.f32 %v4230_v4, %v3378_v33 }
 0xc9a   : > { %v3952_v39 = vmul.f32 -1.442695, %v3385_v9 }
 0xc9c   : > { %4231 = vpow2.f32 %v3952_v39 }
 0xca2   : > { %v4232_v23 = vpop.eup %4231 }
 0xca3   : > { %v3389_v60 = vadd.f32 1.0, %v4232_v23 }
 0xca5   : > { %4233 = vrcp.f32 %v3389_v60  ;;  %v3401_v46 = vand.u32 2147483648, %v3389_v60  ;;  %v3399_v34 = vand.u32 2147483647, %v3389_v60  ;;  %vm3395_vm9 = vweird.f32 %v3389_v60 }
 0xca7   : > { %v3402_v5 = vor.u32 1.1754944e-38, %v3401_v46  ;;  %vm3400_vm2 = vcmp.eq.f32.partialorder %v3399_v34, 8.507059e+37 }
 0xcab   : > { %v4234_v7 = vpop.eup %4233 }
 0xcac   : > { %v3391_v13 = vmul.f32 %v4234_v7, %v3389_v60  ;;  %vm3396_vm8 = vweird.f32 %v4234_v7 }
 0xcad   : > { %vm3397_vm10 = vmor %vm3395_vm9, %vm3396_vm8 }
 0xcae   : > { %v3392_v17 = vsub.f32 1.0, %v3391_v13 }
 0xcb0   : > { %v3393_v35 = vmul.f32 %v4234_v7, %v3392_v17  ;;  %v7044_v17 = vld [vmem:[#allocation57_spill] sm:$0xff] }
 0xcb2   : > { %v3394_v15 = vadd.f32 %v4234_v7, %v3393_v35 }
 0xcb4   : > { %v3398_v31 = vsel %vm3397_vm10, %v4234_v7, %v3394_v15 }
 0xcb5   : > { %v3403_v62 = vsel %vm3400_vm2, %v3402_v5, %v3398_v31 }
 0xcb6   : > { %v3405_v0 = vmul.f32 %v3403_v62, %v3385_v9 }
 0xcb8   : > { %3422 = vmatmul.f32.vlgmr.msrb.gmra.mxu3 %v3405_v0 }
 0xd3b   : > { %v3423_v25 = vpop.f32.mrf.mxu3 }
 0xd3c   : > { %v3424_v57 = vadd.f32 %v4395_v20, %v3423_v25 }
 0xd3e   : > { %3437 = vrot.lane.b32.xlu2 %v3424_v57, %s4481_s21  ;;  %v3457_v55 = vsel %vm3443_vm12, %v3456_v53, %v3424_v57  ;;  %v3426_v48 = vadd.f32 %v3424_v57, %v6334_v56 }
 0xd3f   : > { %3499 = vrot.lane.b32.xlu0 %v3457_v55, %s4482_s23 }
 0xd46   : > { %3486 = vrot.lane.b32.xlu2 %v7043_v44, %s4478_s19 }
 0xd47   : > { %3489 = vrot.lane.b32.xlu0 %v6334_v56, %s4481_s21 }
 0xd4e   : > { %3473 = vrot.lane.b32.xlu2 %v6200_v30, %s4481_s21 }
 0xd4f   : > { %3476 = vrot.lane.b32.xlu0 %v6334_v56, %s4483_s25 }
 0xd56   : > { %3618 = vperm.xlu2 %4006, %v6438_v63  }
 0xd5e   : > { %3458 = vrot.lane.b32.xlu2 %v7032_v38, %s4484_s30  ;;  %v3442_v38 = vsel %vm728_vm1, %v3441_v24, %v6330_v26 }
 0xd66   : > { %3467 = vrot.lane.b32.xlu2 %v3424_v57, %s4478_s19  ;;  %s4485_s19 = smov 3  }
 0xd98   : > { %v3438_v21 = vpop.permute.xlu2 %3437 }
 0xd99   : > { %v3444_v10 = vsel %vm3443_vm12, %v3442_v38, %v3438_v21 }
 0xda0   : > { %v3487_v22 = vpop.permute.xlu2 %3486 }
 0xda1   : > { %v3495_v37 = vsel %vm3440_vm11, %v3487_v22, %v6200_v30  ;;  %v4486_v30 = vmov 0  }
 0xda2   : > { %4007 = vset.pattern.permute.xlu0 %v4486_v30 }
 0xda8   : > { %v3474_v61 = vpop.permute.xlu2 %3473 }
 0xda9   : > { %v3483_v6 = vsel %vm3440_vm11, %v7043_v44, %v3474_v61 }
 0xdb0   : > { %v3619_v1 = vpop.permute.xlu2 %3618 }
 0xdb1   : > { %v3500_v16 = vpop.permute.xlu0 %3499 }
 0xdb2   : > { %v3503_v54 = vsel %vm3502_vm14, %v3444_v10, %v3500_v16 }
 0xdb3   : > { %v3504_v8 = vmul.f32 1.442695, %v3503_v54 }
 0xdb5   : > { %4235 = vpow2.f32 %v3504_v8 }
 0xdb9   : > { %v3490_v11 = vpop.permute.xlu0 %3489 }
 0xdba   : > { %v3496_v52 = vsel %vm728_vm1, %v3495_v37, %v3490_v11 }
 0xdbb   : > { %v4236_v19 = vpop.eup %4235 }
 0xdbc   : > { %3534 = vrot.lane.b32.xlu1 %v4236_v19, %s4484_s30  ;;  %3954 = vmatmul.msk.f32.vlgmr.msra.gmra.mxu0 %vm3502_vm14, %v4236_v19 }
 0xdc1   : > { %v3477_v56 = vpop.permute.xlu0 %3476 }
 0xdc2   : > { %v3484_v18 = vsel %vm728_vm1, %v3483_v6, %v3477_v56 }
 0xdc4   : > { %3492 = vrot.lane.b32.xlu1 %v3426_v48, %s4483_s25  ;;  %s528_s25 = scalar_lea.vmem %s6498_s2, %s3847_s24 }
 0xdc5   : > { %v6479_v46 = vld [vmem:[%s528_s25] sm:$0xff] }
 0xdcc   : > { %3480 = vrot.lane.b32.xlu1 %v3426_v48, %s4485_s19 }
 0xe2e   : > { %v3535_v51 = vpop.permute.xlu1 %3534 }
 0xe2f   : > { %3956 = vmatmul.msk.f32.vlgmr.msra.gmra.mxu1 %vm3502_vm14, %v3535_v51 }
 0xe36   : > { %v3493_v40 = vpop.permute.xlu1 %3492 }
 0xe37   : > { %v3497_v47 = vsel %vm3443_vm12, %v3496_v52, %v3493_v40 }
 0xe38   : > { %3960 = vmatmul.msk.f32.vlgmr.msrb.gmra.mxu1 %vm3502_vm14, %v3497_v47 }
 0xe39   : > { %v3530_v25 = vpop.f32.mrf.mxu0 }
 0xe3a   : > { %v3533_v36 = vmul.f32 0.16, %v3530_v25 }
 0xe3c   : > { %v3640_v21 = vand.u32 2147483648, %v3533_v36  ;;  %v3638_v38 = vand.u32 2147483647, %v3533_v36 }
 0xe3e   : > { %v3481_v50 = vpop.permute.xlu1 %3480  ;;  %v3641_v54 = vor.u32 1.1754944e-38, %v3640_v21  ;;  %vm3639_vm7 = vcmp.eq.f32.partialorder %v3638_v38, 8.507059e+37 }
 0xe3f   : > { %v3485_v59 = vsel %vm3443_vm12, %v3484_v18, %v3481_v50 }
 0xe40   : > { %3958 = vmatmul.msk.f32.vlgmr.msrb.gmra.mxu0 %vm3502_vm14, %v3485_v59 }
 0xeac   : > { %v3555_v43 = vpop.f32.mrf.mxu1 }
 0xead   : > { %v3558_v32 = vmul.f32 0.16, %v3555_v43 }
 0xeaf   : > { %4237 = vrcp.f32 %v3558_v32  ;;  %v3655_v33 = vand.u32 2147483648, %v3558_v32  ;;  %v3653_v39 = vand.u32 2147483647, %v3558_v32  ;;  %vm3649_vm3 = vweird.f32 %v3558_v32 }
 0xeb1   : > { %v3656_v60 = vor.u32 1.1754944e-38, %v3655_v33  ;;  %vm3654_vm5 = vcmp.eq.f32.partialorder %v3653_v39, 8.507059e+37 }
 0xeb5   : > { %v4238_v14 = vpop.eup %4237  ;;  %v3604_v49 = vpop.f32.mrf.mxu1 }
 0xeb6   : > { %v3616_v42 = vmul.f32 0.4, %v3604_v49  ;;  %v3645_v12 = vmul.f32 %v4238_v14, %v3558_v32  ;;  %vm3650_vm15 = vweird.f32 %v4238_v14 }
 0xeb7   : > { %vm3651_vm4 = vmor %vm3649_vm3, %vm3650_vm15  ;;  %vm3741_vm3 = vcmask 0  }
 0xeb8   : > { %v3621_v41 = vadd.f32 %v3619_v1, %v3616_v42  ;;  %v3646_v4 = vsub.f32 1.0, %v3645_v12 }
 0xeba   : > { %3623 = vrot.lane.b32.xlu0 %v3621_v41, %s4482_s23  ;;  %v3647_v9 = vmul.f32 %v4238_v14, %v3646_v4 }
 0xebc   : > { %v3648_v23 = vadd.f32 %v4238_v14, %v3647_v9 }
 0xebd   : > { %v3581_v50 = vpop.f32.mrf.mxu0 }
 0xebe   : > { %v3652_v7 = vsel %vm3651_vm4, %v4238_v14, %v3648_v23  ;;  %v3608_v43 = vmul.f32 0.4, %v3581_v50 }
 0xebf   : > { %v3657_v13 = vsel %vm3654_vm5, %v3656_v60, %v3652_v7 }
 0xec0   : > { %3691 = vrot.lane.b32.xlu1 %v3657_v13, %s4482_s23  ;;  %s531_s23 = scalar_lea.vmem %s6510_s14, %s7046_s17 }
 0xec2   : > { %3461 = vrot.lane.b32.xlu0 %v7044_v17, %s4477_s22 }
 0xec8   : > { %3464 = vrot.lane.b32.xlu1 %v6330_v26, %s4479_s20  ;;  %v3459_v26 = vpop.permute.xlu2 %3458 }
 0xeca   : > { %3611 = vperm.xlu0 %4007, %v6438_v63  }
 0xed0   : > { %v3468_v2 = vpop.permute.xlu2 %3467 }
 0xed2   : > { %4008 = vset.pattern.permute.xlu0 %v4480_v27 }
 0xf2c   : > { %v3624_v35 = vpop.permute.xlu0 %3623 }
 0xf2d   : > { %v3626_v34 = vsub.f32 %v6479_v46, %v3624_v35 }
 0xf2f   : > { %3703 = vrot.lane.b32.xlu1 %v3626_v34, %s4484_s30  ;;  %v3689_v15 = vmul.f32 %v3626_v34, %v3626_v34 }
 0xf32   : > { %v3692_v5 = vpop.permute.xlu1 %3691 }
 0xf33   : > { %v3694_v31 = vmul.f32 %v3692_v5, %v3689_v15 }
 0xf34   : > { %v3462_v62 = vpop.permute.xlu0 %3461 }
 0xf35   : > { %3696 = vrot.lane.b32.xlu2 %v3694_v31, %s4484_s30  ;;  %v3470_v27 = vsel %vm3440_vm11, %v3459_v26, %v3462_v62 }
 0xf3a   : > { %v3465_v0 = vpop.permute.xlu1 %3464 }
 0xf3b   : > { %v3471_v58 = vsel %vm728_vm1, %v3470_v27, %v3465_v0  ;;  %vm3634_vm1 = vweird.f32 %v3533_v36 }
 0xf3c   : > { %v3472_v29 = vsel %vm3443_vm12, %v3471_v58, %v3468_v2  ;;  %v3612_v30 = vpop.permute.xlu0 %3611 }
 0xf3d   : > { %4239 = vtanh.f32 %v3472_v29  ;;  %v3614_v49 = vadd.f32 %v3612_v30, %v3608_v43 }
 0xf3e   : > { %4241 = vrcp.f32 %v3533_v36 }
 0xf3f   : > { %v3615_v1 = vsub.f32 %v6479_v46, %v3614_v49 }
 0xf41   : > { %v3687_v9 = vmul.f32 %v3615_v1, %v3615_v1 }
 0xf43   : > { %v4240_v20 = vpop.eup %4239 }
 0xf44   : > { %v3627_v57 = vmul.f32 %v4240_v20, %v4240_v20  ;;  %v4242_v53 = vpop.eup %4241  ;;  %v3700_v4 = vmul.f32 2.0, %v4240_v20 }
 0xf45   : > { %v3630_v44 = vmul.f32 %v4242_v53, %v3533_v36  ;;  %vm3635_vm0 = vweird.f32 %v4242_v53 }
 0xf46   : > { %v3628_v55 = vsub.f32 1.0, %v3627_v57  ;;  %vm3636_vm6 = vmor %vm3634_vm1, %vm3635_vm0  ;;  %v3701_v23 = vmul.f32 %v3700_v4, %v3615_v1 }
 0xf47   : > { %v3631_v63 = vsub.f32 1.0, %v3630_v44 }
 0xf48   : > { %4243 = vrcp.f32 %v3628_v55  ;;  %v3683_v22 = vand.u32 2147483648, %v3628_v55  ;;  %vm3677_vm9 = vweird.f32 %v3628_v55  ;;  %v3681_v11 = vand.u32 2147483647, %v3628_v55 }
 0xf49   : > { %v3632_v28 = vmul.f32 %v4242_v53, %v3631_v63 }
 0xf4a   : > { %v3684_v52 = vor.u32 1.1754944e-38, %v3683_v22  ;;  %vm3682_vm2 = vcmp.eq.f32.partialorder %v3681_v11, 8.507059e+37 }
 0xf4b   : > { %v3633_v24 = vadd.f32 %v4242_v53, %v3632_v28 }
 0xf4d   : > { %v3637_v16 = vsel %vm3636_vm6, %v4242_v53, %v3633_v24 }
 0xf4e   : > { %v4244_v45 = vpop.eup %4243  ;;  %v3642_v8 = vsel %vm3639_vm7, %v3641_v54, %v3637_v16 }
 0xf4f   : > { %v3673_v3 = vmul.f32 %v4244_v45, %v3628_v55  ;;  %v3659_v48 = vmul.f32 %v3657_v13, %v3642_v8  ;;  %vm3678_vm8 = vweird.f32 %v4244_v45  ;;  %v3688_v35 = vmul.f32 %v3687_v9, %v3642_v8 }
 0xf50   : > { %vm3679_vm10 = vmor %vm3677_vm9, %vm3678_vm8 }
 0xf51   : > { %v3674_v10 = vsub.f32 1.0, %v3673_v3  ;;  %4245 = vrsqrt.f32 %v3659_v48  ;;  %vm3667_vm11 = vcmp.eq.f32.partialorder %v3659_v48, inf  ;;  %v3670_v7 = vand.u32 2147483648, %v3659_v48 }
 0xf52   : > { %vm3669_vm12 = vcmp.eq.f32.partialorder %v3659_v48, 0.0 }
 0xf53   : > { %v3675_v19 = vmul.f32 %v4244_v45, %v3674_v10 }
 0xf55   : > { %v3676_v51 = vadd.f32 %v4244_v45, %v3675_v19 }
 0xf57   : > { %v3680_v37 = vsel %vm3679_vm10, %v4244_v45, %v3676_v51  ;;  %v4246_v40 = vpop.eup %4245 }
 0xf58   : > { %v3685_v47 = vsel %vm3682_vm2, %v3684_v52, %v3680_v37  ;;  %v3661_v61 = vmul.f32 %v4246_v40, %v3659_v48 }
 0xf59   : > { %4247 = vrsqrt.f32 %v3685_v47  ;;  %vm3720_vm13 = vcmp.eq.f32.partialorder %v3685_v47, inf  ;;  %v3723_v27 = vand.u32 2147483648, %v3685_v47  ;;  %vm3722_vm15 = vcmp.eq.f32.partialorder %v3685_v47, 0.0 }
 0xf5a   : > { %v3662_v56 = vmul.f32 %v4246_v40, %v3661_v61 }
 0xf5c   : > { %v3663_v18 = vmul.f32 0.5, %v3662_v56 }
 0xf5e   : > { %v3664_v32 = vsub.f32 1.5, %v3663_v18 }
 0xf5f   : > { %v4248_v6 = vpop.eup %4247 }
 0xf60   : > { %v3714_v59 = vmul.f32 %v4248_v6, %v3685_v47  ;;  %v3665_v42 = vmul.f32 %v4246_v40, %v3664_v32 }
 0xf62   : > { %v3715_v14 = vmul.f32 %v4248_v6, %v3714_v59  ;;  %v3666_v41 = vmul.f32 %v3665_v42, %v3659_v48 }
 0xf64   : > { %v3716_v12 = vmul.f32 0.5, %v3715_v14  ;;  %v3668_v39 = vsel %vm3667_vm11, %v3659_v48, %v3666_v41 }
 0xf65   : > { %v3671_v15 = vsel %vm3669_vm12, %v3670_v7, %v3668_v39 }
 0xf66   : > { %v3717_v33 = vsub.f32 1.5, %v3716_v12 }
 0xf68   : > { %v3718_v13 = vmul.f32 %v4248_v6, %v3717_v33 }
 0xf6a   : > { %v3719_v26 = vmul.f32 %v3718_v13, %v3685_v47 }
 0xf6c   : > { %v3721_v0 = vsel %vm3720_vm13, %v3685_v47, %v3719_v26 }
 0xf6d   : > { %v3724_v2 = vsel %vm3722_vm15, %v3723_v27, %v3721_v0 }
 0xf6e   : > { %v3725_v25 = vmul.f32 %v3724_v2, %v3671_v15 }
 0xf70   : > { %v3726_v36 = vmul.f32 0.15915494, %v3725_v25 }
 0xf8f   : > { %v3697_v60 = vpop.permute.xlu2 %3696 }
 0xf90   : > { %v3699_v5 = vadd.f32 %v3697_v60, %v3688_v35 }
 0xfa1   : > { %v3704_v17 = vpop.permute.xlu1 %3703 }
 0xfa2   : > { %v3706_v34 = vmul.f32 %v3704_v17, %v3701_v23 }
 0xfa4   : > { %v3707_v31 = vmul.f32 %v3706_v34, %v3671_v15 }
 0xfa6   : > { %v3708_v62 = vsub.f32 %v3699_v5, %v3707_v31 }
 0xfa8   : > { %v3709_v46 = vmul.f32 -0.5, %v3708_v62 }
 0xfaa   : > { %v3710_v58 = vmul.f32 %v3709_v46, %v3685_v47 }
 0xfac   : > { %v3711_v29 = vmul.f32 1.442695, %v3710_v58 }
 0xfae   : > { %4249 = vpow2.f32 %v3711_v29 }
 0xfb4   : > { %v4250_v20 = vpop.eup %4249 }
 0xfb5   : > { %v3727_v57 = vmul.f32 %v4250_v20, %v3726_v36 }
 0xfb7   : > { %v3728_v53 = vmax.f32 %v3727_v57, 1e-20 }
 0xfb9   : > { %4251 = vlog2.f32 %v3728_v53 }
 0xfbf   : > { %v4252_v55 = vpop.eup %4251 }
 0xfc0   : > { %v3730_v44 = vmul.f32 0.6931472, %v4252_v55 }
 0xfc2   : > { %v3731_v63 = vsub.f32 0.0, %v3730_v44 }
 0xfc4   : > { %v3732_v45 = vsel %vm3502_vm14, %v3731_v63, 0.0 }
 0xfc5   : > { %3733 = vadd.xlane.f32.xlu1 %v3732_v45 }
0x1038   : > { %v3734_v28 = vpop.xlane.xlu1 %3733 }
0x1039   : > { %v3735_v3 = vrot.slane %v3734_v28, 4 }
0x103b   : > { %v3736_v24 = vadd.f32 %v3735_v3, %v3734_v28 }
0x103d   : > { %v3737_v21 = vrot.slane %v3736_v24, 2 }
0x103f   : > { %v3738_v38 = vadd.f32 %v3737_v21, %v3736_v24 }
0x1041   : > { %v3739_v10 = vrot.slane %v3738_v38, 1 }
0x1043   : > { %v3740_v16 = vadd.f32 %v3739_v10, %v3738_v38 }
0x1045   : > { %3742 = vst.msk [vmem:[%s531_s23] sm:$0x1] %vm3741_vm3, %v3740_v16 }
0x1046 PF: > { %s26_s29 = sadd.s32 1, %s4470_s29  }
0x1047   : > { %p23_p7 = scmp.ge.s32.totalorder %s26_s29, 4  }
0x1049   :  { %25 = sbr.rel (!%p23_p7) target bundleno = 2 (0x2), region = 121 }
0x104e   :  { %3760 = vsyncpa [#allocation4], 1 }
0x104f   :  { %3762 = vsyncpa [#allocation4 + $0x1], 1 }
0x1050   :  { %3763 = vsyncpa [#allocation6], 1 }

</bundles_post_ra>
